<compile_context>
chip_gen: v6e
topology: v6e:2x2x1
jax: 0.10.0
libtpu: 0.0.40
codegen_flags: <defaults>
</compile_context>

<pallas_src>
import math

import jax
import jax.numpy as jnp
from jax.experimental import pallas as pl
from jax.experimental.pallas import tpu as pltpu

# Small synthetic CLIP-text config.
B, S, D, H, P, LAYERS = 2, 8, 32, 4, 32, 2
DH = D // H
FF = 4 * D
EPS = 1e-5
NEG_INF = -1e9       # large negative instead of -inf keeps softmax NaN-free
P_PAD = 128          # lane-dense output slab; wrapper slices back to P


def _layernorm(x, w, b):
    mu = jnp.mean(x, axis=-1, keepdims=True)
    var = jnp.mean((x - mu) ** 2, axis=-1, keepdims=True)
    return (x - mu) * jax.lax.rsqrt(var + EPS) * w + b


def _softmax_rows(s):
    # approx=True: EUP vrcp, ~1e-3 rel. error; set approx=False for bit-level
    # closeness to the PyTorch reference.
    s = s - jnp.max(s, axis=-1, keepdims=True)
    p = jnp.exp(s)
    return p * pl.reciprocal(jnp.sum(p, axis=-1, keepdims=True), approx=True)


# ------------------------- the single fused kernel -------------------------

def _text_encoder_kernel(
    eot_ref,                                    # (B,1) int32: flat row index b*S + eot_b
    prompts_ref, pos_ref,                       # (B,S,D) f32, (S,D) f32
    ln1w_ref, ln1b_ref,                         # stacked per-layer params ...
    wq_ref, bq_ref, wk_ref, bk_ref, wv_ref, bv_ref,
    wo_ref, bo_ref,
    ln2w_ref, ln2b_ref,
    w1_ref, b1_ref, w2_ref, b2_ref,
    lnfw_ref, lnfb_ref, proj_ref,               # final LN + (lane-padded) text projection
    o_ref,                                      # (B, P_PAD) f32 output
):
    # ---- 1) embed: x = prompts + positional_embedding ----
    x = (prompts_ref[...] + pos_ref[...][None, :, :]).reshape(B * S, D)

    # Causal mask built in-kernel; kept at (S, S), broadcast in the score add.
    row = jax.lax.broadcasted_iota(jnp.int32, (S, S), 0)
    col = jax.lax.broadcasted_iota(jnp.int32, (S, S), 1)
    mask2 = jnp.where(col > row, NEG_INF, 0.0).astype(jnp.float32)

    def to_heads(t):
        # (B*S, D) f32 -> (B*H, S, DH); transpose keeps the lane dim in place.
        return jnp.transpose(t.reshape(B, S, H, DH), (0, 2, 1, 3)).reshape(B * H, S, DH)

    # ---- 2) transformer blocks; weights stay VMEM-resident across layers ----
    def layer_body(l, x):
        # --- multi-head self-attention sub-block (pre-LN, as in CLIP) ---
        h = _layernorm(x, ln1w_ref[l], ln1b_ref[l])                 # (B*S, D) f32
        hb = h.astype(jnp.bfloat16)
        q = jnp.dot(hb, wq_ref[l], preferred_element_type=jnp.float32) + bq_ref[l]
        k = jnp.dot(hb, wk_ref[l], preferred_element_type=jnp.float32) + bk_ref[l]
        v = jnp.dot(hb, wv_ref[l], preferred_element_type=jnp.float32) + bv_ref[l]

        qh = to_heads(q).astype(jnp.bfloat16)                       # (B*H, S, DH)
        kh = to_heads(k).astype(jnp.bfloat16)
        vh = to_heads(v).astype(jnp.bfloat16)

        s = jnp.einsum('bqd,bkd->bqk', qh, kh,
                       preferred_element_type=jnp.float32)          # (B*H, S, S)
        s = s + mask2[None, :, :]
        p = _softmax_rows(s)
        ctx = jnp.einsum('bqk,bkd->bqd', p.astype(jnp.bfloat16), vh,
                         preferred_element_type=jnp.float32)        # (B*H, S, DH)
        attn = jnp.transpose(ctx.reshape(B, H, S, DH),
                             (0, 2, 1, 3)).reshape(B * S, D)

        attn = jnp.dot(attn.astype(jnp.bfloat16), wo_ref[l],
                       preferred_element_type=jnp.float32) + bo_ref[l]
        x = x + attn

        # --- MLP sub-block (QuickGELU, as in CLIP) ---
        h = _layernorm(x, ln2w_ref[l], ln2b_ref[l])
        h1 = jnp.dot(h.astype(jnp.bfloat16), w1_ref[l],
                     preferred_element_type=jnp.float32) + b1_ref[l]
        h1 = h1 * jax.nn.sigmoid(1.702 * h1)
        h2 = jnp.dot(h1.astype(jnp.bfloat16), w2_ref[l],
                     preferred_element_type=jnp.float32) + b2_ref[l]
        return x + h2

    # unroll=True only because LAYERS is tiny; switch to unroll=False (or a
    # grid-over-layers structure) at real depth.
    x = jax.lax.fori_loop(0, LAYERS, layer_body, x, unroll=True)

    # ---- 3) EOT-row select via one-hot matmul (exact in f32), ln_final, proj ----
    cols = jax.lax.broadcasted_iota(jnp.int32, (B, B * S), 1)
    onehot = (cols == eot_ref[...]).astype(jnp.float32)             # (B, B*S)
    sel = jnp.dot(onehot, x, preferred_element_type=jnp.float32)    # (B, D)
    sel = _layernorm(sel, lnfw_ref[...], lnfb_ref[...])
    o_ref[...] = jnp.dot(sel.astype(jnp.bfloat16), proj_ref[...],
                         preferred_element_type=jnp.float32)        # (B, P_PAD)


# ------------------------- wrapper -------------------------

@jax.jit
def text_encoder(prompts, tokenized_prompts, params):
    """Matches TextEncoder.forward semantics on (B, S, D) float32 prompts."""
    # glue: EOT position per row (== tokenized_prompts.argmax(-1) in PyTorch),
    # pre-flattened to a row index into the (B*S, D) activation matrix.
    eot = jnp.argmax(tokenized_prompts, axis=-1).astype(jnp.int32)
    eot_flat = (jnp.arange(B, dtype=jnp.int32) * S + eot).reshape(B, 1)

    vmem = pl.BlockSpec(memory_space=pltpu.MemorySpace.VMEM)

    inputs = (eot_flat, prompts, params['pos'],
              params['ln1_w'], params['ln1_b'],
              params['wq'], params['bq'], params['wk'], params['bk'],
              params['wv'], params['bv'], params['wo'], params['bo'],
              params['ln2_w'], params['ln2_b'],
              params['w1'], params['b1'], params['w2'], params['b2'],
              params['lnf_w'], params['lnf_b'], params['proj'])

    out = pl.pallas_call(
        _text_encoder_kernel,
        out_shape=jax.ShapeDtypeStruct((B, P_PAD), jnp.float32),
        in_specs=[vmem] * len(inputs),
        out_specs=vmem,
        compiler_params=pltpu.CompilerParams(vmem_limit_bytes=32 * 1024 * 1024),
    )(*inputs)
    return out[:, :P]                      # un-pad the lane dimension


# ------------------------- deterministic parameter init -------------------------

def init_params(key):
    ks = jax.random.split(key, 2 + LAYERS)

    def nrm(k, shape, scale=0.02):
        return (scale * jax.random.normal(k, shape)).astype(jnp.float32)

    lkeys = [jax.random.split(ks[2 + i], 6) for i in range(LAYERS)]
    scale = 1.0 / math.sqrt(DH)

    proj = nrm(ks[1], (D, P))
    proj_pad = jnp.zeros((D, P_PAD), jnp.float32).at[:, :P].set(proj)

    # MXU-operand weights stored in bf16 (f32 accumulation in-kernel);
    # LN params / biases stay f32 for f32 elementwise math (v5e-safe).
    return dict(
        pos=nrm(ks[0], (S, D)),
        lnf_w=jnp.ones((1, D), jnp.float32),
        lnf_b=jnp.zeros((1, D), jnp.float32),
        proj=proj_pad.astype(jnp.bfloat16),
        ln1_w=jnp.ones((LAYERS, 1, D), jnp.float32),
        ln1_b=jnp.zeros((LAYERS, 1, D), jnp.float32),
        # 1/sqrt(DH) folded into the Q projection (weight + bias) at init.
        wq=(jnp.stack([nrm(lkeys[i][0], (D, D)) for i in range(LAYERS)]) * scale
            ).astype(jnp.bfloat16),
        bq=(jnp.zeros((LAYERS, 1, D), jnp.float32) * scale),
        wk=jnp.stack([nrm(lkeys[i][1], (D, D)) for i in range(LAYERS)]
                     ).astype(jnp.bfloat16),
        bk=jnp.zeros((LAYERS, 1, D), jnp.float32),
        wv=jnp.stack([nrm(lkeys[i][2], (D, D)) for i in range(LAYERS)]
                     ).astype(jnp.bfloat16),
        bv=jnp.zeros((LAYERS, 1, D), jnp.float32),
        wo=jnp.stack([nrm(lkeys[i][3], (D, D)) for i in range(LAYERS)]
                     ).astype(jnp.bfloat16),
        bo=jnp.zeros((LAYERS, 1, D), jnp.float32),
        ln2_w=jnp.ones((LAYERS, 1, D), jnp.float32),
        ln2_b=jnp.zeros((LAYERS, 1, D), jnp.float32),
        w1=jnp.stack([nrm(lkeys[i][4], (D, FF)) for i in range(LAYERS)]
                     ).astype(jnp.bfloat16),
        b1=jnp.zeros((LAYERS, 1, FF), jnp.float32),
        w2=jnp.stack([nrm(lkeys[i][5], (FF, D)) for i in range(LAYERS)]
                     ).astype(jnp.bfloat16),
        b2=jnp.zeros((LAYERS, 1, D), jnp.float32),
    )


if __name__ == "__main__":
    key = jax.random.PRNGKey(0)
    kp, kt, kparam = jax.random.split(key, 3)

    params = init_params(kparam)
    prompts = jax.random.normal(kp, (B, S, D), dtype=jnp.float32)

    # token ids with a unique maximum (EOT id) at a distinct position per row
    tokenized = jax.random.randint(kt, (B, S), 1, 100).astype(jnp.int32)
    eot_pos = jnp.array([S - 1, S - 3], dtype=jnp.int32)
    tokenized = tokenized.at[jnp.arange(B), eot_pos].set(49407)

    out = text_encoder(prompts, tokenized, params)
    jax.block_until_ready(out)
    assert out.shape == (B, P) and out.dtype == jnp.float32
    print("KERNEL_OK")
</pallas_src>

<mosaic_0001>
module attributes {stable_mosaic.version = 11 : i64} {
  func.func @_text_encoder_kernel(%arg0: memref<2x1xi32, #tpu.memory_space<vmem>>, %arg1: memref<2x8x32xf32, #tpu.memory_space<vmem>>, %arg2: memref<8x32xf32, #tpu.memory_space<vmem>>, %arg3: memref<2x1x32xf32, #tpu.memory_space<vmem>>, %arg4: memref<2x1x32xf32, #tpu.memory_space<vmem>>, %arg5: memref<2x32x32xbf16, #tpu.memory_space<vmem>>, %arg6: memref<2x1x32xf32, #tpu.memory_space<vmem>>, %arg7: memref<2x32x32xbf16, #tpu.memory_space<vmem>>, %arg8: memref<2x1x32xf32, #tpu.memory_space<vmem>>, %arg9: memref<2x32x32xbf16, #tpu.memory_space<vmem>>, %arg10: memref<2x1x32xf32, #tpu.memory_space<vmem>>, %arg11: memref<2x32x32xbf16, #tpu.memory_space<vmem>>, %arg12: memref<2x1x32xf32, #tpu.memory_space<vmem>>, %arg13: memref<2x1x32xf32, #tpu.memory_space<vmem>>, %arg14: memref<2x1x32xf32, #tpu.memory_space<vmem>>, %arg15: memref<2x32x128xbf16, #tpu.memory_space<vmem>>, %arg16: memref<2x1x128xf32, #tpu.memory_space<vmem>>, %arg17: memref<2x128x32xbf16, #tpu.memory_space<vmem>>, %arg18: memref<2x1x32xf32, #tpu.memory_space<vmem>>, %arg19: memref<1x32xf32, #tpu.memory_space<vmem>>, %arg20: memref<1x32xf32, #tpu.memory_space<vmem>>, %arg21: memref<32x128xbf16, #tpu.memory_space<vmem>>, %arg22: memref<2x128xf32, #tpu.memory_space<vmem>>) attributes {dimension_semantics = [], scalar_prefetch = 0 : i64, scratch_operands = 0 : i64, tpu.core_type = #tpu.core_type<tc>} {
    %c0 = arith.constant 0 : index
    %c0_0 = arith.constant 0 : index
    %c0_1 = arith.constant 0 : index
    %0 = vector.load %arg1[%c0, %c0_0, %c0_1] : memref<2x8x32xf32, #tpu.memory_space<vmem>>, vector<2x8x32xf32>
    %c0_2 = arith.constant 0 : index
    %c0_3 = arith.constant 0 : index
    %1 = vector.load %arg2[%c0_2, %c0_3] : memref<8x32xf32, #tpu.memory_space<vmem>>, vector<8x32xf32>
    %2 = vector.shape_cast %1 : vector<8x32xf32> to vector<1x8x32xf32>
    %3 = vector.broadcast %2 : vector<1x8x32xf32> to vector<2x8x32xf32>
    %4 = arith.addf %0, %3 : vector<2x8x32xf32>
    %5 = vector.shape_cast %4 : vector<2x8x32xf32> to vector<16x32xf32>
    %6 = tpu.iota {dimensions = array<i32: 0>} : vector<8x8xi32>
    %7 = tpu.iota {dimensions = array<i32: 1>} : vector<8x8xi32>
    %8 = arith.cmpi sgt, %7, %6 : vector<8x8xi32>
    %cst = arith.constant -1.000000e+09 : f32
    %cst_4 = arith.constant 0.000000e+00 : f32
    %9 = vector.broadcast %cst : f32 to vector<8x8xf32>
    %10 = vector.broadcast %cst_4 : f32 to vector<8x8xf32>
    %11 = arith.select %8, %9, %10 : vector<8x8xi1>, vector<8x8xf32>
    %c0_i32 = arith.constant 0 : i32
    %12 = arith.index_cast %c0_i32 : i32 to index
    %c0_5 = arith.constant 0 : index
    %c0_6 = arith.constant 0 : index
    %13 = vector.load %arg3[%12, %c0_5, %c0_6] : memref<2x1x32xf32, #tpu.memory_space<vmem>>, vector<1x1x32xf32>
    %14 = vector.shape_cast %13 : vector<1x1x32xf32> to vector<1x32xf32>
    %15 = arith.index_cast %c0_i32 : i32 to index
    %c0_7 = arith.constant 0 : index
    %c0_8 = arith.constant 0 : index
    %16 = vector.load %arg4[%15, %c0_7, %c0_8] : memref<2x1x32xf32, #tpu.memory_space<vmem>>, vector<1x1x32xf32>
    %17 = vector.shape_cast %16 : vector<1x1x32xf32> to vector<1x32xf32>
    %cst_9 = arith.constant dense<0.000000e+00> : vector<16xf32>
    %18 = vector.multi_reduction <add>, %5, %cst_9 [1] : vector<16x32xf32> to vector<16xf32>
    %19 = vector.shape_cast %18 : vector<16xf32> to vector<16x1xf32>
    %cst_10 = arith.constant 3.200000e+01 : f32
    %20 = vector.broadcast %cst_10 : f32 to vector<16x1xf32>
    %21 = arith.divf %19, %20 : vector<16x1xf32>
    %22 = vector.broadcast %21 : vector<16x1xf32> to vector<16x32xf32>
    %23 = arith.subf %5, %22 : vector<16x32xf32>
    %24 = arith.mulf %23, %23 : vector<16x32xf32>
    %cst_11 = arith.constant dense<0.000000e+00> : vector<16xf32>
    %25 = vector.multi_reduction <add>, %24, %cst_11 [1] : vector<16x32xf32> to vector<16xf32>
    %26 = vector.shape_cast %25 : vector<16xf32> to vector<16x1xf32>
    %cst_12 = arith.constant 3.200000e+01 : f32
    %27 = vector.broadcast %cst_12 : f32 to vector<16x1xf32>
    %28 = arith.divf %26, %27 : vector<16x1xf32>
    %29 = vector.broadcast %21 : vector<16x1xf32> to vector<16x32xf32>
    %30 = arith.subf %5, %29 : vector<16x32xf32>
    %cst_13 = arith.constant 9.99999974E-6 : f32
    %31 = vector.broadcast %cst_13 : f32 to vector<16x1xf32>
    %32 = arith.addf %28, %31 : vector<16x1xf32>
    %33 = math.rsqrt %32 : vector<16x1xf32>
    %34 = vector.broadcast %33 : vector<16x1xf32> to vector<16x32xf32>
    %35 = arith.mulf %30, %34 : vector<16x32xf32>
    %36 = vector.broadcast %14 : vector<1x32xf32> to vector<16x32xf32>
    %37 = arith.mulf %35, %36 : vector<16x32xf32>
    %38 = vector.broadcast %17 : vector<1x32xf32> to vector<16x32xf32>
    %39 = arith.addf %37, %38 : vector<16x32xf32>
    %40 = arith.truncf %39 : vector<16x32xf32> to vector<16x32xbf16>
    %41 = arith.index_cast %c0_i32 : i32 to index
    %c0_14 = arith.constant 0 : index
    %c0_15 = arith.constant 0 : index
    %42 = vector.load %arg5[%41, %c0_14, %c0_15] : memref<2x32x32xbf16, #tpu.memory_space<vmem>>, vector<1x32x32xbf16>
    %43 = vector.shape_cast %42 : vector<1x32x32xbf16> to vector<32x32xbf16>
    %cst_16 = arith.constant dense<0.000000e+00> : vector<16x32xf32>
    %44 = tpu.matmul %40, %43, %cst_16 {dimension_numbers = #tpu.dot_dimension_numbers<[1], [0], [0], [1], [0, 0, 1, 1], [], []>} : vector<16x32xbf16>, vector<32x32xbf16>, vector<16x32xf32> -> vector<16x32xf32>
    %45 = arith.index_cast %c0_i32 : i32 to index
    %c0_17 = arith.constant 0 : index
    %c0_18 = arith.constant 0 : index
    %46 = vector.load %arg6[%45, %c0_17, %c0_18] : memref<2x1x32xf32, #tpu.memory_space<vmem>>, vector<1x1x32xf32>
    %47 = vector.shape_cast %46 : vector<1x1x32xf32> to vector<1x32xf32>
    %48 = vector.broadcast %47 : vector<1x32xf32> to vector<16x32xf32>
    %49 = arith.addf %44, %48 : vector<16x32xf32>
    %50 = arith.index_cast %c0_i32 : i32 to index
    %c0_19 = arith.constant 0 : index
    %c0_20 = arith.constant 0 : index
    %51 = vector.load %arg7[%50, %c0_19, %c0_20] : memref<2x32x32xbf16, #tpu.memory_space<vmem>>, vector<1x32x32xbf16>
    %52 = vector.shape_cast %51 : vector<1x32x32xbf16> to vector<32x32xbf16>
    %cst_21 = arith.constant dense<0.000000e+00> : vector<16x32xf32>
    %53 = tpu.matmul %40, %52, %cst_21 {dimension_numbers = #tpu.dot_dimension_numbers<[1], [0], [0], [1], [0, 0, 1, 1], [], []>} : vector<16x32xbf16>, vector<32x32xbf16>, vector<16x32xf32> -> vector<16x32xf32>
    %54 = arith.index_cast %c0_i32 : i32 to index
    %c0_22 = arith.constant 0 : index
    %c0_23 = arith.constant 0 : index
    %55 = vector.load %arg8[%54, %c0_22, %c0_23] : memref<2x1x32xf32, #tpu.memory_space<vmem>>, vector<1x1x32xf32>
    %56 = vector.shape_cast %55 : vector<1x1x32xf32> to vector<1x32xf32>
    %57 = vector.broadcast %56 : vector<1x32xf32> to vector<16x32xf32>
    %58 = arith.addf %53, %57 : vector<16x32xf32>
    %59 = arith.index_cast %c0_i32 : i32 to index
    %c0_24 = arith.constant 0 : index
    %c0_25 = arith.constant 0 : index
    %60 = vector.load %arg9[%59, %c0_24, %c0_25] : memref<2x32x32xbf16, #tpu.memory_space<vmem>>, vector<1x32x32xbf16>
    %61 = vector.shape_cast %60 : vector<1x32x32xbf16> to vector<32x32xbf16>
    %cst_26 = arith.constant dense<0.000000e+00> : vector<16x32xf32>
    %62 = tpu.matmul %40, %61, %cst_26 {dimension_numbers = #tpu.dot_dimension_numbers<[1], [0], [0], [1], [0, 0, 1, 1], [], []>} : vector<16x32xbf16>, vector<32x32xbf16>, vector<16x32xf32> -> vector<16x32xf32>
    %63 = arith.index_cast %c0_i32 : i32 to index
    %c0_27 = arith.constant 0 : index
    %c0_28 = arith.constant 0 : index
    %64 = vector.load %arg10[%63, %c0_27, %c0_28] : memref<2x1x32xf32, #tpu.memory_space<vmem>>, vector<1x1x32xf32>
    %65 = vector.shape_cast %64 : vector<1x1x32xf32> to vector<1x32xf32>
    %66 = vector.broadcast %65 : vector<1x32xf32> to vector<16x32xf32>
    %67 = arith.addf %62, %66 : vector<16x32xf32>
    %68 = vector.shape_cast %49 : vector<16x32xf32> to vector<2x8x4x8xf32>
    %69 = tpu.transpose %68, [0, 2, 1, 3] : vector<2x8x4x8xf32> -> vector<2x4x8x8xf32>
    %70 = vector.shape_cast %69 : vector<2x4x8x8xf32> to vector<8x8x8xf32>
    %71 = arith.truncf %70 : vector<8x8x8xf32> to vector<8x8x8xbf16>
    %72 = vector.shape_cast %58 : vector<16x32xf32> to vector<2x8x4x8xf32>
    %73 = tpu.transpose %72, [0, 2, 1, 3] : vector<2x8x4x8xf32> -> vector<2x4x8x8xf32>
    %74 = vector.shape_cast %73 : vector<2x4x8x8xf32> to vector<8x8x8xf32>
    %75 = arith.truncf %74 : vector<8x8x8xf32> to vector<8x8x8xbf16>
    %76 = vector.shape_cast %67 : vector<16x32xf32> to vector<2x8x4x8xf32>
    %77 = tpu.transpose %76, [0, 2, 1, 3] : vector<2x8x4x8xf32> -> vector<2x4x8x8xf32>
    %78 = vector.shape_cast %77 : vector<2x4x8x8xf32> to vector<8x8x8xf32>
    %79 = arith.truncf %78 : vector<8x8x8xf32> to vector<8x8x8xbf16>
    "tpu.trace_start"() <{level = 10 : i32, message = "bqd,bkd->bqk"}> : () -> ()
    %cst_29 = arith.constant dense<0.000000e+00> : vector<8x8x8xf32>
    %80 = tpu.matmul %71, %75, %cst_29 {dimension_numbers = #tpu.dot_dimension_numbers<[2], [2], [1], [1], [0, 0, 0, 1, 1, 1], [0], [0]>} : vector<8x8x8xbf16>, vector<8x8x8xbf16>, vector<8x8x8xf32> -> vector<8x8x8xf32>
    "tpu.trace_stop"() : () -> ()
    %81 = vector.shape_cast %11 : vector<8x8xf32> to vector<1x8x8xf32>
    %82 = vector.broadcast %81 : vector<1x8x8xf32> to vector<8x8x8xf32>
    %83 = arith.addf %80, %82 : vector<8x8x8xf32>
    %cst_30 = arith.constant dense<0xFF800000> : vector<8x8xf32>
    %84 = vector.multi_reduction <maximumf>, %83, %cst_30 [2] : vector<8x8x8xf32> to vector<8x8xf32>
    %85 = vector.shape_cast %84 : vector<8x8xf32> to vector<8x8x1xf32>
    %86 = vector.broadcast %85 : vector<8x8x1xf32> to vector<8x8x8xf32>
    %87 = arith.subf %83, %86 : vector<8x8x8xf32>
    %88 = math.exp %87 : vector<8x8x8xf32>
    %cst_31 = arith.constant dense<0.000000e+00> : vector<8x8xf32>
    %89 = vector.multi_reduction <add>, %88, %cst_31 [2] : vector<8x8x8xf32> to vector<8x8xf32>
    %90 = vector.shape_cast %89 : vector<8x8xf32> to vector<8x8x1xf32>
    %91 = tpu.reciprocal %90 {approx = true} : vector<8x8x1xf32> -> vector<8x8x1xf32>
    %92 = vector.broadcast %91 : vector<8x8x1xf32> to vector<8x8x8xf32>
    %93 = arith.mulf %88, %92 : vector<8x8x8xf32>
    %94 = arith.truncf %93 : vector<8x8x8xf32> to vector<8x8x8xbf16>
    "tpu.trace_start"() <{level = 10 : i32, message = "bqk,bkd->bqd"}> : () -> ()
    %cst_32 = arith.constant dense<0.000000e+00> : vector<8x8x8xf32>
    %95 = tpu.matmul %94, %79, %cst_32 {dimension_numbers = #tpu.dot_dimension_numbers<[2], [1], [1], [2], [0, 0, 0, 1, 1, 2], [0], [0]>} : vector<8x8x8xbf16>, vector<8x8x8xbf16>, vector<8x8x8xf32> -> vector<8x8x8xf32>
    "tpu.trace_stop"() : () -> ()
    %96 = vector.shape_cast %95 : vector<8x8x8xf32> to vector<2x4x8x8xf32>
    %97 = tpu.transpose %96, [0, 2, 1, 3] : vector<2x4x8x8xf32> -> vector<2x8x4x8xf32>
    %98 = vector.shape_cast %97 : vector<2x8x4x8xf32> to vector<16x32xf32>
    %99 = arith.truncf %98 : vector<16x32xf32> to vector<16x32xbf16>
    %100 = arith.index_cast %c0_i32 : i32 to index
    %c0_33 = arith.constant 0 : index
    %c0_34 = arith.constant 0 : index
    %101 = vector.load %arg11[%100, %c0_33, %c0_34] : memref<2x32x32xbf16, #tpu.memory_space<vmem>>, vector<1x32x32xbf16>
    %102 = vector.shape_cast %101 : vector<1x32x32xbf16> to vector<32x32xbf16>
    %cst_35 = arith.constant dense<0.000000e+00> : vector<16x32xf32>
    %103 = tpu.matmul %99, %102, %cst_35 {dimension_numbers = #tpu.dot_dimension_numbers<[1], [0], [0], [1], [0, 0, 1, 1], [], []>} : vector<16x32xbf16>, vector<32x32xbf16>, vector<16x32xf32> -> vector<16x32xf32>
    %104 = arith.index_cast %c0_i32 : i32 to index
    %c0_36 = arith.constant 0 : index
    %c0_37 = arith.constant 0 : index
    %105 = vector.load %arg12[%104, %c0_36, %c0_37] : memref<2x1x32xf32, #tpu.memory_space<vmem>>, vector<1x1x32xf32>
    %106 = vector.shape_cast %105 : vector<1x1x32xf32> to vector<1x32xf32>
    %107 = vector.broadcast %106 : vector<1x32xf32> to vector<16x32xf32>
    %108 = arith.addf %103, %107 : vector<16x32xf32>
    %109 = arith.addf %5, %108 : vector<16x32xf32>
    %110 = arith.index_cast %c0_i32 : i32 to index
    %c0_38 = arith.constant 0 : index
    %c0_39 = arith.constant 0 : index
    %111 = vector.load %arg13[%110, %c0_38, %c0_39] : memref<2x1x32xf32, #tpu.memory_space<vmem>>, vector<1x1x32xf32>
    %112 = vector.shape_cast %111 : vector<1x1x32xf32> to vector<1x32xf32>
    %113 = arith.index_cast %c0_i32 : i32 to index
    %c0_40 = arith.constant 0 : index
    %c0_41 = arith.constant 0 : index
    %114 = vector.load %arg14[%113, %c0_40, %c0_41] : memref<2x1x32xf32, #tpu.memory_space<vmem>>, vector<1x1x32xf32>
    %115 = vector.shape_cast %114 : vector<1x1x32xf32> to vector<1x32xf32>
    %cst_42 = arith.constant dense<0.000000e+00> : vector<16xf32>
    %116 = vector.multi_reduction <add>, %109, %cst_42 [1] : vector<16x32xf32> to vector<16xf32>
    %117 = vector.shape_cast %116 : vector<16xf32> to vector<16x1xf32>
    %cst_43 = arith.constant 3.200000e+01 : f32
    %118 = vector.broadcast %cst_43 : f32 to vector<16x1xf32>
    %119 = arith.divf %117, %118 : vector<16x1xf32>
    %120 = vector.broadcast %119 : vector<16x1xf32> to vector<16x32xf32>
    %121 = arith.subf %109, %120 : vector<16x32xf32>
    %122 = arith.mulf %121, %121 : vector<16x32xf32>
    %cst_44 = arith.constant dense<0.000000e+00> : vector<16xf32>
    %123 = vector.multi_reduction <add>, %122, %cst_44 [1] : vector<16x32xf32> to vector<16xf32>
    %124 = vector.shape_cast %123 : vector<16xf32> to vector<16x1xf32>
    %cst_45 = arith.constant 3.200000e+01 : f32
    %125 = vector.broadcast %cst_45 : f32 to vector<16x1xf32>
    %126 = arith.divf %124, %125 : vector<16x1xf32>
    %127 = vector.broadcast %119 : vector<16x1xf32> to vector<16x32xf32>
    %128 = arith.subf %109, %127 : vector<16x32xf32>
    %cst_46 = arith.constant 9.99999974E-6 : f32
    %129 = vector.broadcast %cst_46 : f32 to vector<16x1xf32>
    %130 = arith.addf %126, %129 : vector<16x1xf32>
    %131 = math.rsqrt %130 : vector<16x1xf32>
    %132 = vector.broadcast %131 : vector<16x1xf32> to vector<16x32xf32>
    %133 = arith.mulf %128, %132 : vector<16x32xf32>
    %134 = vector.broadcast %112 : vector<1x32xf32> to vector<16x32xf32>
    %135 = arith.mulf %133, %134 : vector<16x32xf32>
    %136 = vector.broadcast %115 : vector<1x32xf32> to vector<16x32xf32>
    %137 = arith.addf %135, %136 : vector<16x32xf32>
    %138 = arith.truncf %137 : vector<16x32xf32> to vector<16x32xbf16>
    %139 = arith.index_cast %c0_i32 : i32 to index
    %c0_47 = arith.constant 0 : index
    %c0_48 = arith.constant 0 : index
    %140 = vector.load %arg15[%139, %c0_47, %c0_48] : memref<2x32x128xbf16, #tpu.memory_space<vmem>>, vector<1x32x128xbf16>
    %141 = vector.shape_cast %140 : vector<1x32x128xbf16> to vector<32x128xbf16>
    %cst_49 = arith.constant dense<0.000000e+00> : vector<16x128xf32>
    %142 = tpu.matmul %138, %141, %cst_49 {dimension_numbers = #tpu.dot_dimension_numbers<[1], [0], [0], [1], [0, 0, 1, 1], [], []>} : vector<16x32xbf16>, vector<32x128xbf16>, vector<16x128xf32> -> vector<16x128xf32>
    %143 = arith.index_cast %c0_i32 : i32 to index
    %c0_50 = arith.constant 0 : index
    %c0_51 = arith.constant 0 : index
    %144 = vector.load %arg16[%143, %c0_50, %c0_51] : memref<2x1x128xf32, #tpu.memory_space<vmem>>, vector<1x1x128xf32>
    %145 = vector.shape_cast %144 : vector<1x1x128xf32> to vector<1x128xf32>
    %146 = vector.broadcast %145 : vector<1x128xf32> to vector<16x128xf32>
    %147 = arith.addf %142, %146 : vector<16x128xf32>
    %cst_52 = arith.constant 1.702000e+00 : f32
    %148 = vector.broadcast %cst_52 : f32 to vector<16x128xf32>
    %149 = arith.mulf %148, %147 : vector<16x128xf32>
    %150 = arith.negf %149 : vector<16x128xf32>
    %151 = math.exp %150 : vector<16x128xf32>
    %cst_53 = arith.constant 1.000000e+00 : f32
    %152 = vector.broadcast %cst_53 : f32 to vector<16x128xf32>
    %153 = arith.addf %152, %151 : vector<16x128xf32>
    %154 = arith.divf %152, %153 : vector<16x128xf32>
    %155 = arith.mulf %147, %154 : vector<16x128xf32>
    %156 = arith.truncf %155 : vector<16x128xf32> to vector<16x128xbf16>
    %157 = arith.index_cast %c0_i32 : i32 to index
    %c0_54 = arith.constant 0 : index
    %c0_55 = arith.constant 0 : index
    %158 = vector.load %arg17[%157, %c0_54, %c0_55] : memref<2x128x32xbf16, #tpu.memory_space<vmem>>, vector<1x128x32xbf16>
    %159 = vector.shape_cast %158 : vector<1x128x32xbf16> to vector<128x32xbf16>
    %cst_56 = arith.constant dense<0.000000e+00> : vector<16x32xf32>
    %160 = tpu.matmul %156, %159, %cst_56 {dimension_numbers = #tpu.dot_dimension_numbers<[1], [0], [0], [1], [0, 0, 1, 1], [], []>} : vector<16x128xbf16>, vector<128x32xbf16>, vector<16x32xf32> -> vector<16x32xf32>
    %161 = arith.index_cast %c0_i32 : i32 to index
    %c0_57 = arith.constant 0 : index
    %c0_58 = arith.constant 0 : index
    %162 = vector.load %arg18[%161, %c0_57, %c0_58] : memref<2x1x32xf32, #tpu.memory_space<vmem>>, vector<1x1x32xf32>
    %163 = vector.shape_cast %162 : vector<1x1x32xf32> to vector<1x32xf32>
    %164 = vector.broadcast %163 : vector<1x32xf32> to vector<16x32xf32>
    %165 = arith.addf %160, %164 : vector<16x32xf32>
    %166 = arith.addf %109, %165 : vector<16x32xf32>
    %c1_i32 = arith.constant 1 : i32
    %167 = arith.index_cast %c1_i32 : i32 to index
    %c0_59 = arith.constant 0 : index
    %c0_60 = arith.constant 0 : index
    %168 = vector.load %arg3[%167, %c0_59, %c0_60] : memref<2x1x32xf32, #tpu.memory_space<vmem>>, vector<1x1x32xf32>
    %169 = vector.shape_cast %168 : vector<1x1x32xf32> to vector<1x32xf32>
    %170 = arith.index_cast %c1_i32 : i32 to index
    %c0_61 = arith.constant 0 : index
    %c0_62 = arith.constant 0 : index
    %171 = vector.load %arg4[%170, %c0_61, %c0_62] : memref<2x1x32xf32, #tpu.memory_space<vmem>>, vector<1x1x32xf32>
    %172 = vector.shape_cast %171 : vector<1x1x32xf32> to vector<1x32xf32>
    %cst_63 = arith.constant dense<0.000000e+00> : vector<16xf32>
    %173 = vector.multi_reduction <add>, %166, %cst_63 [1] : vector<16x32xf32> to vector<16xf32>
    %174 = vector.shape_cast %173 : vector<16xf32> to vector<16x1xf32>
    %cst_64 = arith.constant 3.200000e+01 : f32
    %175 = vector.broadcast %cst_64 : f32 to vector<16x1xf32>
    %176 = arith.divf %174, %175 : vector<16x1xf32>
    %177 = vector.broadcast %176 : vector<16x1xf32> to vector<16x32xf32>
    %178 = arith.subf %166, %177 : vector<16x32xf32>
    %179 = arith.mulf %178, %178 : vector<16x32xf32>
    %cst_65 = arith.constant dense<0.000000e+00> : vector<16xf32>
    %180 = vector.multi_reduction <add>, %179, %cst_65 [1] : vector<16x32xf32> to vector<16xf32>
    %181 = vector.shape_cast %180 : vector<16xf32> to vector<16x1xf32>
    %cst_66 = arith.constant 3.200000e+01 : f32
    %182 = vector.broadcast %cst_66 : f32 to vector<16x1xf32>
    %183 = arith.divf %181, %182 : vector<16x1xf32>
    %184 = vector.broadcast %176 : vector<16x1xf32> to vector<16x32xf32>
    %185 = arith.subf %166, %184 : vector<16x32xf32>
    %cst_67 = arith.constant 9.99999974E-6 : f32
    %186 = vector.broadcast %cst_67 : f32 to vector<16x1xf32>
    %187 = arith.addf %183, %186 : vector<16x1xf32>
    %188 = math.rsqrt %187 : vector<16x1xf32>
    %189 = vector.broadcast %188 : vector<16x1xf32> to vector<16x32xf32>
    %190 = arith.mulf %185, %189 : vector<16x32xf32>
    %191 = vector.broadcast %169 : vector<1x32xf32> to vector<16x32xf32>
    %192 = arith.mulf %190, %191 : vector<16x32xf32>
    %193 = vector.broadcast %172 : vector<1x32xf32> to vector<16x32xf32>
    %194 = arith.addf %192, %193 : vector<16x32xf32>
    %195 = arith.truncf %194 : vector<16x32xf32> to vector<16x32xbf16>
    %196 = arith.index_cast %c1_i32 : i32 to index
    %c0_68 = arith.constant 0 : index
    %c0_69 = arith.constant 0 : index
    %197 = vector.load %arg5[%196, %c0_68, %c0_69] : memref<2x32x32xbf16, #tpu.memory_space<vmem>>, vector<1x32x32xbf16>
    %198 = vector.shape_cast %197 : vector<1x32x32xbf16> to vector<32x32xbf16>
    %cst_70 = arith.constant dense<0.000000e+00> : vector<16x32xf32>
    %199 = tpu.matmul %195, %198, %cst_70 {dimension_numbers = #tpu.dot_dimension_numbers<[1], [0], [0], [1], [0, 0, 1, 1], [], []>} : vector<16x32xbf16>, vector<32x32xbf16>, vector<16x32xf32> -> vector<16x32xf32>
    %200 = arith.index_cast %c1_i32 : i32 to index
    %c0_71 = arith.constant 0 : index
    %c0_72 = arith.constant 0 : index
    %201 = vector.load %arg6[%200, %c0_71, %c0_72] : memref<2x1x32xf32, #tpu.memory_space<vmem>>, vector<1x1x32xf32>
    %202 = vector.shape_cast %201 : vector<1x1x32xf32> to vector<1x32xf32>
    %203 = vector.broadcast %202 : vector<1x32xf32> to vector<16x32xf32>
    %204 = arith.addf %199, %203 : vector<16x32xf32>
    %205 = arith.index_cast %c1_i32 : i32 to index
    %c0_73 = arith.constant 0 : index
    %c0_74 = arith.constant 0 : index
    %206 = vector.load %arg7[%205, %c0_73, %c0_74] : memref<2x32x32xbf16, #tpu.memory_space<vmem>>, vector<1x32x32xbf16>
    %207 = vector.shape_cast %206 : vector<1x32x32xbf16> to vector<32x32xbf16>
    %cst_75 = arith.constant dense<0.000000e+00> : vector<16x32xf32>
    %208 = tpu.matmul %195, %207, %cst_75 {dimension_numbers = #tpu.dot_dimension_numbers<[1], [0], [0], [1], [0, 0, 1, 1], [], []>} : vector<16x32xbf16>, vector<32x32xbf16>, vector<16x32xf32> -> vector<16x32xf32>
    %209 = arith.index_cast %c1_i32 : i32 to index
    %c0_76 = arith.constant 0 : index
    %c0_77 = arith.constant 0 : index
    %210 = vector.load %arg8[%209, %c0_76, %c0_77] : memref<2x1x32xf32, #tpu.memory_space<vmem>>, vector<1x1x32xf32>
    %211 = vector.shape_cast %210 : vector<1x1x32xf32> to vector<1x32xf32>
    %212 = vector.broadcast %211 : vector<1x32xf32> to vector<16x32xf32>
    %213 = arith.addf %208, %212 : vector<16x32xf32>
    %214 = arith.index_cast %c1_i32 : i32 to index
    %c0_78 = arith.constant 0 : index
    %c0_79 = arith.constant 0 : index
    %215 = vector.load %arg9[%214, %c0_78, %c0_79] : memref<2x32x32xbf16, #tpu.memory_space<vmem>>, vector<1x32x32xbf16>
    %216 = vector.shape_cast %215 : vector<1x32x32xbf16> to vector<32x32xbf16>
    %cst_80 = arith.constant dense<0.000000e+00> : vector<16x32xf32>
    %217 = tpu.matmul %195, %216, %cst_80 {dimension_numbers = #tpu.dot_dimension_numbers<[1], [0], [0], [1], [0, 0, 1, 1], [], []>} : vector<16x32xbf16>, vector<32x32xbf16>, vector<16x32xf32> -> vector<16x32xf32>
    %218 = arith.index_cast %c1_i32 : i32 to index
    %c0_81 = arith.constant 0 : index
    %c0_82 = arith.constant 0 : index
    %219 = vector.load %arg10[%218, %c0_81, %c0_82] : memref<2x1x32xf32, #tpu.memory_space<vmem>>, vector<1x1x32xf32>
    %220 = vector.shape_cast %219 : vector<1x1x32xf32> to vector<1x32xf32>
    %221 = vector.broadcast %220 : vector<1x32xf32> to vector<16x32xf32>
    %222 = arith.addf %217, %221 : vector<16x32xf32>
    %223 = vector.shape_cast %204 : vector<16x32xf32> to vector<2x8x4x8xf32>
    %224 = tpu.transpose %223, [0, 2, 1, 3] : vector<2x8x4x8xf32> -> vector<2x4x8x8xf32>
    %225 = vector.shape_cast %224 : vector<2x4x8x8xf32> to vector<8x8x8xf32>
    %226 = arith.truncf %225 : vector<8x8x8xf32> to vector<8x8x8xbf16>
    %227 = vector.shape_cast %213 : vector<16x32xf32> to vector<2x8x4x8xf32>
    %228 = tpu.transpose %227, [0, 2, 1, 3] : vector<2x8x4x8xf32> -> vector<2x4x8x8xf32>
    %229 = vector.shape_cast %228 : vector<2x4x8x8xf32> to vector<8x8x8xf32>
    %230 = arith.truncf %229 : vector<8x8x8xf32> to vector<8x8x8xbf16>
    %231 = vector.shape_cast %222 : vector<16x32xf32> to vector<2x8x4x8xf32>
    %232 = tpu.transpose %231, [0, 2, 1, 3] : vector<2x8x4x8xf32> -> vector<2x4x8x8xf32>
    %233 = vector.shape_cast %232 : vector<2x4x8x8xf32> to vector<8x8x8xf32>
    %234 = arith.truncf %233 : vector<8x8x8xf32> to vector<8x8x8xbf16>
    "tpu.trace_start"() <{level = 10 : i32, message = "bqd,bkd->bqk"}> : () -> ()
    %cst_83 = arith.constant dense<0.000000e+00> : vector<8x8x8xf32>
    %235 = tpu.matmul %226, %230, %cst_83 {dimension_numbers = #tpu.dot_dimension_numbers<[2], [2], [1], [1], [0, 0, 0, 1, 1, 1], [0], [0]>} : vector<8x8x8xbf16>, vector<8x8x8xbf16>, vector<8x8x8xf32> -> vector<8x8x8xf32>
    "tpu.trace_stop"() : () -> ()
    %236 = vector.shape_cast %11 : vector<8x8xf32> to vector<1x8x8xf32>
    %237 = vector.broadcast %236 : vector<1x8x8xf32> to vector<8x8x8xf32>
    %238 = arith.addf %235, %237 : vector<8x8x8xf32>
    %cst_84 = arith.constant dense<0xFF800000> : vector<8x8xf32>
    %239 = vector.multi_reduction <maximumf>, %238, %cst_84 [2] : vector<8x8x8xf32> to vector<8x8xf32>
    %240 = vector.shape_cast %239 : vector<8x8xf32> to vector<8x8x1xf32>
    %241 = vector.broadcast %240 : vector<8x8x1xf32> to vector<8x8x8xf32>
    %242 = arith.subf %238, %241 : vector<8x8x8xf32>
    %243 = math.exp %242 : vector<8x8x8xf32>
    %cst_85 = arith.constant dense<0.000000e+00> : vector<8x8xf32>
    %244 = vector.multi_reduction <add>, %243, %cst_85 [2] : vector<8x8x8xf32> to vector<8x8xf32>
    %245 = vector.shape_cast %244 : vector<8x8xf32> to vector<8x8x1xf32>
    %246 = tpu.reciprocal %245 {approx = true} : vector<8x8x1xf32> -> vector<8x8x1xf32>
    %247 = vector.broadcast %246 : vector<8x8x1xf32> to vector<8x8x8xf32>
    %248 = arith.mulf %243, %247 : vector<8x8x8xf32>
    %249 = arith.truncf %248 : vector<8x8x8xf32> to vector<8x8x8xbf16>
    "tpu.trace_start"() <{level = 10 : i32, message = "bqk,bkd->bqd"}> : () -> ()
    %cst_86 = arith.constant dense<0.000000e+00> : vector<8x8x8xf32>
    %250 = tpu.matmul %249, %234, %cst_86 {dimension_numbers = #tpu.dot_dimension_numbers<[2], [1], [1], [2], [0, 0, 0, 1, 1, 2], [0], [0]>} : vector<8x8x8xbf16>, vector<8x8x8xbf16>, vector<8x8x8xf32> -> vector<8x8x8xf32>
    "tpu.trace_stop"() : () -> ()
    %251 = vector.shape_cast %250 : vector<8x8x8xf32> to vector<2x4x8x8xf32>
    %252 = tpu.transpose %251, [0, 2, 1, 3] : vector<2x4x8x8xf32> -> vector<2x8x4x8xf32>
    %253 = vector.shape_cast %252 : vector<2x8x4x8xf32> to vector<16x32xf32>
    %254 = arith.truncf %253 : vector<16x32xf32> to vector<16x32xbf16>
    %255 = arith.index_cast %c1_i32 : i32 to index
    %c0_87 = arith.constant 0 : index
    %c0_88 = arith.constant 0 : index
    %256 = vector.load %arg11[%255, %c0_87, %c0_88] : memref<2x32x32xbf16, #tpu.memory_space<vmem>>, vector<1x32x32xbf16>
    %257 = vector.shape_cast %256 : vector<1x32x32xbf16> to vector<32x32xbf16>
    %cst_89 = arith.constant dense<0.000000e+00> : vector<16x32xf32>
    %258 = tpu.matmul %254, %257, %cst_89 {dimension_numbers = #tpu.dot_dimension_numbers<[1], [0], [0], [1], [0, 0, 1, 1], [], []>} : vector<16x32xbf16>, vector<32x32xbf16>, vector<16x32xf32> -> vector<16x32xf32>
    %259 = arith.index_cast %c1_i32 : i32 to index
    %c0_90 = arith.constant 0 : index
    %c0_91 = arith.constant 0 : index
    %260 = vector.load %arg12[%259, %c0_90, %c0_91] : memref<2x1x32xf32, #tpu.memory_space<vmem>>, vector<1x1x32xf32>
    %261 = vector.shape_cast %260 : vector<1x1x32xf32> to vector<1x32xf32>
    %262 = vector.broadcast %261 : vector<1x32xf32> to vector<16x32xf32>
    %263 = arith.addf %258, %262 : vector<16x32xf32>
    %264 = arith.addf %166, %263 : vector<16x32xf32>
    %265 = arith.index_cast %c1_i32 : i32 to index
    %c0_92 = arith.constant 0 : index
    %c0_93 = arith.constant 0 : index
    %266 = vector.load %arg13[%265, %c0_92, %c0_93] : memref<2x1x32xf32, #tpu.memory_space<vmem>>, vector<1x1x32xf32>
    %267 = vector.shape_cast %266 : vector<1x1x32xf32> to vector<1x32xf32>
    %268 = arith.index_cast %c1_i32 : i32 to index
    %c0_94 = arith.constant 0 : index
    %c0_95 = arith.constant 0 : index
    %269 = vector.load %arg14[%268, %c0_94, %c0_95] : memref<2x1x32xf32, #tpu.memory_space<vmem>>, vector<1x1x32xf32>
    %270 = vector.shape_cast %269 : vector<1x1x32xf32> to vector<1x32xf32>
    %cst_96 = arith.constant dense<0.000000e+00> : vector<16xf32>
    %271 = vector.multi_reduction <add>, %264, %cst_96 [1] : vector<16x32xf32> to vector<16xf32>
    %272 = vector.shape_cast %271 : vector<16xf32> to vector<16x1xf32>
    %cst_97 = arith.constant 3.200000e+01 : f32
    %273 = vector.broadcast %cst_97 : f32 to vector<16x1xf32>
    %274 = arith.divf %272, %273 : vector<16x1xf32>
    %275 = vector.broadcast %274 : vector<16x1xf32> to vector<16x32xf32>
    %276 = arith.subf %264, %275 : vector<16x32xf32>
    %277 = arith.mulf %276, %276 : vector<16x32xf32>
    %cst_98 = arith.constant dense<0.000000e+00> : vector<16xf32>
    %278 = vector.multi_reduction <add>, %277, %cst_98 [1] : vector<16x32xf32> to vector<16xf32>
    %279 = vector.shape_cast %278 : vector<16xf32> to vector<16x1xf32>
    %cst_99 = arith.constant 3.200000e+01 : f32
    %280 = vector.broadcast %cst_99 : f32 to vector<16x1xf32>
    %281 = arith.divf %279, %280 : vector<16x1xf32>
    %282 = vector.broadcast %274 : vector<16x1xf32> to vector<16x32xf32>
    %283 = arith.subf %264, %282 : vector<16x32xf32>
    %cst_100 = arith.constant 9.99999974E-6 : f32
    %284 = vector.broadcast %cst_100 : f32 to vector<16x1xf32>
    %285 = arith.addf %281, %284 : vector<16x1xf32>
    %286 = math.rsqrt %285 : vector<16x1xf32>
    %287 = vector.broadcast %286 : vector<16x1xf32> to vector<16x32xf32>
    %288 = arith.mulf %283, %287 : vector<16x32xf32>
    %289 = vector.broadcast %267 : vector<1x32xf32> to vector<16x32xf32>
    %290 = arith.mulf %288, %289 : vector<16x32xf32>
    %291 = vector.broadcast %270 : vector<1x32xf32> to vector<16x32xf32>
    %292 = arith.addf %290, %291 : vector<16x32xf32>
    %293 = arith.truncf %292 : vector<16x32xf32> to vector<16x32xbf16>
    %294 = arith.index_cast %c1_i32 : i32 to index
    %c0_101 = arith.constant 0 : index
    %c0_102 = arith.constant 0 : index
    %295 = vector.load %arg15[%294, %c0_101, %c0_102] : memref<2x32x128xbf16, #tpu.memory_space<vmem>>, vector<1x32x128xbf16>
    %296 = vector.shape_cast %295 : vector<1x32x128xbf16> to vector<32x128xbf16>
    %cst_103 = arith.constant dense<0.000000e+00> : vector<16x128xf32>
    %297 = tpu.matmul %293, %296, %cst_103 {dimension_numbers = #tpu.dot_dimension_numbers<[1], [0], [0], [1], [0, 0, 1, 1], [], []>} : vector<16x32xbf16>, vector<32x128xbf16>, vector<16x128xf32> -> vector<16x128xf32>
    %298 = arith.index_cast %c1_i32 : i32 to index
    %c0_104 = arith.constant 0 : index
    %c0_105 = arith.constant 0 : index
    %299 = vector.load %arg16[%298, %c0_104, %c0_105] : memref<2x1x128xf32, #tpu.memory_space<vmem>>, vector<1x1x128xf32>
    %300 = vector.shape_cast %299 : vector<1x1x128xf32> to vector<1x128xf32>
    %301 = vector.broadcast %300 : vector<1x128xf32> to vector<16x128xf32>
    %302 = arith.addf %297, %301 : vector<16x128xf32>
    %cst_106 = arith.constant 1.702000e+00 : f32
    %303 = vector.broadcast %cst_106 : f32 to vector<16x128xf32>
    %304 = arith.mulf %303, %302 : vector<16x128xf32>
    %305 = arith.negf %304 : vector<16x128xf32>
    %306 = math.exp %305 : vector<16x128xf32>
    %cst_107 = arith.constant 1.000000e+00 : f32
    %307 = vector.broadcast %cst_107 : f32 to vector<16x128xf32>
    %308 = arith.addf %307, %306 : vector<16x128xf32>
    %309 = arith.divf %307, %308 : vector<16x128xf32>
    %310 = arith.mulf %302, %309 : vector<16x128xf32>
    %311 = arith.truncf %310 : vector<16x128xf32> to vector<16x128xbf16>
    %312 = arith.index_cast %c1_i32 : i32 to index
    %c0_108 = arith.constant 0 : index
    %c0_109 = arith.constant 0 : index
    %313 = vector.load %arg17[%312, %c0_108, %c0_109] : memref<2x128x32xbf16, #tpu.memory_space<vmem>>, vector<1x128x32xbf16>
    %314 = vector.shape_cast %313 : vector<1x128x32xbf16> to vector<128x32xbf16>
    %cst_110 = arith.constant dense<0.000000e+00> : vector<16x32xf32>
    %315 = tpu.matmul %311, %314, %cst_110 {dimension_numbers = #tpu.dot_dimension_numbers<[1], [0], [0], [1], [0, 0, 1, 1], [], []>} : vector<16x128xbf16>, vector<128x32xbf16>, vector<16x32xf32> -> vector<16x32xf32>
    %316 = arith.index_cast %c1_i32 : i32 to index
    %c0_111 = arith.constant 0 : index
    %c0_112 = arith.constant 0 : index
    %317 = vector.load %arg18[%316, %c0_111, %c0_112] : memref<2x1x32xf32, #tpu.memory_space<vmem>>, vector<1x1x32xf32>
    %318 = vector.shape_cast %317 : vector<1x1x32xf32> to vector<1x32xf32>
    %319 = vector.broadcast %318 : vector<1x32xf32> to vector<16x32xf32>
    %320 = arith.addf %315, %319 : vector<16x32xf32>
    %321 = arith.addf %264, %320 : vector<16x32xf32>
    %c2_i32 = arith.constant 2 : i32
    %322 = tpu.iota {dimensions = array<i32: 1>} : vector<2x16xi32>
    %c0_113 = arith.constant 0 : index
    %c0_114 = arith.constant 0 : index
    %323 = vector.load %arg0[%c0_113, %c0_114] : memref<2x1xi32, #tpu.memory_space<vmem>>, vector<2x1xi32>
    %324 = vector.broadcast %323 : vector<2x1xi32> to vector<2x16xi32>
    %325 = arith.cmpi eq, %322, %324 : vector<2x16xi32>
    %326 = arith.extui %325 : vector<2x16xi1> to vector<2x16xi32>
    %327 = arith.sitofp %326 : vector<2x16xi32> to vector<2x16xf32>
    %cst_115 = arith.constant dense<0.000000e+00> : vector<2x32xf32>
    %328 = tpu.matmul %327, %321, %cst_115 {dimension_numbers = #tpu.dot_dimension_numbers<[1], [0], [0], [1], [0, 0, 1, 1], [], []>} : vector<2x16xf32>, vector<16x32xf32>, vector<2x32xf32> -> vector<2x32xf32>
    %c0_116 = arith.constant 0 : index
    %c0_117 = arith.constant 0 : index
    %329 = vector.load %arg19[%c0_116, %c0_117] : memref<1x32xf32, #tpu.memory_space<vmem>>, vector<1x32xf32>
    %c0_118 = arith.constant 0 : index
    %c0_119 = arith.constant 0 : index
    %330 = vector.load %arg20[%c0_118, %c0_119] : memref<1x32xf32, #tpu.memory_space<vmem>>, vector<1x32xf32>
    %cst_120 = arith.constant dense<0.000000e+00> : vector<2xf32>
    %331 = vector.multi_reduction <add>, %328, %cst_120 [1] : vector<2x32xf32> to vector<2xf32>
    %332 = vector.shape_cast %331 : vector<2xf32> to vector<2x1xf32>
    %cst_121 = arith.constant 3.200000e+01 : f32
    %333 = vector.broadcast %cst_121 : f32 to vector<2x1xf32>
    %334 = arith.divf %332, %333 : vector<2x1xf32>
    %335 = vector.broadcast %334 : vector<2x1xf32> to vector<2x32xf32>
    %336 = arith.subf %328, %335 : vector<2x32xf32>
    %337 = arith.mulf %336, %336 : vector<2x32xf32>
    %cst_122 = arith.constant dense<0.000000e+00> : vector<2xf32>
    %338 = vector.multi_reduction <add>, %337, %cst_122 [1] : vector<2x32xf32> to vector<2xf32>
    %339 = vector.shape_cast %338 : vector<2xf32> to vector<2x1xf32>
    %cst_123 = arith.constant 3.200000e+01 : f32
    %340 = vector.broadcast %cst_123 : f32 to vector<2x1xf32>
    %341 = arith.divf %339, %340 : vector<2x1xf32>
    %342 = vector.broadcast %334 : vector<2x1xf32> to vector<2x32xf32>
    %343 = arith.subf %328, %342 : vector<2x32xf32>
    %cst_124 = arith.constant 9.99999974E-6 : f32
    %344 = vector.broadcast %cst_124 : f32 to vector<2x1xf32>
    %345 = arith.addf %341, %344 : vector<2x1xf32>
    %346 = math.rsqrt %345 : vector<2x1xf32>
    %347 = vector.broadcast %346 : vector<2x1xf32> to vector<2x32xf32>
    %348 = arith.mulf %343, %347 : vector<2x32xf32>
    %349 = vector.broadcast %329 : vector<1x32xf32> to vector<2x32xf32>
    %350 = arith.mulf %348, %349 : vector<2x32xf32>
    %351 = vector.broadcast %330 : vector<1x32xf32> to vector<2x32xf32>
    %352 = arith.addf %350, %351 : vector<2x32xf32>
    %353 = arith.truncf %352 : vector<2x32xf32> to vector<2x32xbf16>
    %c0_125 = arith.constant 0 : index
    %c0_126 = arith.constant 0 : index
    %354 = vector.load %arg21[%c0_125, %c0_126] : memref<32x128xbf16, #tpu.memory_space<vmem>>, vector<32x128xbf16>
    %cst_127 = arith.constant dense<0.000000e+00> : vector<2x128xf32>
    %355 = tpu.matmul %353, %354, %cst_127 {dimension_numbers = #tpu.dot_dimension_numbers<[1], [0], [0], [1], [0, 0, 1, 1], [], []>} : vector<2x32xbf16>, vector<32x128xbf16>, vector<2x128xf32> -> vector<2x128xf32>
    %c0_128 = arith.constant 0 : index
    %c0_129 = arith.constant 0 : index
    %356 = vector.load %arg22[%c0_128, %c0_129] : memref<2x128xf32, #tpu.memory_space<vmem>>, vector<2x128xf32>
    tpu.vector_store %arg22[%c0_128, %c0_129], %355 {strides = array<i32>} : memref<2x128xf32, #tpu.memory_space<vmem>>, vector<2x128xf32>,
    return
  }
}

</mosaic_0001>

<bundles_post_ra>
// kernel: text_encoder.1
= control target key start
LH: loop header
LB: loop body
LE: loop exit
PB: predicated region body
PF: predicated region fallthrough
CT: control target
= control target key end

     0   :  { %s8024_s0 = inlined_call_operand.vmem [shape: s32[2,1], index: 0, kind: input, shape index: {}]   ;;  %s8025_s1 = inlined_call_operand.hbm [shape: f32[2,8,32], index: 1, kind: input, shape index: {}]   ;;  %s8026_s2 = inlined_call_operand.vmem [shape: f32[8,32], index: 2, kind: input, shape index: {}]   ;;  %s8027_s3 = inlined_call_operand.hbm [shape: f32[2,1,32], index: 3, kind: input, shape index: {}]   ;;  %s8028_s4 = inlined_call_operand.hbm [shape: f32[2,1,32], index: 4, kind: input, shape index: {}]   ;;  %s8029_s5 = inlined_call_operand.vmem [shape: bf16[2,32,32], index: 5, kind: input, shape index: {}]   ;;  %s8030_s6 = inlined_call_operand.hbm [shape: f32[2,1,32], index: 6, kind: input, shape index: {}]   ;;  %s8031_s7 = inlined_call_operand.vmem [shape: bf16[2,32,32], index: 7, kind: input, shape index: {}]   ;;  %s8032_s8 = inlined_call_operand.hbm [shape: f32[2,1,32], index: 8, kind: input, shape index: {}]   ;;  %s8033_s9 = inlined_call_operand.vmem [shape: bf16[2,32,32], index: 9, kind: input, shape index: {}]   ;;  %s8034_s10 = inlined_call_operand.hbm [shape: f32[2,1,32], index: 10, kind: input, shape index: {}]   ;;  %s8035_s11 = inlined_call_operand.vmem [shape: bf16[2,32,32], index: 11, kind: input, shape index: {}]   ;;  %s8036_s12 = inlined_call_operand.hbm [shape: f32[2,1,32], index: 12, kind: input, shape index: {}]   ;;  %s8037_s13 = inlined_call_operand.hbm [shape: f32[2,1,32], index: 13, kind: input, shape index: {}]   ;;  %s8038_s14 = inlined_call_operand.hbm [shape: f32[2,1,32], index: 14, kind: input, shape index: {}]   ;;  %s8039_s15 = inlined_call_operand.vmem [shape: bf16[2,32,128], index: 15, kind: input, shape index: {}]   ;;  %s8040_s16 = inlined_call_operand.hbm [shape: f32[2,1,128], index: 16, kind: input, shape index: {}]   ;;  %s8041_s17 = inlined_call_operand.vmem [shape: bf16[2,128,32], index: 17, kind: input, shape index: {}]   ;;  %s8042_s18 = inlined_call_operand.hbm [shape: f32[2,1,32], index: 18, kind: input, shape index: {}]   ;;  %s8043_s19 = inlined_call_operand.vmem [shape: f32[1,32], index: 19, kind: input, shape index: {}]   ;;  %s8044_s20 = inlined_call_operand.hbm [shape: f32[1,32], index: 20, kind: input, shape index: {}]   ;;  %s8045_s21 = inlined_call_operand.hbm [shape: bf16[32,128], index: 21, kind: input, shape index: {}]   ;;  %s8046_s22 = inlined_call_operand.hbm [shape: f32[2,128], index: 22, kind: output, shape index: {}]  }
   0x1   :  { %8048 = sst [smem:[#allocation32_spill]] %s8024_s0 }
   0x2   :  { %8049 = sst [smem:[#allocation33_spill]] %s8025_s1 }
   0x3   :  { %8050 = sst [smem:[#allocation34_spill]] %s8026_s2 }
   0x4   :  { %8051 = sst [smem:[#allocation35_spill]] %s8027_s3 }
   0x5   :  { %8052 = sst [smem:[#allocation36_spill]] %s8028_s4 }
   0x6   :  { %8053 = sst [smem:[#allocation37_spill]] %s8029_s5 }
   0x7   :  { %8054 = sst [smem:[#allocation38_spill]] %s8030_s6 }
   0x8   :  { %27 = vsyncpa [#allocation3], 0 }
   0x9   :  { %28 = vsyncpa [#allocation6], 0 }
   0xa   :  { %29 = vsyncpa [#allocation9], 0 }
   0xb   :  { %30 = vsyncpa [#allocation12], 0 }
   0xc   :  { %31 = vsyncpa [#allocation15], 0 }
   0xd   :  { %32 = vsyncpa [#allocation18], 0 }
   0xe   :  { %33 = vsyncpa [#allocation21], 0 }
   0xf   :  { %34 = vsyncpa [#allocation4], 0  ;;  %s6760_s3 = smov [#allocation5]  }
  0x10   :  { %s56_s28 = sshll.u32 %s6760_s3, 4  ;;  %s57_s28 = int_to_ptr.vmem [resolvable:$true] %s56_s28 }
  0x11   :  { %s6472_s29 = scalar_lea.vmem %s57_s28, 32  ;;  %p6477_p1 = scmp.lt.s32.totalorder %s57_s28, %s57_s28 }
  0x12   :  { %p6473_p0 = scmp.ne.s32.totalorder %s57_s28, %s6472_s29  ;;  %p6478_p2 = scmp.lt.s32.totalorder %s6472_s29, %s6472_s29 }
  0x14   :  { %p6479_p3 = por %p6478_p2, %p6477_p1 }
  0x16   :  { %p6480_p4 = pnand %p6479_p3, %p6473_p0 }
  0x18   :  { %6483 = shalt.err (!%p6480_p4)
}
  0x19   :  { %s6761_s30 = smov 16   ;;  %s6762_s4 = smov 1  }
  0x1a   :  { %s8055_s1 = sld [smem:[#allocation35_spill]]  ;;  %s6763_s5 = smov [#allocation8]  }
  0x1b   :  { %s82_s24 = sshll.u32 %s6763_s5, 4  ;;  %s6764_s6 = smov [#allocation11]   ;;  %s83_s24 = int_to_ptr.vmem [resolvable:$true] %s82_s24 }
  0x1c   :  { %s110_s25 = sshll.u32 %s6764_s6, 4  ;;  %s6492_s26 = scalar_lea.vmem %s83_s24, 32  ;;  %s111_s25 = int_to_ptr.vmem [resolvable:$true] %s110_s25 }
  0x1d   :  { %p6493_p5 = scmp.ne.s32.totalorder %s83_s24, %s6492_s26  ;;  %p6497_p6 = scmp.lt.s32.totalorder %s83_s24, %s83_s24 }
  0x1e   :  { %p6498_p7 = scmp.lt.s32.totalorder %s6492_s26, %s6492_s26 }
  0x20   :  { %62 = dma.hbm_to_vmem [thread:$0]  %s8055_s1, 32, %s57_s28, [#allocation6], %s6761_s30, %s6761_s30, %s6762_s4  }
  0x21   :  { %p6499_p8 = por %p6498_p7, %p6497_p6 }
  0x23   :  { %p6500_p9 = pnand %p6499_p8, %p6493_p5 }
  0x25   :  { %6503 = shalt.err (!%p6500_p9)
}
  0x26   :  { %s8056_s3 = sld [smem:[#allocation38_spill]]  ;;  %s6512_s28 = scalar_lea.vmem %s111_s25, 32 }
  0x27   :  { %p6513_p10 = scmp.ne.s32.totalorder %s111_s25, %s6512_s28  ;;  %p6517_p11 = scmp.lt.s32.totalorder %s111_s25, %s111_s25 }
  0x28   :  { %p6518_p12 = scmp.lt.s32.totalorder %s6512_s28, %s6512_s28 }
  0x2a   :  { %p6519_p13 = por %p6518_p12, %p6517_p11 }
  0x2c   :  { %88 = dma.hbm_to_vmem [thread:$0]  %s8056_s3, 32, %s83_s24, [#allocation9], %s6761_s30, %s6761_s30, %s6762_s4  }
  0x2d   :  { %p6520_p0 = pnand %p6519_p13, %p6513_p10 }
  0x2f   :  { %6523 = shalt.err (!%p6520_p0)
}
  0x30   :  { %116 = dma.hbm_to_vmem [thread:$0]  %s8034_s10, 32, %s111_s25, [#allocation12], %s6761_s30, %s6761_s30, %s6762_s4  }
  0x31   :  { %s6765_s23 = smov [#allocation14]   ;;  %s6766_s5 = smov [#allocation17]  }
  0x32   :  { %s136_s1 = sshll.u32 %s6765_s23, 4  ;;  %s162_s24 = sshll.u32 %s6766_s5, 4  ;;  %s137_s1 = int_to_ptr.vmem [resolvable:$true] %s136_s1  ;;  %s163_s24 = int_to_ptr.vmem [resolvable:$true] %s162_s24 }
  0x33   :  { %s6532_s6 = scalar_lea.vmem %s137_s1, 32  ;;  %p6537_p2 = scmp.lt.s32.totalorder %s137_s1, %s137_s1 }
  0x34   :  { %p6533_p1 = scmp.ne.s32.totalorder %s137_s1, %s6532_s6  ;;  %p6538_p3 = scmp.lt.s32.totalorder %s6532_s6, %s6532_s6 }
  0x36   :  { %p6539_p4 = por %p6538_p3, %p6537_p2 }
  0x38   :  { %p6540_p5 = pnand %p6539_p4, %p6533_p1 }
  0x3a   :  { %6543 = shalt.err (!%p6540_p5)
}
  0x3b   :  { %142 = dma.hbm_to_vmem [thread:$0]  %s8037_s13, 32, %s137_s1, [#allocation15], %s6761_s30, %s6761_s30, %s6762_s4  }
  0x3c   :  { %s6552_s10 = scalar_lea.vmem %s163_s24, 32  ;;  %p6557_p7 = scmp.lt.s32.totalorder %s163_s24, %s163_s24 }
  0x3d   :  { %p6553_p6 = scmp.ne.s32.totalorder %s163_s24, %s6552_s10  ;;  %p6558_p8 = scmp.lt.s32.totalorder %s6552_s10, %s6552_s10 }
  0x3f   :  { %p6559_p9 = por %p6558_p8, %p6557_p7 }
  0x41   :  { %p6560_p10 = pnand %p6559_p9, %p6553_p6 }
  0x43   :  { %6563 = shalt.err (!%p6560_p10)
}
  0x44   :  { %168 = dma.hbm_to_vmem [thread:$0]  %s8040_s16, 32, %s163_s24, [#allocation18], %s6761_s30, %s6761_s30, %s6762_s4  }
  0x45   :  { %s6767_s3 = smov [#allocation20]   ;;  %s6768_s29 = smov [#allocation2]  }
  0x46   :  { %s191_s28 = sshll.u32 %s6767_s3, 4  ;;  %s42_s13 = sshll.u32 %s6768_s29, 4  ;;  %s192_s28 = int_to_ptr.vmem [resolvable:$true] %s191_s28  ;;  %s43_s13 = int_to_ptr.vmem [resolvable:$true] %s42_s13 }
  0x47   :  { %s6572_s0 = scalar_lea.vmem %s192_s28, 16  ;;  %s6576_s23 = scalar_lea.vmem %s192_s28, 32 }
  0x48   :  { %p6573_p11 = scmp.ne.s32.totalorder %s192_s28, %s6572_s0  ;;  %p6577_p12 = scmp.lt.s32.totalorder %s192_s28, %s192_s28 }
  0x49   :  { %p6578_p13 = scmp.lt.s32.totalorder %s6576_s23, %s6572_s0 }
  0x4b   :  { %p6579_p0 = por %p6578_p13, %p6577_p12 }
  0x4d   :  { %p6580_p1 = pnand %p6579_p0, %p6573_p11 }
  0x4f   :  { %6583 = shalt.err (!%p6580_p1)
}
  0x50   :  { %194 = dma.hbm_to_vmem [thread:$0]  %s8044_s20, 16, %s192_s28, [#allocation21]  }
  0x51   :  { %s6592_s6 = scalar_lea.vmem %s43_s13, 256  ;;  %p6597_p3 = scmp.lt.s32.totalorder %s43_s13, %s43_s13 }
  0x52   :  { %p6593_p2 = scmp.ne.s32.totalorder %s43_s13, %s6592_s6  ;;  %p6598_p4 = scmp.lt.s32.totalorder %s6592_s6, %s6592_s6 }
  0x54   :  { %p6599_p5 = por %p6598_p4, %p6597_p3 }
  0x56   :  { %p6600_p6 = pnand %p6599_p5, %p6593_p2 }
  0x58   :  { %6603 = shalt.err (!%p6600_p6)
}
  0x59   :  { %s6769_s16 = smov 128   ;;  %s6770_s24 = smov 8  }
  0x5a   :  { %s8057_s10 = sld [smem:[#allocation33_spill]]  ;;  %s6771_s25 = smov [#allocation7]  }
  0x5b   :  { %s68_s27 = sshll.u32 %s6771_s25, 4  ;;  %s6772_s3 = smov [#allocation10]   ;;  %s69_s27 = int_to_ptr.vmem [resolvable:$true] %s68_s27 }
  0x5c   :  { %s96_s20 = sshll.u32 %s6772_s3, 4  ;;  %s6612_s28 = scalar_lea.vmem %s69_s27, 32  ;;  %s97_s20 = int_to_ptr.vmem [resolvable:$true] %s96_s20 }
  0x5d   :  { %p6613_p7 = scmp.ne.s32.totalorder %s69_s27, %s6612_s28  ;;  %p6617_p8 = scmp.lt.s32.totalorder %s69_s27, %s69_s27 }
  0x5e   :  { %p6618_p9 = scmp.lt.s32.totalorder %s6612_s28, %s6612_s28 }
  0x60   :  { %48 = dma.hbm_to_vmem [thread:$0]  %s8057_s10, 256, %s43_s13, [#allocation3], %s6769_s16, %s6769_s16, %s6770_s24  }
  0x61   :  { %p6619_p10 = por %p6618_p9, %p6617_p8 }
  0x63   :  { %p6620_p11 = pnand %p6619_p10, %p6613_p7 }
  0x65   :  { %6623 = shalt.err (!%p6620_p11)
}
  0x66   :  { %s8058_s23 = sld [smem:[#allocation36_spill]]  ;;  %s6632_s13 = scalar_lea.vmem %s97_s20, 32 }
  0x67   :  { %p6633_p12 = scmp.ne.s32.totalorder %s97_s20, %s6632_s13  ;;  %p6637_p13 = scmp.lt.s32.totalorder %s97_s20, %s97_s20 }
  0x68   :  { %p6638_p0 = scmp.lt.s32.totalorder %s6632_s13, %s6632_s13 }
  0x6a   :  { %p6639_p1 = por %p6638_p0, %p6637_p13 }
  0x6c   :  { %74 = dma.hbm_to_vmem [thread:$0]  %s8058_s23, 32, %s69_s27, [#allocation6], %s6761_s30, %s6761_s30, %s6762_s4  }
  0x6d   :  { %p6640_p2 = pnand %p6639_p1, %p6633_p12 }
  0x6f   :  { %6643 = shalt.err (!%p6640_p2)
}
  0x70   :  { %102 = dma.hbm_to_vmem [thread:$0]  %s8032_s8, 32, %s97_s20, [#allocation9], %s6761_s30, %s6761_s30, %s6762_s4  }
  0x71   :  { %s6773_s6 = smov [#allocation13]   ;;  %s6774_s26 = smov [#allocation16]  }
  0x72   :  { %s124_s16 = sshll.u32 %s6773_s6, 4  ;;  %s148_s2 = sshll.u32 %s6774_s26, 4  ;;  %s125_s16 = int_to_ptr.vmem [resolvable:$true] %s124_s16  ;;  %s149_s2 = int_to_ptr.vmem [resolvable:$true] %s148_s2 }
  0x73   :  { %s6652_s10 = scalar_lea.vmem %s125_s16, 32  ;;  %p6657_p4 = scmp.lt.s32.totalorder %s125_s16, %s125_s16 }
  0x74   :  { %p6653_p3 = scmp.ne.s32.totalorder %s125_s16, %s6652_s10  ;;  %p6658_p5 = scmp.lt.s32.totalorder %s6652_s10, %s6652_s10 }
  0x76   :  { %p6659_p6 = por %p6658_p5, %p6657_p4 }
  0x78   :  { %p6660_p7 = pnand %p6659_p6, %p6653_p3 }
  0x7a   :  { %6663 = shalt.err (!%p6660_p7)
}
  0x7b   :  { %130 = dma.hbm_to_vmem [thread:$0]  %s8036_s12, 32, %s125_s16, [#allocation12], %s6761_s30, %s6761_s30, %s6762_s4  }
  0x7c   :  { %s6672_s8 = scalar_lea.vmem %s149_s2, 32  ;;  %p6677_p9 = scmp.lt.s32.totalorder %s149_s2, %s149_s2 }
  0x7d   :  { %p6673_p8 = scmp.ne.s32.totalorder %s149_s2, %s6672_s8  ;;  %p6678_p10 = scmp.lt.s32.totalorder %s6672_s8, %s6672_s8 }
  0x7f   :  { %p6679_p11 = por %p6678_p10, %p6677_p9 }
  0x81   :  { %p6680_p12 = pnand %p6679_p11, %p6673_p8 }
  0x83   :  { %6683 = shalt.err (!%p6680_p12)
}
  0x84   :  { %154 = dma.hbm_to_vmem [thread:$0]  %s8038_s14, 32, %s149_s2, [#allocation15], %s6761_s30, %s6761_s30, %s6762_s4  }
  0x85   :  { %s6775_s28 = smov [#allocation19]   ;;  %s6776_s0 = smov [#allocation22]  }
  0x86   :  { %s176_s29 = sshll.u32 %s6775_s28, 4  ;;  %s200_s12 = sshll.u32 %s6776_s0, 4  ;;  %s177_s29 = int_to_ptr.vmem [resolvable:$true] %s176_s29  ;;  %s201_s12 = int_to_ptr.vmem [resolvable:$true] %s200_s12 }
  0x87   :  { %s6692_s23 = scalar_lea.vmem %s177_s29, 32  ;;  %p6697_p0 = scmp.lt.s32.totalorder %s177_s29, %s177_s29 }
  0x88   :  { %p6693_p13 = scmp.ne.s32.totalorder %s177_s29, %s6692_s23  ;;  %p6698_p1 = scmp.lt.s32.totalorder %s6692_s23, %s6692_s23 }
  0x8a   :  { %p6699_p2 = por %p6698_p1, %p6697_p0 }
  0x8c   :  { %p6700_p3 = pnand %p6699_p2, %p6693_p13 }
  0x8e   :  { %6703 = shalt.err (!%p6700_p3)
}
  0x8f   :  { %182 = dma.hbm_to_vmem [thread:$0]  %s8042_s18, 32, %s177_s29, [#allocation18], %s6761_s30, %s6761_s30, %s6762_s4  }
  0x90   :  { %s6712_s14 = scalar_lea.vmem %s201_s12, 256  ;;  %p6717_p5 = scmp.lt.s32.totalorder %s201_s12, %s201_s12 }
  0x91   :  { %p6713_p4 = scmp.ne.s32.totalorder %s201_s12, %s6712_s14  ;;  %p6718_p6 = scmp.lt.s32.totalorder %s6712_s14, %s6712_s14 }
  0x93   :  { %p6719_p7 = por %p6718_p6, %p6717_p5 }
  0x95   :  { %p6720_p8 = pnand %p6719_p7, %p6713_p4 }
  0x97   :  { %6723 = shalt.err (!%p6720_p8)
}
  0x98   :  { %s6777_s5 = smov 64   ;;  %s6778_s6 = smov 4  }
  0x99   :  { %206 = dma.hbm_to_vmem [thread:$0]  %s8045_s21, 256, %s201_s12, [#allocation21], %s6777_s5, %s6777_s5, %s6778_s6  }
  0x9a   :  { %6744 = dma.done.wait [#allocation3], 256  }
  0x9b   :  { %6745 = vsyncadd [#allocation3], 4294967040 }
  0x9c   :  { %6746 = dma.done.wait [#allocation6], 64  }
  0x9d   :  { %6747 = vsyncadd [#allocation6], 4294967232 }
  0x9e   :  { %6748 = dma.done.wait [#allocation9], 64  }
  0x9f   :  { %6749 = vsyncadd [#allocation9], 4294967232 }
  0xa0   :  { %6750 = dma.done.wait [#allocation12], 64  }
  0xa1   :  { %6751 = vsyncadd [#allocation12], 4294967232 }
  0xa2   :  { %6752 = dma.done.wait [#allocation15], 64  }
  0xa3   :  { %6753 = vsyncadd [#allocation15], 4294967232 }
  0xa4   :  { %6754 = dma.done.wait [#allocation18], 64  }
  0xa5   :  { %6755 = vsyncadd [#allocation18], 4294967232 }
  0xa6   :  { %6756 = dma.done.wait [#allocation21], 272  }
  0xa7   :  { %6757 = vsyncadd [#allocation21], 4294967024  ;;  %v247_v0 = vld [vmem:[#allocation2] sm:$0xff]  ;;  %s8059_s2 = sld [smem:[#allocation34_spill]]  ;;  %vm260_vm0 = vcmask 261120   ;;  %v248_v2 = vld [vmem:[#allocation2 + $0x8] sm:$0xff]  ;;  %v252_v59 = vlaneseq }
  0xa8   :  { %s8060_s25 = sld [smem:[#allocation37_spill]]  ;;  %v6329_v18 = vld [vmem:[%s8033_s9 + $0x8] sm:$0xff]   ;;  %v6779_v19 = vmov 0.0   ;;  %v6331_v21 = vld [vmem:[%s8033_s9] sm:$0xff]   ;;  %vm6780_vm1 = vmmov 0   ;;  %s6781_s1 = smov 112  }
  0xa9   :  { %5941 = vmatprep.subr.bf16.mxu1 %v6779_v19  ;;  %5957 = vmatprep.subr.bf16.mxu0 %v6779_v19  ;;  %v5646_v30 = vld [vmem:[#allocation5] ss:$0 sm:$0xff]  ;;  %v5647_v34 = vld [vmem:[#allocation7] ss:$0 sm:$0xff]  ;;  %v6332_v38 = vld [vmem:[%s8031_s7 + $0x8] sm:$0xff]   ;;  %s6782_s14 = smov 120  }
  0xaa   :  { %5958 = vmatpush3.bf16.msra.mxu0 %v6329_v18  ;;  %5945 = vmatprep.mubr.msk.bf16.mxu1 %vm6780_vm1, %v6779_v19  ;;  %v6333_v40 = vld [vmem:[%s8031_s7] sm:$0xff]   ;;  %v5652_v49 = vld [vmem:[#allocation10] ss:$0 sm:$0xff]  ;;  %v5648_v52 = vld [vmem:[#allocation8] ss:$0 sm:$0xff]  ;;  %s6783_s5 = smov 104  }
  0xab   :  { %5959 = vmatprep.subr.bf16.mxu0 %v6779_v19  ;;  %5961 = vmatprep.mubr.msk.bf16.mxu0 %vm6780_vm1, %v6779_v19  ;;  %v6784_v60 = vmov 1983009808   ;;  %v6785_v62 = vmov 1934713408   ;;  %vm1400_vm2 = vcmask 64512   ;;  %vm1868_vm4 = vcmask 1043456  }
  0xac   :  { %v523_v61 = vunpack.c.l.s4 %v6784_v60  ;;  %v555_v63 = vunpack.c.l.s4 %v6785_v62  ;;  %s6786_s4 = smov 24   ;;  %vm2532_vm5 = vcmask 130048   ;;  %vm2535_vm6 = vcmask 195584   ;;  %s8061_s12 = sld [smem:[#allocation32_spill]] }
  0xad   :  { %v249_v1 = vld [vmem:[%s8059_s2] sm:$0xff]  ;;  %vm5536_vm8 = vcmask 254976  }
  0xae   :  { %v6977_v3 = vadd.f32 %v249_v1, %v247_v0  ;;  %v6979_v4 = vadd.f32 %v249_v1, %v248_v2  ;;  %v6328_v17 = vld [vmem:[%s8060_s25 + $0x8] sm:$0xff]   ;;  %v6330_v20 = vld [vmem:[%s8060_s25] sm:$0xff]   ;;  %5960 = vmatpush3.bf16.msra.mxu0 %v6331_v21  ;;  %v7055_v0 = vshrl.u32 %v252_v59, 7  ;;  %v524_v1 = vunpack.c.0.s8 %v523_v61 }
  0xaf   :  { %5942 = vmatpush3.bf16.msra.mxu1 %v6328_v17  ;;  %5971 = vmatprep.subr.bf16.mxu0 %v6779_v19 }
  0xb0   :  { %v261_v5 = vsel %vm260_vm0, %v6977_v3, 0.0  ;;  %v264_v6 = vsel %vm260_vm0, %v6979_v4, 0.0  ;;  %5943 = vmatprep.subr.bf16.mxu1 %v6779_v19 }
  0xb1   :  { %262 = vadd.xlane.f32.xlu0 %v261_v5 }
  0xb3   :  { %5944 = vmatpush3.bf16.msra.mxu1 %v6330_v20 }
  0xb4   :  { %5949 = vmatprep.subr.bf16.mxu1 %v6779_v19 }
  0xb5   :  { %265 = vadd.xlane.f32.xlu0 %v264_v6  ;;  %v556_v6 = vunpack.c.0.s8 %v555_v63 }
 0x13a   :  { %v263_v7 = vpop.xlane.xlu0 %262 }
 0x13b   :  { %v268_v8 = vmul.f32 0.03125, %v263_v7  ;;  %v7058_v7 = vsub.s32 %v524_v1, %v7055_v0 }
 0x13d   :  { %v270_v9 = vsub.f32 %v6977_v3, %v268_v8 }
 0x13e   :  { %v266_v10 = vpop.xlane.xlu0 %265 }
 0x13f   :  { %v269_v11 = vmul.f32 0.03125, %v266_v10  ;;  %v272_v12 = vmul.f32 %v270_v9, %v270_v9 }
 0x141   :  { %v271_v13 = vsub.f32 %v6979_v4, %v269_v11  ;;  %v274_v14 = vsel %vm260_vm0, %v272_v12, 0.0 }
 0x142   :  { %275 = vadd.xlane.f32.xlu1 %v274_v14  ;;  %v7061_v14 = vsub.s32 %v556_v6, %v7055_v0 }
 0x143   :  { %v273_v15 = vmul.f32 %v271_v13, %v271_v13 }
 0x145   :  { %v277_v16 = vsel %vm260_vm0, %v273_v15, 0.0 }
 0x146   :  { %278 = vadd.xlane.f32.xlu1 %v277_v16 }
 0x1cb   :  { %v276_v22 = vpop.xlane.xlu1 %275 }
 0x1cc   :  { %v280_v23 = vmul.f32 0.03125, %v276_v22 }
 0x1ce   :  { %v282_v24 = vadd.f32 1e-05, %v280_v23 }
 0x1cf   :  { %v279_v25 = vpop.xlane.xlu1 %278 }
 0x1d0   :  { %6366 = vrsqrt.f32 %v282_v24  ;;  %v281_v26 = vmul.f32 0.03125, %v279_v25 }
 0x1d2   :  { %v283_v27 = vadd.f32 1e-05, %v281_v26 }
 0x1d4   :  { %6368 = vrsqrt.f32 %v283_v27 }
 0x1dd   :  { %v6367_v28 = vpop.eup %6366 }
 0x1de   :  { %v286_v29 = vmul.f32 %v6367_v28, %v270_v9 }
 0x1e0   :  { %v294_v33 = vmul.f32 %v5646_v30, %v286_v29 }
 0x1e1   :  { %v6369_v31 = vpop.eup %6368 }
 0x1e2   :  { %v287_v32 = vmul.f32 %v6369_v31, %v271_v13  ;;  %v302_v36 = vadd.f32 %v5647_v34, %v294_v33 }
 0x1e4   :  { %v295_v35 = vmul.f32 %v5646_v30, %v287_v32 }
 0x1e6   :  { %v303_v37 = vadd.f32 %v5647_v34, %v295_v35 }
 0x1e8   :  { %v304_v39 = vpack.c.bf16 %v303_v37, %v302_v36 }
 0x1ea   :  { %5946 = vmatmul.mubr.msk.bf16.vlgmr.msra.gmra.mxu1 %vm260_vm0, %v304_v39  ;;  %5962 = vmatmul.mubr.msk.bf16.vlgmr.msra.gmra.mxu0 %vm260_vm0, %v304_v39 }
 0x1eb   :  { %5950 = vmatpush3.bf16.msra.mxu1 %v6332_v38  ;;  %5953 = vmatprep.mubr.msk.bf16.mxu1 %vm6780_vm1, %v6779_v19 }
 0x1ec   :  { %5951 = vmatprep.subr.bf16.mxu1 %v6779_v19  ;;  %5973 = vmatprep.mubr.msk.bf16.mxu0 %vm6780_vm1, %v6779_v19 }
 0x1ef   :  { %5952 = vmatpush3.bf16.msra.mxu1 %v6333_v40 }
 0x1f0   :  { %5965 = vmatprep.subr.bf16.mxu1 %v6779_v19 }
 0x1f2   :  { %5954 = vmatmul.mubr.msk.bf16.vlgmr.msra.gmra.mxu1 %vm260_vm0, %v304_v39 }
 0x1f3   :  { %5967 = vmatprep.mubr.msk.bf16.mxu1 %vm6780_vm1, %v6779_v19 }
 0x2aa   :  { %v365_v41 = vpop.f32.mrf.mxu1  ;;  %v7028_v42 = vpop.f32.mrf.mxu0 }
 0x2ab   :  { %v366_v55 = vadd.f32 %v5648_v52, %v365_v41 }
 0x2ac   :  { %v5947_v43 = vpop.f32.mrf.mxu1  ;;  %v5963_v44 = vpop.f32.mrf.mxu0 }
 0x2ae   :  { %v368_v45 = vpop.f32.mrf.mxu1  ;;  %v7030_v46 = vpop.f32.mrf.mxu0 }
 0x2af   :  { %v7044_v58 = vadd.f32 %v5648_v52, %v368_v45 }
 0x2b0   :  { %v5948_v47 = vpop.f32.mrf.mxu1  ;;  %v5964_v48 = vpop.f32.mrf.mxu0 }
 0x2b2   :  { %v429_v50 = vpop.f32.mrf.mxu1 }
 0x2b3   :  { %v430_v51 = vadd.f32 %v5652_v49, %v429_v50 }
 0x2b4   :  { %v5955_v53 = vpop.f32.mrf.mxu1 }
 0x2b5   :  { %808 = vrot.lane.b32.xlu1 %v430_v51, %s6781_s1  ;;  %802 = vrot.lane.b32.xlu0 %v430_v51, %s6782_s14 }
 0x2b6   :  { %v432_v54 = vpop.f32.mrf.mxu1 }
 0x2b7   :  { %v7036_v57 = vadd.f32 %v5652_v49, %v432_v54 }
 0x2b8   :  { %v5956_v56 = vpop.f32.mrf.mxu1 }
 0x2b9   :  { %814 = vrot.lane.b32.xlu1 %v430_v51, %s6783_s5  ;;  %508 = vrot.lane.b32.xlu0 %v366_v55, %s6781_s1 }
 0x2bd   :  { %502 = vrot.lane.b32.xlu1 %v366_v55, %s6782_s14  ;;  %804 = vrot.lane.b32.xlu0 %v7036_v57, %s6782_s14 }
 0x2c1   :  { %514 = vrot.lane.b32.xlu1 %v366_v55, %s6783_s5  ;;  %816 = vrot.lane.b32.xlu0 %v7036_v57, %s6783_s5 }
 0x2c5   :  { %810 = vrot.lane.b32.xlu1 %v7036_v57, %s6781_s1  ;;  %510 = vrot.lane.b32.xlu0 %v7044_v58, %s6781_s1 }
 0x2c9   :  { %504 = vrot.lane.b32.xlu1 %v7044_v58, %s6782_s14 }
 0x2cd   :  { %516 = vrot.lane.b32.xlu1 %v7044_v58, %s6783_s5 }
 0x327   :  { %v809_v2 = vpop.permute.xlu1 %808  ;;  %v803_v5 = vpop.permute.xlu0 %802 }
 0x328   :  { %v820_v8 = vcombine.low %v430_v51, %v809_v2  ;;  %v821_v9 = vcombine.high %v430_v51, %v809_v2 }
 0x32a   :  { %v828_v15 = vrot.slane %v820_v8, %v7058_v7  ;;  %v835_v16 = vrot.slane %v821_v9, %v7058_v7 }
 0x32b   :  { %v815_v10 = vpop.permute.xlu1 %814  ;;  %v509_v11 = vpop.permute.xlu0 %508 }
 0x32c   :  { %v836_v12 = vcombine.low %v803_v5, %v815_v10  ;;  %v837_v13 = vcombine.high %v803_v5, %v815_v10  ;;  %v520_v28 = vcombine.low %v366_v55, %v509_v11  ;;  %v521_v29 = vcombine.high %v366_v55, %v509_v11 }
 0x32e   :  { %v844_v17 = vrot.slane %v836_v12, %v7058_v7  ;;  %v851_v18 = vrot.slane %v837_v13, %v7058_v7  ;;  %v528_v38 = vrot.slane %v520_v28, %v7058_v7  ;;  %v535_v39 = vrot.slane %v521_v29, %v7058_v7 }
 0x32f   :  { %v503_v20 = vpop.permute.xlu1 %502  ;;  %v805_v21 = vpop.permute.xlu0 %804 }
 0x330   :  { %v852_v22 = vcombine.low %v828_v15, %v844_v17  ;;  %v853_v23 = vcombine.high %v828_v15, %v844_v17  ;;  %v868_v24 = vcombine.low %v835_v16, %v851_v18  ;;  %v869_v25 = vcombine.high %v835_v16, %v851_v18 }
 0x332   :  { %v860_v26 = vrot.slane %v852_v22, %v7061_v14  ;;  %v867_v27 = vrot.slane %v853_v23, %v7061_v14  ;;  %v876_v30 = vrot.slane %v868_v24, %v7061_v14  ;;  %v883_v31 = vrot.slane %v869_v25, %v7061_v14 }
 0x333   :  { %v515_v32 = vpop.permute.xlu1 %514  ;;  %v817_v33 = vpop.permute.xlu0 %816 }
 0x334   :  { %v956_v34 = vcombine.low %v860_v26, %v867_v27  ;;  %v5664_v35 = vcombine.high %v860_v26, %v867_v27  ;;  %v536_v36 = vcombine.low %v503_v20, %v515_v32  ;;  %v537_v37 = vcombine.high %v503_v20, %v515_v32 }
 0x335   :  { %v904_v40 = vcombine.low %v805_v21, %v817_v33  ;;  %v905_v41 = vcombine.high %v805_v21, %v817_v33  ;;  %v972_v43 = vcombine.low %v876_v30, %v883_v31  ;;  %v5665_v44 = vcombine.high %v876_v30, %v883_v31 }
 0x336   :  { %v544_v45 = vrot.slane %v536_v36, %v7058_v7  ;;  %v551_v47 = vrot.slane %v537_v37, %v7058_v7  ;;  %v7076_v49 = vrot.slane %v956_v34, %v7058_v7  ;;  %v7079_v50 = vrot.slane %v5664_v35, %v7058_v7 }
 0x337   :  { %v811_v48 = vpop.permute.xlu1 %810  ;;  %v511_v60 = vpop.permute.xlu0 %510  ;;  %v912_v61 = vrot.slane %v904_v40, %v7058_v7  ;;  %v919_v62 = vrot.slane %v905_v41, %v7058_v7  ;;  %v979_v18 = vrot.slane %v972_v43, %v7058_v7  ;;  %v987_v20 = vrot.slane %v5665_v44, %v7058_v7 }
 0x338   :  { %v888_v51 = vcombine.low %v7036_v57, %v811_v48  ;;  %v889_v52 = vcombine.high %v7036_v57, %v811_v48  ;;  %v552_v53 = vcombine.low %v528_v38, %v544_v45  ;;  %v553_v54 = vcombine.high %v528_v38, %v544_v45 }
 0x339   :  { %v568_v55 = vcombine.low %v535_v39, %v551_v47  ;;  %v569_v56 = vcombine.high %v535_v39, %v551_v47  ;;  %v588_v11 = vcombine.low %v7044_v58, %v511_v60  ;;  %v589_v12 = vcombine.high %v7044_v58, %v511_v60 }
 0x33a   :  { %v896_v63 = vrot.slane %v888_v51, %v7058_v7  ;;  %v903_v1 = vrot.slane %v889_v52, %v7058_v7  ;;  %v560_v2 = vrot.slane %v552_v53, %v7061_v14  ;;  %v567_v5 = vrot.slane %v553_v54, %v7061_v14 }
 0x33b   :  { %v576_v6 = vrot.slane %v568_v55, %v7061_v14  ;;  %v583_v57 = vrot.slane %v569_v56, %v7061_v14  ;;  %v505_v8 = vpop.permute.xlu1 %504  ;;  %v596_v29 = vrot.slane %v588_v11, %v7058_v7  ;;  %v603_v30 = vrot.slane %v589_v12, %v7058_v7 }
 0x33c   :  { %v920_v9 = vcombine.low %v896_v63, %v912_v61  ;;  %v921_v10 = vcombine.high %v896_v63, %v912_v61  ;;  %v656_v13 = vcombine.low %v560_v2, %v567_v5  ;;  %v5660_v15 = vcombine.high %v560_v2, %v567_v5 }
 0x33d   :  { %v672_v16 = vcombine.low %v576_v6, %v583_v57  ;;  %v5661_v17 = vcombine.high %v576_v6, %v583_v57  ;;  %v936_v21 = vcombine.low %v903_v1, %v919_v62  ;;  %v937_v22 = vcombine.high %v903_v1, %v919_v62 }
 0x33e   :  { %v7096_v23 = vrot.slane %v656_v13, %v7058_v7  ;;  %v7099_v24 = vrot.slane %v5660_v15, %v7058_v7  ;;  %v928_v26 = vrot.slane %v920_v9, %v7061_v14  ;;  %v935_v27 = vrot.slane %v921_v10, %v7061_v14 }
 0x33f   :  { %v7102_v25 = vrot.slane %v672_v16, %v7058_v7  ;;  %v7105_v58 = vrot.slane %v5661_v17, %v7058_v7  ;;  %v517_v28 = vpop.permute.xlu1 %516  ;;  %v944_v33 = vrot.slane %v936_v21, %v7061_v14  ;;  %v951_v34 = vrot.slane %v937_v22, %v7061_v14 }
 0x340   :  { %v688_v31 = vcombine.low %v7096_v23, %v7099_v24  ;;  %v604_v35 = vcombine.low %v505_v8, %v517_v28  ;;  %v605_v36 = vcombine.high %v505_v8, %v517_v28  ;;  %v988_v37 = vcombine.low %v7076_v49, %v7079_v50 }
 0x341   :  { %v704_v32 = vcombine.low %v7102_v25, %v7105_v58  ;;  %v1004_v38 = vcombine.low %v979_v18, %v987_v20  ;;  %v1024_v39 = vcombine.low %v928_v26, %v935_v27  ;;  %v5666_v40 = vcombine.high %v928_v26, %v935_v27 }
 0x342   :  { %v989_v41 = vcombine.high %v7076_v49, %v7079_v50  ;;  %v1005_v43 = vcombine.high %v979_v18, %v987_v20  ;;  %v612_v44 = vrot.slane %v604_v35, %v7058_v7  ;;  %v619_v45 = vrot.slane %v605_v36, %v7058_v7 }
 0x343   :  { %v996_v47 = vrot.slane %v988_v37, %v7061_v14  ;;  %v1012_v48 = vrot.slane %v1004_v38, %v7061_v14  ;;  %v1040_v51 = vcombine.low %v944_v33, %v951_v34  ;;  %v5667_v52 = vcombine.high %v944_v33, %v951_v34 }
 0x344   :  { %v696_v53 = vrot.slane %v688_v31, %v7061_v14  ;;  %v712_v54 = vrot.slane %v704_v32, %v7061_v14  ;;  %v620_v55 = vcombine.low %v596_v29, %v612_v44  ;;  %v621_v56 = vcombine.high %v596_v29, %v612_v44 }
 0x345   :  { %v636_v60 = vcombine.low %v603_v30, %v619_v45  ;;  %v637_v61 = vcombine.high %v603_v30, %v619_v45  ;;  %v1020_v49 = vcombine.low %v996_v47, %v1012_v48  ;;  %v1021_v50 = vcombine.high %v996_v47, %v1012_v48 }
 0x346   :  { %v1003_v62 = vrot.slane %v989_v41, %v7061_v14  ;;  %v1019_v63 = vrot.slane %v1005_v43, %v7061_v14  ;;  %v628_v1 = vrot.slane %v620_v55, %v7061_v14  ;;  %v635_v2 = vrot.slane %v621_v56, %v7061_v14 }
 0x347   :  { %v644_v5 = vrot.slane %v636_v60, %v7061_v14  ;;  %v651_v6 = vrot.slane %v637_v61, %v7061_v14  ;;  %v1031_v57 = vrot.slane %v1024_v39, %v7058_v7  ;;  %v1039_v8 = vrot.slane %v5666_v40, %v7058_v7 }
 0x348   :  { %v1092_v9 = vpack.c.bf16 %v1020_v49, %v1020_v49  ;;  %v1093_v10 = vpack.c.bf16 %v1021_v50, %v1021_v50  ;;  %v1047_v11 = vrot.slane %v1040_v51, %v7058_v7  ;;  %v1055_v12 = vrot.slane %v5667_v52, %v7058_v7 }
 0x349   :  { %v720_v13 = vcombine.low %v696_v53, %v712_v54  ;;  %v721_v15 = vcombine.high %v696_v53, %v712_v54  ;;  %v1022_v18 = vcombine.low %v1003_v62, %v1019_v63  ;;  %v1023_v20 = vcombine.high %v1003_v62, %v1019_v63 }
 0x34a   :  { %v1405_v16 = vsel %vm1400_vm2, %v1092_v9, 0  ;;  %v1451_v17 = vsel %vm1400_vm2, %v1093_v10, 0  ;;  %v724_v21 = vcombine.low %v628_v1, %v635_v2  ;;  %v5662_v22 = vcombine.high %v628_v1, %v635_v2 }
 0x34b   :  { %v740_v26 = vcombine.low %v644_v5, %v651_v6  ;;  %v5663_v27 = vcombine.high %v644_v5, %v651_v6  ;;  %5966 = vmatpush3.bf16.xpose.msra.mxu1 %v1405_v16  ;;  %v689_v28 = vcombine.high %v7096_v23, %v7099_v24  ;;  %v705_v29 = vcombine.high %v7102_v25, %v7105_v58 }
 0x34c   :  { %5972 = vmatpush3.bf16.xpose.msra.mxu0 %v1451_v17  ;;  %5977 = vmatprep.subr.bf16.mxu1 %v6779_v19  ;;  %v792_v30 = vpack.c.bf16 %v720_v13, %v720_v13  ;;  %v793_v31 = vpack.c.bf16 %v721_v15, %v721_v15  ;;  %v1094_v32 = vpack.c.bf16 %v1022_v18, %v1022_v18 }
 0x34d   :  { %5983 = vmatprep.subr.bf16.mxu0 %v6779_v19  ;;  %v1095_v33 = vpack.c.bf16 %v1023_v20, %v1023_v20  ;;  %v1056_v34 = vcombine.low %v1031_v57, %v1039_v8  ;;  %v1072_v35 = vcombine.low %v1047_v11, %v1055_v12  ;;  %v731_v36 = vrot.slane %v724_v21, %v7058_v7 }
 0x34e   :  { %v739_v37 = vrot.slane %v5662_v22, %v7058_v7  ;;  %v747_v23 = vrot.slane %v740_v26, %v7058_v7  ;;  %v755_v24 = vrot.slane %v5663_v27, %v7058_v7  ;;  %v703_v25 = vrot.slane %v689_v28, %v7061_v14 }
 0x34f   :  { %v719_v58 = vrot.slane %v705_v29, %v7061_v14  ;;  %v1064_v38 = vrot.slane %v1056_v34, %v7061_v14  ;;  %v1080_v39 = vrot.slane %v1072_v35, %v7061_v14  ;;  %v1497_v40 = vsel %vm1400_vm2, %v1094_v32, 0 }
 0x350   :  { %v1057_v43 = vcombine.high %v1031_v57, %v1039_v8  ;;  %v1073_v44 = vcombine.high %v1047_v11, %v1055_v12  ;;  %v1543_v45 = vsel %vm1400_vm2, %v1095_v33, 0  ;;  %v756_v48 = vcombine.low %v731_v36, %v739_v37 }
 0x351   :  { %v1088_v41 = vcombine.low %v1064_v38, %v1080_v39  ;;  %v1089_v47 = vcombine.high %v1064_v38, %v1080_v39  ;;  %v772_v51 = vcombine.low %v747_v23, %v755_v24  ;;  %v722_v52 = vcombine.low %v703_v25, %v719_v58 }
 0x352   :  { %5968 = vmatmul.mubr.msk.bf16.vlgmr.msra.gmra.mxu1 %vm1400_vm2, %v792_v30  ;;  %v723_v53 = vcombine.high %v703_v25, %v719_v58  ;;  %v1071_v55 = vrot.slane %v1057_v43, %v7061_v14  ;;  %v1087_v56 = vrot.slane %v1073_v44, %v7061_v14  ;;  %v764_v49 = vrot.slane %v756_v48, %v7061_v14 }
 0x353   :  { %5974 = vmatmul.mubr.msk.bf16.vlgmr.msra.gmra.mxu0 %vm1400_vm2, %v793_v31  ;;  %5978 = vmatpush3.bf16.xpose.msra.mxu1 %v1497_v40  ;;  %v1096_v54 = vpack.c.bf16 %v1088_v41, %v1088_v41  ;;  %v1097_v60 = vpack.c.bf16 %v1089_v47, %v1089_v47  ;;  %v794_v61 = vpack.c.bf16 %v722_v52, %v722_v52  ;;  %v7196_v27 = vand.u32 127, %v252_v59 }
 0x354   :  { %5984 = vmatpush3.bf16.xpose.msra.mxu0 %v1543_v45  ;;  %5979 = vmatprep.mubr.msk.bf16.mxu1 %vm6780_vm1, %v6779_v19  ;;  %v780_v50 = vrot.slane %v772_v51, %v7061_v14  ;;  %v795_v62 = vpack.c.bf16 %v723_v53, %v723_v53  ;;  %v1090_v1 = vcombine.low %v1071_v55, %v1087_v56 }
 0x355   :  { %5985 = vmatprep.mubr.msk.bf16.mxu0 %vm6780_vm1, %v6779_v19  ;;  %5989 = vmatprep.subr.bf16.mxu1 %v6779_v19  ;;  %v1589_v63 = vsel %vm1400_vm2, %v1096_v54, 0  ;;  %v1635_v2 = vsel %vm1400_vm2, %v1097_v60, 0  ;;  %v1091_v5 = vcombine.high %v1071_v55, %v1087_v56  ;;  %v757_v6 = vcombine.high %v731_v36, %v739_v37 }
 0x356   :  { %5995 = vmatprep.subr.bf16.mxu0 %v6779_v19  ;;  %v773_v57 = vcombine.high %v747_v23, %v755_v24  ;;  %v788_v8 = vcombine.low %v764_v49, %v780_v50  ;;  %v789_v9 = vcombine.high %v764_v49, %v780_v50  ;;  %v1098_v10 = vpack.c.bf16 %v1090_v1, %v1090_v1 }
 0x357   :  { %v1099_v11 = vpack.c.bf16 %v1091_v5, %v1091_v5  ;;  %v771_v13 = vrot.slane %v757_v6, %v7061_v14  ;;  %vm256_vm3 = vcmp.gt.s32.totalorder %v7196_v27, %v7055_v0 }
 0x358   :  { %v796_v12 = vpack.c.bf16 %v788_v8, %v788_v8  ;;  %v787_v15 = vrot.slane %v773_v57, %v7061_v14  ;;  %v797_v16 = vpack.c.bf16 %v789_v9, %v789_v9  ;;  %v1681_v17 = vsel %vm1400_vm2, %v1098_v10, 0 }
 0x359   :  { %v1727_v18 = vsel %vm1400_vm2, %v1099_v11, 0  ;;  %v7201_v28 = vsel %vm256_vm3, -1e+09, %v6779_v19 }
 0x35a   :  { %5980 = vmatmul.mubr.msk.bf16.vlgmr.msra.gmra.mxu1 %vm1400_vm2, %v794_v61  ;;  %v790_v20 = vcombine.low %v771_v13, %v787_v15  ;;  %v791_v21 = vcombine.high %v771_v13, %v787_v15  ;;  %v5656_v13 = vld [vmem:[#allocation11] ss:$0 sm:$0xff] }
 0x35b   :  { %5986 = vmatmul.mubr.msk.bf16.vlgmr.msra.gmra.mxu0 %vm1400_vm2, %v795_v62  ;;  %5990 = vmatpush3.bf16.xpose.msra.mxu1 %v1589_v63  ;;  %v494_v15 = vadd.f32 %v5656_v13, %v7028_v42 }
 0x35c   :  { %5996 = vmatpush3.bf16.xpose.msra.mxu0 %v1635_v2  ;;  %5991 = vmatprep.mubr.msk.bf16.mxu1 %vm6780_vm1, %v6779_v19  ;;  %v798_v22 = vpack.c.bf16 %v790_v20, %v790_v20  ;;  %v799_v26 = vpack.c.bf16 %v791_v21, %v791_v21 }
 0x35d   :  { %5997 = vmatprep.mubr.msk.bf16.mxu0 %vm6780_vm1, %v6779_v19  ;;  %6001 = vmatprep.subr.bf16.mxu1 %v6779_v19 }
 0x35e   :  { %6007 = vmatprep.subr.bf16.mxu0 %v6779_v19 }
 0x362   :  { %5992 = vmatmul.mubr.msk.bf16.vlgmr.msra.gmra.mxu1 %vm1400_vm2, %v796_v12 }
 0x363   :  { %5998 = vmatmul.mubr.msk.bf16.vlgmr.msra.gmra.mxu0 %vm1400_vm2, %v797_v16  ;;  %6002 = vmatpush3.bf16.xpose.msra.mxu1 %v1681_v17 }
 0x364   :  { %6008 = vmatpush3.bf16.xpose.msra.mxu0 %v1727_v18  ;;  %6003 = vmatprep.mubr.msk.bf16.mxu1 %vm6780_vm1, %v6779_v19  ;;  %v7236_v18 = vadd.f32 %v5656_v13, %v7030_v46 }
 0x365   :  { %6009 = vmatprep.mubr.msk.bf16.mxu0 %vm6780_vm1, %v6779_v19  ;;  %6013 = vmatprep.subr.bf16.mxu1 %v6779_v19 }
 0x366   :  { %6019 = vmatprep.subr.bf16.mxu0 %v6779_v19 }
 0x36a   :  { %6004 = vmatmul.mubr.msk.bf16.vlgmr.msra.gmra.mxu1 %vm1400_vm2, %v798_v22 }
 0x36b   :  { %6010 = vmatmul.mubr.msk.bf16.vlgmr.msra.gmra.mxu0 %vm1400_vm2, %v799_v26  ;;  %6015 = vmatprep.mubr.msk.bf16.mxu1 %vm6780_vm1, %v6779_v19 }
 0x36c   :  { %6021 = vmatprep.mubr.msk.bf16.mxu0 %vm6780_vm1, %v6779_v19 }
 0x412   :  { %v1441_v29 = vpop.f32.mrf.mxu1 }
 0x413   :  { %v7204_v30 = vadd.f32 %v1441_v29, %v7201_v28  ;;  %v1487_v31 = vpop.f32.mrf.mxu0 }
 0x414   :  { %v7207_v32 = vadd.f32 %v1487_v31, %v7201_v28  ;;  %v5969_v33 = vpop.f32.mrf.mxu1 }
 0x415   :  { %v5975_v34 = vpop.f32.mrf.mxu0  ;;  %v1769_v59 = vsel %vm1400_vm2, %v7204_v30, -inf }
 0x416   :  { %v1772_v35 = vsel %vm1400_vm2, %v7207_v32, -inf  ;;  %1770 = vmax.xlane.f32.xlu0 %v1769_v59  ;;  %v1444_v0 = vpop.f32.mrf.mxu1 }
 0x417   :  { %v1490_v36 = vpop.f32.mrf.mxu0  ;;  %1773 = vmax.xlane.f32.xlu1 %v1772_v35 }
 0x418   :  { %v5970_v37 = vpop.f32.mrf.mxu1 }
 0x419   :  { %v5976_v23 = vpop.f32.mrf.mxu0 }
 0x41a   :  { %v1533_v24 = vpop.f32.mrf.mxu1 }
 0x41b   :  { %v1534_v25 = vadd.f32 %v1533_v24, %v7201_v28  ;;  %v1579_v58 = vpop.f32.mrf.mxu0 }
 0x41c   :  { %v5981_v38 = vpop.f32.mrf.mxu1  ;;  %v1580_v39 = vadd.f32 %v1579_v58, %v7201_v28 }
 0x41d   :  { %v5987_v40 = vpop.f32.mrf.mxu0  ;;  %v1775_v41 = vsel %vm1400_vm2, %v1534_v25, -inf }
 0x41e   :  { %1776 = vmax.xlane.f32.xlu0 %v1775_v41  ;;  %v1536_v43 = vpop.f32.mrf.mxu1  ;;  %v1778_v48 = vsel %vm1400_vm2, %v1580_v39, -inf }
 0x41f   :  { %v1582_v44 = vpop.f32.mrf.mxu0 }
 0x420   :  { %v5982_v45 = vpop.f32.mrf.mxu1 }
 0x421   :  { %v5988_v47 = vpop.f32.mrf.mxu0 }
 0x422   :  { %1779 = vmax.xlane.f32.xlu0 %v1778_v48  ;;  %v1625_v51 = vpop.f32.mrf.mxu1 }
 0x423   :  { %v1671_v52 = vpop.f32.mrf.mxu0  ;;  %v1626_v53 = vadd.f32 %v1625_v51, %v7201_v28 }
 0x424   :  { %v1672_v54 = vadd.f32 %v1671_v52, %v7201_v28  ;;  %v5993_v55 = vpop.f32.mrf.mxu1 }
 0x425   :  { %v5999_v56 = vpop.f32.mrf.mxu0  ;;  %v1781_v60 = vsel %vm1400_vm2, %v1626_v53, -inf }
 0x426   :  { %v1784_v61 = vsel %vm1400_vm2, %v1672_v54, -inf  ;;  %1782 = vmax.xlane.f32.xlu0 %v1781_v60  ;;  %v1628_v49 = vpop.f32.mrf.mxu1 }
 0x427   :  { %1785 = vmax.xlane.f32.xlu1 %v1784_v61  ;;  %v1674_v50 = vpop.f32.mrf.mxu0 }
 0x428   :  { %v5994_v62 = vpop.f32.mrf.mxu1 }
 0x429   :  { %v6000_v63 = vpop.f32.mrf.mxu0 }
 0x42a   :  { %v1717_v1 = vpop.f32.mrf.mxu1 }
 0x42b   :  { %v7222_v2 = vadd.f32 %v1717_v1, %v7201_v28  ;;  %v1763_v5 = vpop.f32.mrf.mxu0 }
 0x42c   :  { %v6005_v6 = vpop.f32.mrf.mxu1  ;;  %v7231_v16 = vadd.f32 %v1763_v5, %v7201_v28 }
 0x42d   :  { %v6011_v57 = vpop.f32.mrf.mxu0  ;;  %v1787_v8 = vsel %vm1400_vm2, %v7222_v2, -inf }
 0x42e   :  { %1788 = vmax.xlane.f32.xlu0 %v1787_v8  ;;  %v1720_v9 = vpop.f32.mrf.mxu1  ;;  %v1790_v17 = vsel %vm1400_vm2, %v7231_v16, -inf }
 0x42f   :  { %v1766_v10 = vpop.f32.mrf.mxu0 }
 0x430   :  { %v6006_v11 = vpop.f32.mrf.mxu1 }
 0x431   :  { %v6012_v12 = vpop.f32.mrf.mxu0 }
 0x438   :  { %1108 = vrot.lane.b32.xlu1 %v494_v15, %s6781_s1 }
 0x43c   :  { %1114 = vrot.lane.b32.xlu1 %v494_v15, %s6783_s5 }
 0x444   :  { %1102 = vrot.lane.b32.xlu0 %v494_v15, %s6782_s14 }
 0x460   :  { %1791 = vmax.xlane.f32.xlu1 %v1790_v17 }
 0x471   :  { %1104 = vrot.lane.b32.xlu1 %v7236_v18, %s6782_s14 }
 0x49f   :  { %v1771_v42 = vpop.xlane.xlu0 %1770 }
 0x4a0   :  { %v1774_v20 = vpop.xlane.xlu1 %1773  ;;  %v1793_v21 = vsub.f32 %v7204_v30, %v1771_v42 }
 0x4a1   :  { %v1794_v22 = vsub.f32 %v7207_v32, %v1774_v20 }
 0x4a2   :  { %v1801_v26 = vmul.f32 1.442695, %v1793_v21 }
 0x4a3   :  { %v1803_v29 = vmul.f32 1.442695, %v1794_v22 }
 0x4a4   :  { %6370 = vpow2.f32 %v1801_v26 }
 0x4a5   :  { %6372 = vpow2.f32 %v1803_v29 }
 0x4a7   :  { %v1777_v31 = vpop.xlane.xlu0 %1776 }
 0x4a8   :  { %v1795_v33 = vsub.f32 %v1534_v25, %v1777_v31 }
 0x4aa   :  { %v1805_v34 = vmul.f32 1.442695, %v1795_v33 }
 0x4ab   :  { %v1780_v59 = vpop.xlane.xlu0 %1779 }
 0x4ac   :  { %6374 = vpow2.f32 %v1805_v34  ;;  %v1796_v46 = vsub.f32 %v1580_v39, %v1780_v59 }
 0x4ae   :  { %v1807_v35 = vmul.f32 1.442695, %v1796_v46 }
 0x4af   :  { %v1783_v0 = vpop.xlane.xlu0 %1782 }
 0x4b0   :  { %6376 = vpow2.f32 %v1807_v35  ;;  %v1786_v36 = vpop.xlane.xlu1 %1785  ;;  %v1797_v37 = vsub.f32 %v1626_v53, %v1783_v0 }
 0x4b1   :  { %v7242_v23 = vpop.eup %6370  ;;  %v1798_v30 = vsub.f32 %v1672_v54, %v1786_v36 }
 0x4b2   :  { %v7244_v24 = vpop.eup %6372  ;;  %v1809_v32 = vmul.f32 1.442695, %v1797_v37  ;;  %v1817_v58 = vsel %vm1400_vm2, %v7242_v23, 0.0 }
 0x4b3   :  { %v1811_v38 = vmul.f32 1.442695, %v1798_v30  ;;  %v1820_v25 = vsel %vm1400_vm2, %v7244_v24, 0.0  ;;  %1818 = vadd.xlane.f32.xlu0 %v1817_v58 }
 0x4b4   :  { %6378 = vpow2.f32 %v1809_v32  ;;  %1821 = vadd.xlane.f32.xlu1 %v1820_v25  ;;  %v1109_v39 = vpop.permute.xlu1 %1108 }
 0x4b5   :  { %6380 = vpow2.f32 %v1811_v38  ;;  %v1120_v43 = vcombine.low %v494_v15, %v1109_v39  ;;  %v1121_v44 = vcombine.high %v494_v15, %v1109_v39 }
 0x4b7   :  { %v1789_v40 = vpop.xlane.xlu0 %1788  ;;  %v1128_v54 = vrot.slane %v1120_v43, %v7058_v7  ;;  %v1135_v55 = vrot.slane %v1121_v44, %v7058_v7 }
 0x4b8   :  { %v1115_v47 = vpop.permute.xlu1 %1114  ;;  %v1799_v39 = vsub.f32 %v7222_v2, %v1789_v40 }
 0x4b9   :  { %v7250_v41 = vpop.eup %6374 }
 0x4ba   :  { %v1823_v45 = vsel %vm1400_vm2, %v7250_v41, 0.0  ;;  %v1813_v43 = vmul.f32 1.442695, %v1799_v39 }
 0x4bb   :  { %1824 = vadd.xlane.f32.xlu1 %v1823_v45  ;;  %v1103_v48 = vpop.permute.xlu0 %1102 }
 0x4bc   :  { %v1136_v51 = vcombine.low %v1103_v48, %v1115_v47  ;;  %v1137_v52 = vcombine.high %v1103_v48, %v1115_v47  ;;  %6382 = vpow2.f32 %v1813_v43 }
 0x4bd   :  { %v7254_v53 = vpop.eup %6376 }
 0x4be   :  { %v1144_v56 = vrot.slane %v1136_v51, %v7058_v7  ;;  %v1151_v60 = vrot.slane %v1137_v52, %v7058_v7  ;;  %v1826_v61 = vsel %vm1400_vm2, %v7254_v53, 0.0 }
 0x4bf   :  { %1827 = vadd.xlane.f32.xlu0 %v1826_v61 }
 0x4c0   :  { %v1152_v49 = vcombine.low %v1128_v54, %v1144_v56  ;;  %v1153_v50 = vcombine.high %v1128_v54, %v1144_v56  ;;  %v1168_v62 = vcombine.low %v1135_v55, %v1151_v60  ;;  %v1169_v63 = vcombine.high %v1135_v55, %v1151_v60 }
 0x4c1   :  { %v7262_v1 = vpop.eup %6378 }
 0x4c2   :  { %v1160_v5 = vrot.slane %v1152_v49, %v7061_v14  ;;  %v1167_v6 = vrot.slane %v1153_v50, %v7061_v14  ;;  %v1176_v57 = vrot.slane %v1168_v62, %v7061_v14  ;;  %v1183_v8 = vrot.slane %v1169_v63, %v7061_v14  ;;  %v7270_v10 = vpop.eup %6380 }
 0x4c3   :  { %v1829_v9 = vsel %vm1400_vm2, %v7262_v1, 0.0  ;;  %v1832_v22 = vsel %vm1400_vm2, %v7270_v10, 0.0 }
 0x4c4   :  { %v1256_v11 = vcombine.low %v1160_v5, %v1167_v6  ;;  %v5668_v12 = vcombine.high %v1160_v5, %v1167_v6  ;;  %v1272_v13 = vcombine.low %v1176_v57, %v1183_v8  ;;  %v5669_v15 = vcombine.high %v1176_v57, %v1183_v8  ;;  %1830 = vadd.xlane.f32.xlu0 %v1829_v9 }
 0x4c6   :  { %v1263_v17 = vrot.slane %v1256_v11, %v7058_v7  ;;  %v1271_v42 = vrot.slane %v5668_v12, %v7058_v7  ;;  %v1279_v20 = vrot.slane %v1272_v13, %v7058_v7  ;;  %v1287_v21 = vrot.slane %v5669_v15, %v7058_v7 }
 0x4c8   :  { %1833 = vadd.xlane.f32.xlu0 %v1832_v22  ;;  %v1288_v26 = vcombine.low %v1263_v17, %v1271_v42  ;;  %v1304_v29 = vcombine.low %v1279_v20, %v1287_v21  ;;  %v1289_v31 = vcombine.high %v1263_v17, %v1271_v42  ;;  %v1305_v33 = vcombine.high %v1279_v20, %v1287_v21 }
 0x4c9   :  { %v7292_v47 = vpop.eup %6382 }
 0x4ca   :  { %v1296_v34 = vrot.slane %v1288_v26, %v7061_v14  ;;  %v1312_v59 = vrot.slane %v1304_v29, %v7061_v14  ;;  %v1303_v46 = vrot.slane %v1289_v31, %v7061_v14  ;;  %v1319_v35 = vrot.slane %v1305_v33, %v7061_v14 }
 0x4cb   :  { %v1835_v51 = vsel %vm1400_vm2, %v7292_v47, 0.0 }
 0x4cc   :  { %1116 = vrot.lane.b32.xlu1 %v7236_v18, %s6783_s5  ;;  %v1320_v0 = vcombine.low %v1296_v34, %v1312_v59  ;;  %v1321_v36 = vcombine.high %v1296_v34, %v1312_v59  ;;  %v1322_v37 = vcombine.low %v1303_v46, %v1319_v35  ;;  %v1323_v30 = vcombine.high %v1303_v46, %v1319_v35 }
 0x4ce   :  { %v1392_v32 = vpack.c.bf16 %v1320_v0, %v1320_v0  ;;  %v1393_v58 = vpack.c.bf16 %v1321_v36, %v1321_v36  ;;  %v1394_v50 = vpack.c.bf16 %v1322_v37, %v1322_v37  ;;  %v1395_v63 = vpack.c.bf16 %v1323_v30, %v1323_v30 }
 0x4d0   :  { %v1870_v38 = vsel %vm1868_vm4, %v1392_v32, 0  ;;  %v1916_v25 = vsel %vm1868_vm4, %v1393_v58, 0  ;;  %v1962_v8 = vsel %vm1868_vm4, %v1394_v50, 0  ;;  %v2008_v11 = vsel %vm1868_vm4, %v1395_v63, 0 }
 0x4d1   :  { %6014 = vmatpush3.bf16.msra.mxu1 %v1870_v38  ;;  %6020 = vmatpush3.bf16.msra.mxu0 %v1916_v25 }
 0x4d2   :  { %6025 = vmatprep.subr.bf16.mxu1 %v6779_v19  ;;  %6031 = vmatprep.subr.bf16.mxu0 %v6779_v19 }
 0x4de   :  { %1110 = vrot.lane.b32.xlu0 %v7236_v18, %s6781_s1 }
 0x4e9   :  { %v1792_v44 = vpop.xlane.xlu1 %1791 }
 0x4ea   :  { %v1800_v45 = vsub.f32 %v7231_v16, %v1792_v44 }
 0x4ec   :  { %v1815_v48 = vmul.f32 1.442695, %v1800_v45 }
 0x4ed   :  { %v1105_v40 = vpop.permute.xlu1 %1104 }
 0x4ee   :  { %6384 = vpow2.f32 %v1815_v48 }
 0x4f0   :  { %1836 = vadd.xlane.f32.xlu1 %v1835_v51 }
 0x4fb   :  { %v7296_v52 = vpop.eup %6384 }
 0x4fc   :  { %v1838_v2 = vsel %vm1400_vm2, %v7296_v52, 0.0 }
 0x4fd   :  { %1839 = vadd.xlane.f32.xlu0 %v1838_v2 }
 0x53c   :  { %v1819_v54 = vpop.xlane.xlu0 %1818 }
 0x53d   :  { %v1822_v55 = vpop.xlane.xlu1 %1821  ;;  %6386 = vrcp.f32 %v1819_v54 }
 0x53e   :  { %6388 = vrcp.f32 %v1822_v55 }
 0x544   :  { %v1825_v16 = vpop.xlane.xlu1 %1824 }
 0x545   :  { %6390 = vrcp.f32 %v1825_v16 }
 0x548   :  { %v1828_v56 = vpop.xlane.xlu0 %1827  ;;  %v1117_v9 = vpop.permute.xlu1 %1116 }
 0x549   :  { %6392 = vrcp.f32 %v1828_v56  ;;  %v1205_v15 = vcombine.high %v1105_v40, %v1117_v9 }
 0x54a   :  { %v6387_v60 = vpop.eup %6386 }
 0x54b   :  { %v6389_v61 = vpop.eup %6388  ;;  %v1849_v49 = vmul.f32 %v6387_v60, %v7242_v23  ;;  %v1219_v31 = vrot.slane %v1205_v15, %v7058_v7 }
 0x54c   :  { %v1850_v62 = vmul.f32 %v6389_v61, %v7244_v24  ;;  %v1204_v24 = vcombine.low %v1105_v40, %v1117_v9 }
 0x54d   :  { %v1831_v5 = vpop.xlane.xlu0 %1830  ;;  %v1857_v6 = vpack.c.bf16 %v1849_v49, %v1849_v49 }
 0x54e   :  { %v1858_v57 = vpack.c.bf16 %v1850_v62, %v1850_v62  ;;  %v1212_v26 = vrot.slane %v1204_v24, %v7058_v7  ;;  %6394 = vrcp.f32 %v1831_v5 }
 0x54f   :  { %6016 = vmatmul.mubr.msk.bf16.vlgmr.msra.gmra.mxu1 %vm1400_vm2, %v1857_v6 }
 0x550   :  { %6022 = vmatmul.mubr.msk.bf16.vlgmr.msra.gmra.mxu0 %vm1400_vm2, %v1858_v57  ;;  %6026 = vmatpush3.bf16.msra.mxu1 %v1962_v8 }
 0x551   :  { %6032 = vmatpush3.bf16.msra.mxu0 %v2008_v11  ;;  %v1834_v12 = vpop.xlane.xlu0 %1833  ;;  %6027 = vmatprep.mubr.msk.bf16.mxu1 %vm6780_vm1, %v6779_v19 }
 0x552   :  { %v6391_v23 = vpop.eup %6390  ;;  %6033 = vmatprep.mubr.msk.bf16.mxu0 %vm6780_vm1, %v6779_v19  ;;  %6037 = vmatprep.subr.bf16.mxu1 %v6779_v19  ;;  %6396 = vrcp.f32 %v1834_v12 }
 0x553   :  { %v1851_v13 = vmul.f32 %v6391_v23, %v7250_v41  ;;  %6043 = vmatprep.subr.bf16.mxu0 %v6779_v19 }
 0x555   :  { %v1111_v17 = vpop.permute.xlu0 %1110  ;;  %v1859_v42 = vpack.c.bf16 %v1851_v13, %v1851_v13 }
 0x556   :  { %v6393_v20 = vpop.eup %6392  ;;  %v1188_v21 = vcombine.low %v7236_v18, %v1111_v17  ;;  %v1189_v22 = vcombine.high %v7236_v18, %v1111_v17 }
 0x557   :  { %6028 = vmatmul.mubr.msk.bf16.vlgmr.msra.gmra.mxu1 %vm1400_vm2, %v1859_v42  ;;  %v1852_v29 = vmul.f32 %v6393_v20, %v7254_v53 }
 0x558   :  { %v1196_v41 = vrot.slane %v1188_v21, %v7058_v7  ;;  %v1203_v33 = vrot.slane %v1189_v22, %v7058_v7  ;;  %6039 = vmatprep.mubr.msk.bf16.mxu1 %vm6780_vm1, %v6779_v19 }
 0x559   :  { %v1860_v34 = vpack.c.bf16 %v1852_v29, %v1852_v29 }
 0x55a   :  { %v1220_v59 = vcombine.low %v1196_v41, %v1212_v26  ;;  %v1221_v18 = vcombine.high %v1196_v41, %v1212_v26  ;;  %v1236_v46 = vcombine.low %v1203_v33, %v1219_v31  ;;  %v1237_v35 = vcombine.high %v1203_v33, %v1219_v31 }
 0x55b   :  { %6034 = vmatmul.mubr.msk.bf16.vlgmr.msra.gmra.mxu0 %vm1400_vm2, %v1860_v34  ;;  %v6395_v40 = vpop.eup %6394 }
 0x55c   :  { %v1228_v0 = vrot.slane %v1220_v59, %v7061_v14  ;;  %v1235_v53 = vrot.slane %v1221_v18, %v7061_v14  ;;  %v1244_v36 = vrot.slane %v1236_v46, %v7061_v14  ;;  %v1251_v37 = vrot.slane %v1237_v35, %v7061_v14  ;;  %6045 = vmatprep.mubr.msk.bf16.mxu0 %vm6780_vm1, %v6779_v19 }
 0x55d   :  { %v1853_v6 = vmul.f32 %v6395_v40, %v7262_v1 }
 0x55e   :  { %v1324_v30 = vcombine.low %v1228_v0, %v1235_v53  ;;  %v5670_v32 = vcombine.high %v1228_v0, %v1235_v53  ;;  %v1340_v58 = vcombine.low %v1244_v36, %v1251_v37  ;;  %v5671_v38 = vcombine.high %v1244_v36, %v1251_v37 }
 0x55f   :  { %v6397_v60 = vpop.eup %6396  ;;  %v1861_v23 = vpack.c.bf16 %v1853_v6, %v1853_v6 }
 0x560   :  { %v1331_v25 = vrot.slane %v1324_v30, %v7058_v7  ;;  %v1339_v39 = vrot.slane %v5670_v32, %v7058_v7  ;;  %v1347_v43 = vrot.slane %v1340_v58, %v7058_v7  ;;  %v1355_v44 = vrot.slane %v5671_v38, %v7058_v7 }
 0x561   :  { %v1854_v57 = vmul.f32 %v6397_v60, %v7270_v10 }
 0x562   :  { %v1356_v45 = vcombine.low %v1331_v25, %v1339_v39  ;;  %v1372_v48 = vcombine.low %v1347_v43, %v1355_v44  ;;  %v1357_v51 = vcombine.high %v1331_v25, %v1339_v39  ;;  %v1373_v2 = vcombine.high %v1347_v43, %v1355_v44 }
 0x563   :  { %v1862_v24 = vpack.c.bf16 %v1854_v57, %v1854_v57 }
 0x564   :  { %v1364_v54 = vrot.slane %v1356_v45, %v7061_v14  ;;  %v1380_v55 = vrot.slane %v1372_v48, %v7061_v14  ;;  %v1371_v16 = vrot.slane %v1357_v51, %v7061_v14  ;;  %v1387_v56 = vrot.slane %v1373_v2, %v7061_v14 }
 0x566   :  { %v1388_v61 = vcombine.low %v1364_v54, %v1380_v55  ;;  %v1389_v49 = vcombine.high %v1364_v54, %v1380_v55  ;;  %v1390_v50 = vcombine.low %v1371_v16, %v1387_v56  ;;  %v1391_v62 = vcombine.high %v1371_v16, %v1387_v56 }
 0x568   :  { %v1396_v63 = vpack.c.bf16 %v1388_v61, %v1388_v61  ;;  %v1397_v5 = vpack.c.bf16 %v1389_v49, %v1389_v49  ;;  %v1398_v11 = vpack.c.bf16 %v1390_v50, %v1390_v50  ;;  %v1399_v12 = vpack.c.bf16 %v1391_v62, %v1391_v62 }
 0x56a   :  { %v2054_v8 = vsel %vm1868_vm4, %v1396_v63, 0  ;;  %v2100_v9 = vsel %vm1868_vm4, %v1397_v5, 0  ;;  %v2146_v1 = vsel %vm1868_vm4, %v1398_v11, 0  ;;  %v2192_v10 = vsel %vm1868_vm4, %v1399_v12, 0 }
 0x56b   :  { %6038 = vmatpush3.bf16.msra.mxu1 %v2054_v8  ;;  %6044 = vmatpush3.bf16.msra.mxu0 %v2100_v9 }
 0x56c   :  { %6049 = vmatprep.subr.bf16.mxu1 %v6779_v19  ;;  %6055 = vmatprep.subr.bf16.mxu0 %v6779_v19 }
 0x56e   :  { %6040 = vmatmul.mubr.msk.bf16.vlgmr.msra.gmra.mxu1 %vm1400_vm2, %v1861_v23  ;;  %6046 = vmatmul.mubr.msk.bf16.vlgmr.msra.gmra.mxu0 %vm1400_vm2, %v1862_v24 }
 0x56f   :  { %6050 = vmatpush3.bf16.msra.mxu1 %v2146_v1  ;;  %6056 = vmatpush3.bf16.msra.mxu0 %v2192_v10 }
 0x570   :  { %6051 = vmatprep.mubr.msk.bf16.mxu1 %vm6780_vm1, %v6779_v19  ;;  %6057 = vmatprep.mubr.msk.bf16.mxu0 %vm6780_vm1, %v6779_v19 }
 0x571   :  { %6061 = vmatprep.subr.bf16.mxu1 %v6779_v19  ;;  %6069 = vmatprep.subr.bf16.mxu0 %v6779_v19 }
 0x579   :  { %v1837_v13 = vpop.xlane.xlu1 %1836 }
 0x57a   :  { %6398 = vrcp.f32 %v1837_v13 }
 0x586   :  { %v1840_v15 = vpop.xlane.xlu0 %1839 }
 0x587   :  { %v6399_v17 = vpop.eup %6398  ;;  %6400 = vrcp.f32 %v1840_v15 }
 0x588   :  { %v1855_v42 = vmul.f32 %v6399_v17, %v7292_v47 }
 0x58a   :  { %v1863_v20 = vpack.c.bf16 %v1855_v42, %v1855_v42 }
 0x58c   :  { %6052 = vmatmul.mubr.msk.bf16.vlgmr.msra.gmra.mxu1 %vm1400_vm2, %v1863_v20 }
 0x58d   :  { %6065 = vmatprep.mubr.msk.bf16.mxu1 %vm6780_vm1, %v6779_v19 }
 0x594   :  { %v6401_v21 = vpop.eup %6400 }
 0x595   :  { %v1856_v22 = vmul.f32 %v6401_v21, %v7296_v52 }
 0x597   :  { %v1864_v26 = vpack.c.bf16 %v1856_v22, %v1856_v22 }
 0x599   :  { %6058 = vmatmul.mubr.msk.bf16.vlgmr.msra.gmra.mxu0 %vm1400_vm2, %v1864_v26 }
 0x59a   :  { %6073 = vmatprep.mubr.msk.bf16.mxu0 %vm6780_vm1, %v6779_v19 }
 0x60f   :  { %v1906_v29 = vpop.f32.mrf.mxu1 }
 0x610   :  { %v1952_v31 = vpop.f32.mrf.mxu0 }
 0x611   :  { %v6017_v41 = vpop.f32.mrf.mxu1 }
 0x612   :  { %v6023_v33 = vpop.f32.mrf.mxu0 }
 0x613   :  { %v1909_v47 = vpop.f32.mrf.mxu1 }
 0x614   :  { %v1955_v34 = vpop.f32.mrf.mxu0 }
 0x615   :  { %v6018_v59 = vpop.f32.mrf.mxu1 }
 0x616   :  { %v6024_v18 = vpop.f32.mrf.mxu0 }
 0x617   :  { %v1998_v46 = vpop.f32.mrf.mxu1 }
 0x618   :  { %v2234_v35 = vcombine.low %v1906_v29, %v1998_v46  ;;  %v2235_v0 = vcombine.high %v1906_v29, %v1998_v46 }
 0x619   :  { %v6029_v53 = vpop.f32.mrf.mxu1 }
 0x61a   :  { %v2242_v38 = vrot.slane %v2234_v35, %v7058_v7  ;;  %v2249_v25 = vrot.slane %v2235_v0, %v7058_v7 }
 0x61b   :  { %v2001_v36 = vpop.f32.mrf.mxu1  ;;  %v2044_v52 = vpop.f32.mrf.mxu0 }
 0x61c   :  { %v2250_v37 = vcombine.low %v1952_v31, %v2044_v52  ;;  %v2251_v30 = vcombine.high %v1952_v31, %v2044_v52 }
 0x61d   :  { %v6030_v32 = vpop.f32.mrf.mxu1  ;;  %v6035_v58 = vpop.f32.mrf.mxu0 }
 0x61e   :  { %v2258_v39 = vrot.slane %v2250_v37, %v7058_v7  ;;  %v2265_v43 = vrot.slane %v2251_v30, %v7058_v7 }
 0x61f   :  { %v2047_v44 = vpop.f32.mrf.mxu0 }
 0x620   :  { %v2266_v45 = vcombine.low %v2242_v38, %v2258_v39  ;;  %v2267_v48 = vcombine.high %v2242_v38, %v2258_v39  ;;  %v2282_v51 = vcombine.low %v2249_v25, %v2265_v43  ;;  %v2283_v2 = vcombine.high %v2249_v25, %v2265_v43 }
 0x621   :  { %v6036_v40 = vpop.f32.mrf.mxu0 }
 0x622   :  { %v2274_v54 = vrot.slane %v2266_v45, %v7061_v14  ;;  %v2281_v55 = vrot.slane %v2267_v48, %v7061_v14  ;;  %v2290_v16 = vrot.slane %v2282_v51, %v7061_v14  ;;  %v2297_v56 = vrot.slane %v2283_v2, %v7061_v14 }
 0x624   :  { %v2370_v60 = vcombine.low %v2274_v54, %v2281_v55  ;;  %v5688_v61 = vcombine.high %v2274_v54, %v2281_v55  ;;  %v2386_v49 = vcombine.low %v2290_v16, %v2297_v56  ;;  %v5689_v50 = vcombine.high %v2290_v16, %v2297_v56  ;;  %v6334_v56 = vld [vmem:[%s8035_s11 + $0x8] sm:$0xff]  }
 0x625   :  { %6062 = vmatpush3.bf16.msra.mxu1 %v6334_v56  ;;  %v6337_v56 = vld [vmem:[%s8039_s15] sm:$0xff]  }
 0x626   :  { %v2377_v62 = vrot.slane %v2370_v60, %v7058_v7  ;;  %v2385_v63 = vrot.slane %v5688_v61, %v7058_v7  ;;  %v2393_v5 = vrot.slane %v2386_v49, %v7058_v7  ;;  %v2401_v6 = vrot.slane %v5689_v50, %v7058_v7  ;;  %6063 = vmatprep.subr.bf16.mxu1 %v6779_v19 }
 0x628   :  { %v2403_v57 = vcombine.high %v2377_v62, %v2385_v63  ;;  %v2419_v8 = vcombine.high %v2393_v5, %v2401_v6  ;;  %v2402_v9 = vcombine.low %v2377_v62, %v2385_v63  ;;  %v2418_v11 = vcombine.low %v2393_v5, %v2401_v6 }
 0x62a   :  { %v7375_v12 = vrot.slane %v2403_v57, %v7061_v14  ;;  %v7378_v23 = vrot.slane %v2419_v8, %v7061_v14  ;;  %v7381_v24 = vrot.slane %v2402_v9, %v7061_v14  ;;  %v7384_v1 = vrot.slane %v2418_v11, %v7061_v14  ;;  %v6335_v57 = vld [vmem:[%s8035_s11] sm:$0xff]  }
 0x62b   :  { %6064 = vmatpush3.bf16.msra.mxu1 %v6335_v57  ;;  %v5696_v57 = vld [vmem:[#allocation14] ss:$0 sm:$0xff] }
 0x62c   :  { %v2436_v10 = vcombine.low %v7375_v12, %v7378_v23  ;;  %v2434_v13 = vcombine.low %v7381_v24, %v7384_v1  ;;  %v2435_v15 = vcombine.high %v7381_v24, %v7384_v1  ;;  %v2437_v17 = vcombine.high %v7375_v12, %v7378_v23  ;;  %6077 = vmatprep.subr.bf16.mxu1 %v6779_v19  ;;  %v5692_v24 = vld [vmem:[#allocation13] ss:$0 sm:$0xff] }
 0x62e   :  { %v2090_v42 = vpop.f32.mrf.mxu1  ;;  %v2136_v20 = vpop.f32.mrf.mxu0 }
 0x630   :  { %v6041_v21 = vpop.f32.mrf.mxu1  ;;  %v6047_v22 = vpop.f32.mrf.mxu0 }
 0x632   :  { %v2093_v26 = vpop.f32.mrf.mxu1  ;;  %v2139_v29 = vpop.f32.mrf.mxu0 }
 0x634   :  { %v6042_v31 = vpop.f32.mrf.mxu1  ;;  %v6048_v41 = vpop.f32.mrf.mxu0 }
 0x64c   :  { %v2182_v33 = vpop.f32.mrf.mxu1 }
 0x64d   :  { %v2302_v18 = vcombine.low %v2090_v42, %v2182_v33  ;;  %v2303_v46 = vcombine.high %v2090_v42, %v2182_v33 }
 0x64e   :  { %v6053_v47 = vpop.f32.mrf.mxu1 }
 0x64f   :  { %v2310_v52 = vrot.slane %v2302_v18, %v7058_v7  ;;  %v2317_v37 = vrot.slane %v2303_v46, %v7058_v7 }
 0x650   :  { %v2185_v34 = vpop.f32.mrf.mxu1 }
 0x652   :  { %v6054_v59 = vpop.f32.mrf.mxu1 }
 0x659   :  { %v2228_v35 = vpop.f32.mrf.mxu0 }
 0x65a   :  { %v2318_v0 = vcombine.low %v2136_v20, %v2228_v35  ;;  %v2319_v53 = vcombine.high %v2136_v20, %v2228_v35 }
 0x65b   :  { %v6059_v36 = vpop.f32.mrf.mxu0 }
 0x65c   :  { %v2326_v30 = vrot.slane %v2318_v0, %v7058_v7  ;;  %v2333_v32 = vrot.slane %v2319_v53, %v7058_v7 }
 0x65d   :  { %v2231_v58 = vpop.f32.mrf.mxu0 }
 0x65e   :  { %v2334_v38 = vcombine.low %v2310_v52, %v2326_v30  ;;  %v2335_v25 = vcombine.high %v2310_v52, %v2326_v30  ;;  %v2350_v39 = vcombine.low %v2317_v37, %v2333_v32  ;;  %v2351_v43 = vcombine.high %v2317_v37, %v2333_v32 }
 0x65f   :  { %v6060_v44 = vpop.f32.mrf.mxu0 }
 0x660   :  { %v2342_v45 = vrot.slane %v2334_v38, %v7061_v14  ;;  %v2349_v48 = vrot.slane %v2335_v25, %v7061_v14  ;;  %v2358_v51 = vrot.slane %v2350_v39, %v7061_v14  ;;  %v2365_v2 = vrot.slane %v2351_v43, %v7061_v14 }
 0x662   :  { %v2438_v40 = vcombine.low %v2342_v45, %v2349_v48  ;;  %v5690_v54 = vcombine.high %v2342_v45, %v2349_v48  ;;  %v2454_v55 = vcombine.low %v2358_v51, %v2365_v2  ;;  %v5691_v16 = vcombine.high %v2358_v51, %v2365_v2 }
 0x664   :  { %v2445_v60 = vrot.slane %v2438_v40, %v7058_v7  ;;  %v2453_v61 = vrot.slane %v5690_v54, %v7058_v7  ;;  %v2461_v49 = vrot.slane %v2454_v55, %v7058_v7  ;;  %v2469_v50 = vrot.slane %v5691_v16, %v7058_v7  ;;  %v6336_v16 = vld [vmem:[%s8039_s15 + $0x8] sm:$0xff]  }
 0x665   :  { %6070 = vmatpush3.bf16.msra.mxu0 %v6336_v16 }
 0x666   :  { %v2471_v62 = vcombine.high %v2445_v60, %v2453_v61  ;;  %v2487_v63 = vcombine.high %v2461_v49, %v2469_v50  ;;  %v2470_v5 = vcombine.low %v2445_v60, %v2453_v61  ;;  %v2486_v6 = vcombine.low %v2461_v49, %v2469_v50  ;;  %6071 = vmatprep.subr.bf16.mxu0 %v6779_v19 }
 0x668   :  { %v2485_v8 = vrot.slane %v2471_v62, %v7061_v14  ;;  %v2501_v9 = vrot.slane %v2487_v63, %v7061_v14  ;;  %v2478_v11 = vrot.slane %v2470_v5, %v7061_v14  ;;  %v2494_v42 = vrot.slane %v2486_v6, %v7061_v14 }
 0x669   :  { %6072 = vmatpush3.bf16.msra.mxu0 %v6337_v56 }
 0x66a   :  { %v2504_v20 = vcombine.low %v2485_v8, %v2501_v9  ;;  %v2503_v21 = vcombine.high %v2478_v11, %v2494_v42  ;;  %v2502_v22 = vcombine.low %v2478_v11, %v2494_v42  ;;  %v2505_v31 = vcombine.high %v2485_v8, %v2501_v9  ;;  %6097 = vmatprep.subr.bf16.mxu0 %v6779_v19  ;;  %v5697_v42 = vld [vmem:[#allocation16] ss:$0 sm:$0xff] }
 0x66c   :  { %v6302_v26 = vpack.i.bf16 %v2504_v20, %v2436_v10  ;;  %v6297_v29 = vpack.i.bf16 %v2503_v21, %v2435_v15  ;;  %v6307_v41 = vpack.i.bf16 %v2505_v31, %v2437_v17  ;;  %v6339_v31 = vld [vmem:[%s8041_s17 + $0x30] sm:$0xff]  }
 0x66e   :  { %6303 = vrot.lane.b32.xlu1 %v6302_v26, %s6761_s30  ;;  %6298 = vrot.lane.b32.xlu0 %v6297_v29, %s6770_s24  ;;  %v6338_v29 = vld [vmem:[%s8041_s17 + $0x38] sm:$0xff]  }
 0x672   :  { %6308 = vrot.lane.b32.xlu1 %v6307_v41, %s6786_s4  ;;  %v6340_v41 = vld [vmem:[%s8041_s17 + $0x28] sm:$0xff]  }
 0x6e0   :  { %v6304_v33 = vpop.permute.xlu1 %6303  ;;  %v6299_v47 = vpop.permute.xlu0 %6298 }
 0x6e1   :  { %v6301_v34 = vunpack.i.h.bf16 %v6299_v47  ;;  %v6300_v59 = vunpack.i.l.bf16 %v6299_v47  ;;  %v6306_v18 = vunpack.i.h.bf16 %v6304_v33  ;;  %v6305_v46 = vunpack.i.l.bf16 %v6304_v33  ;;  %v6341_v33 = vld [vmem:[%s8041_s17 + $0x20] sm:$0xff]   ;;  %v6342_v47 = vld [vmem:[%s8041_s17 + $0x18] sm:$0xff]  }
 0x6e3   :  { %v2530_v10 = vsel %vm1400_vm2, %v2434_v13, %v6300_v59  ;;  %v2531_v15 = vsel %vm1400_vm2, %v2502_v22, %v6301_v34  ;;  %v6343_v34 = vld [vmem:[%s8041_s17 + $0x10] sm:$0xff]   ;;  %v6344_v59 = vld [vmem:[%s8041_s17 + $0x8] sm:$0xff]  }
 0x6e4   :  { %v6309_v12 = vpop.permute.xlu1 %6308  ;;  %v2533_v35 = vsel %vm2532_vm5, %v2530_v10, %v6305_v46  ;;  %v2534_v0 = vsel %vm2532_vm5, %v2531_v15, %v6306_v18  ;;  %v6345_v18 = vld [vmem:[%s8041_s17] sm:$0xff]  }
 0x6e5   :  { %v6311_v23 = vunpack.i.h.bf16 %v6309_v12  ;;  %v6310_v17 = vunpack.i.l.bf16 %v6309_v12  ;;  %v5698_v46 = vld [vmem:[#allocation17] ss:$0 sm:$0xff] }
 0x6e7   :  { %v2536_v53 = vsel %vm2535_vm6, %v2533_v35, %v6310_v17  ;;  %v2537_v36 = vsel %vm2535_vm6, %v2534_v0, %v6311_v23 }
 0x6e8   :  { %v2538_v52 = vpack.c.bf16 %v2537_v36, %v2536_v53 }
 0x6ea   :  { %6066 = vmatmul.mubr.msk.bf16.vlgmr.msra.gmra.mxu1 %vm260_vm0, %v2538_v52 }
 0x6eb   :  { %6093 = vmatprep.mubr.msk.bf16.mxu1 %vm6780_vm1, %v6779_v19  ;;  %6078 = vmatpush3.bf16.msra.mxu1 %v6338_v29  ;;  %v5713_v29 = vld [vmem:[#allocation5 + $0x1] ss:$0 sm:$0xff] }
 0x6ec   :  { %6079 = vmatprep.subr.bf16.mxu1 %v6779_v19 }
 0x6ef   :  { %6080 = vmatpush3.bf16.msra.mxu1 %v6339_v31 }
 0x6f0   :  { %6081 = vmatprep.subr.bf16.mxu1 %v6779_v19 }
 0x6f3   :  { %6082 = vmatpush3.bf16.msra.mxu1 %v6340_v41 }
 0x6f4   :  { %6083 = vmatprep.subr.bf16.mxu1 %v6779_v19 }
 0x6f7   :  { %6084 = vmatpush3.bf16.msra.mxu1 %v6341_v33 }
 0x6f8   :  { %6085 = vmatprep.subr.bf16.mxu1 %v6779_v19 }
 0x6fb   :  { %6086 = vmatpush3.bf16.msra.mxu1 %v6342_v47  ;;  %v5714_v47 = vld [vmem:[#allocation7 + $0x1] ss:$0 sm:$0xff] }
 0x6fc   :  { %6087 = vmatprep.subr.bf16.mxu1 %v6779_v19 }
 0x6ff   :  { %6088 = vmatpush3.bf16.msra.mxu1 %v6343_v34 }
 0x700   :  { %6089 = vmatprep.subr.bf16.mxu1 %v6779_v19 }
 0x703   :  { %6090 = vmatpush3.bf16.msra.mxu1 %v6344_v59 }
 0x704   :  { %6091 = vmatprep.subr.bf16.mxu1 %v6779_v19 }
 0x707   :  { %6092 = vmatpush3.bf16.msra.mxu1 %v6345_v18 }
 0x708   :  { %6127 = vmatprep.subr.bf16.mxu1 %v6779_v19 }
 0x7aa   :  { %v2599_v1 = vpop.f32.mrf.mxu1 }
 0x7ab   :  { %v2600_v13 = vadd.f32 %v5692_v24, %v2599_v1 }
 0x7ac   :  { %v6067_v37 = vpop.f32.mrf.mxu1 }
 0x7ad   :  { %v7437_v30 = vadd.f32 %v2600_v13, %v6977_v3 }
 0x7ae   :  { %v2602_v32 = vpop.f32.mrf.mxu1 }
 0x7af   :  { %v2603_v58 = vadd.f32 %v5692_v24, %v2602_v32  ;;  %v2610_v38 = vsel %vm260_vm0, %v7437_v30, 0.0 }
 0x7b0   :  { %2611 = vadd.xlane.f32.xlu1 %v2610_v38  ;;  %v6068_v25 = vpop.f32.mrf.mxu1 }
 0x7b1   :  { %v7442_v39 = vadd.f32 %v2603_v58, %v6979_v4 }
 0x7b3   :  { %v2613_v43 = vsel %vm260_vm0, %v7442_v39, 0.0 }
 0x7b4   :  { %2614 = vadd.xlane.f32.xlu0 %v2613_v43 }
 0x839   :  { %v2612_v44 = vpop.xlane.xlu1 %2611 }
 0x83a   :  { %v2616_v45 = vmul.f32 0.03125, %v2612_v44  ;;  %v5704_v44 = vld [vmem:[#allocation19] ss:$0 sm:$0xff] }
 0x83c   :  { %v2618_v48 = vsub.f32 %v7437_v30, %v2616_v45 }
 0x83d   :  { %v2615_v3 = vpop.xlane.xlu0 %2614 }
 0x83e   :  { %v2617_v51 = vmul.f32 0.03125, %v2615_v3  ;;  %v2620_v2 = vmul.f32 %v2618_v48, %v2618_v48 }
 0x840   :  { %v2619_v40 = vsub.f32 %v7442_v39, %v2617_v51  ;;  %v2622_v54 = vsel %vm260_vm0, %v2620_v2, 0.0 }
 0x841   :  { %2623 = vadd.xlane.f32.xlu0 %v2622_v54 }
 0x842   :  { %v2621_v55 = vmul.f32 %v2619_v40, %v2619_v40 }
 0x844   :  { %v2625_v4 = vsel %vm260_vm0, %v2621_v55, 0.0 }
 0x845   :  { %2626 = vadd.xlane.f32.xlu0 %v2625_v4 }
 0x8ca   :  { %v2624_v60 = vpop.xlane.xlu0 %2623 }
 0x8cb   :  { %v2628_v61 = vmul.f32 0.03125, %v2624_v60 }
 0x8cd   :  { %v2630_v49 = vadd.f32 1e-05, %v2628_v61 }
 0x8ce   :  { %v2627_v50 = vpop.xlane.xlu0 %2626 }
 0x8cf   :  { %6402 = vrsqrt.f32 %v2630_v49  ;;  %v2629_v62 = vmul.f32 0.03125, %v2627_v50 }
 0x8d1   :  { %v2631_v63 = vadd.f32 1e-05, %v2629_v62 }
 0x8d3   :  { %6404 = vrsqrt.f32 %v2631_v63 }
 0x8dc   :  { %v6403_v5 = vpop.eup %6402 }
 0x8dd   :  { %v2634_v6 = vmul.f32 %v6403_v5, %v2618_v48 }
 0x8df   :  { %v2642_v11 = vmul.f32 %v5696_v57, %v2634_v6  ;;  %v6346_v6 = vld [vmem:[%s8060_s25 + $0x18] sm:$0xff]  }
 0x8e0   :  { %v6405_v8 = vpop.eup %6404 }
 0x8e1   :  { %v2635_v9 = vmul.f32 %v6405_v8, %v2619_v40  ;;  %v2650_v21 = vadd.f32 %v5697_v42, %v2642_v11 }
 0x8e3   :  { %v2643_v20 = vmul.f32 %v5696_v57, %v2635_v9  ;;  %v6347_v57 = vld [vmem:[%s8060_s25 + $0x10] sm:$0xff]  }
 0x8e5   :  { %v2651_v22 = vadd.f32 %v5697_v42, %v2643_v20 }
 0x8e7   :  { %v2652_v26 = vpack.c.bf16 %v2651_v22, %v2650_v21 }
 0x8e9   :  { %6074 = vmatmul.mubr.msk.bf16.vlgmr.msra.gmra.mxu0 %vm260_vm0, %v2652_v26 }
 0x8ea   :  { %6101 = vmatprep.mubr.msk.bf16.mxu0 %vm6780_vm1, %v6779_v19  ;;  %6098 = vmatpush3.bf16.msra.mxu0 %v6346_v6 }
 0x8eb   :  { %6099 = vmatprep.subr.bf16.mxu0 %v6779_v19 }
 0x8ee   :  { %6100 = vmatpush3.bf16.msra.mxu0 %v6347_v57 }
 0x8ef   :  { %6105 = vmatprep.subr.bf16.mxu0 %v6779_v19 }
 0x9a9   :  { %v2713_v10 = vpop.f32.mrf.mxu0 }
 0x9aa   :  { %v2714_v15 = vadd.f32 %v5698_v46, %v2713_v10 }
 0x9ab   :  { %v6075_v12 = vpop.f32.mrf.mxu0 }
 0x9ac   :  { %v5702_v23 = vmul.f32 -1.702, %v2714_v15  ;;  %v6350_v12 = vld [vmem:[%s8033_s9 + $0x18] sm:$0xff]  }
 0x9ad   :  { %v2716_v17 = vpop.f32.mrf.mxu0 }
 0x9ae   :  { %v2724_v35 = vmul.f32 1.442695, %v5702_v23  ;;  %v2717_v0 = vadd.f32 %v5698_v46, %v2716_v17  ;;  %v6348_v46 = vld [vmem:[%s8031_s7 + $0x18] sm:$0xff]   ;;  %v6351_v23 = vld [vmem:[%s8033_s9 + $0x10] sm:$0xff]  }
 0x9af   :  { %v6076_v53 = vpop.f32.mrf.mxu0 }
 0x9b0   :  { %6406 = vpow2.f32 %v2724_v35  ;;  %v5703_v36 = vmul.f32 -1.702, %v2717_v0 }
 0x9b2   :  { %v2726_v52 = vmul.f32 1.442695, %v5703_v36  ;;  %v5727_v36 = vld [vmem:[#allocation10 + $0x1] ss:$0 sm:$0xff] }
 0x9b4   :  { %6408 = vpow2.f32 %v2726_v52 }
 0x9bd   :  { %v6407_v24 = vpop.eup %6406 }
 0x9be   :  { %v2728_v1 = vadd.f32 1.0, %v6407_v24 }
 0x9c0   :  { %6410 = vrcp.f32 %v2728_v1  ;;  %v5719_v1 = vld [vmem:[#allocation8 + $0x1] ss:$0 sm:$0xff] }
 0x9c1   :  { %v6409_v13 = vpop.eup %6408 }
 0x9c2   :  { %v2729_v37 = vadd.f32 1.0, %v6409_v13 }
 0x9c4   :  { %6412 = vrcp.f32 %v2729_v37 }
 0x9cd   :  { %v6411_v32 = vpop.eup %6410 }
 0x9ce   :  { %v2734_v38 = vmul.f32 %v6411_v32, %v2714_v15  ;;  %v6349_v15 = vld [vmem:[%s8031_s7 + $0x10] sm:$0xff]   ;;  %s6788_s7 = smov [#allocation23]  }
 0x9cf   :  { %s5631_s9 = sshll.u32 %s6788_s7, 4  ;;  %s5632_s9 = int_to_ptr.vmem [resolvable:$true] %s5631_s9 }
 0x9d0   :  { %p6729_p10 = scmp.lt.s32.totalorder %s5632_s9, %s5632_s9 }
 0x9d1   :  { %v6413_v58 = vpop.eup %6412 }
 0x9d2   :  { %v2735_v25 = vmul.f32 %v6413_v58, %v2717_v0 }
 0x9d4   :  { %v2736_v43 = vpack.c.bf16 %v2735_v25, %v2734_v38 }
 0x9d6   :  { %6094 = vmatmul.mubr.bf16.vlgmr.msra.gmra.mxu1 %v2736_v43 }
 0x9d7   :  { %6129 = vmatprep.mubr.msk.bf16.mxu1 %vm6780_vm1, %v6779_v19 }
 0xa96   :  { %v2842_v45 = vpop.f32.mrf.mxu1 }
 0xa97   :  { %v2843_v48 = vadd.f32 %v5704_v44, %v2842_v45 }
 0xa98   :  { %v6095_v3 = vpop.f32.mrf.mxu1 }
 0xa99   :  { %v7496_v51 = vadd.f32 %v2843_v48, %v7437_v30 }
 0xa9a   :  { %v2845_v2 = vpop.f32.mrf.mxu1 }
 0xa9b   :  { %v2846_v40 = vadd.f32 %v5704_v44, %v2845_v2  ;;  %v2855_v54 = vsel %vm260_vm0, %v7496_v51, 0.0  ;;  %v5735_v44 = vld [vmem:[#allocation11 + $0x1] ss:$0 sm:$0xff] }
 0xa9c   :  { %2856 = vadd.xlane.f32.xlu1 %v2855_v54  ;;  %v6096_v55 = vpop.f32.mrf.mxu1 }
 0xa9d   :  { %v7501_v4 = vadd.f32 %v2846_v40, %v7442_v39 }
 0xa9f   :  { %v2858_v16 = vsel %vm260_vm0, %v7501_v4, 0.0 }
 0xaa0   :  { %2859 = vadd.xlane.f32.xlu0 %v2858_v16 }
 0xb25   :  { %v2857_v56 = vpop.xlane.xlu1 %2856 }
 0xb26   :  { %v2861_v60 = vmul.f32 0.03125, %v2857_v56 }
 0xb28   :  { %v2863_v61 = vsub.f32 %v7496_v51, %v2861_v60 }
 0xb29   :  { %v2860_v30 = vpop.xlane.xlu0 %2859 }
 0xb2a   :  { %v2862_v49 = vmul.f32 0.03125, %v2860_v30  ;;  %v2865_v50 = vmul.f32 %v2863_v61, %v2863_v61 }
 0xb2c   :  { %v2864_v62 = vsub.f32 %v7501_v4, %v2862_v49  ;;  %v2867_v63 = vsel %vm260_vm0, %v2865_v50, 0.0 }
 0xb2d   :  { %2868 = vadd.xlane.f32.xlu1 %v2867_v63 }
 0xb2e   :  { %v2866_v5 = vmul.f32 %v2864_v62, %v2864_v62 }
 0xb30   :  { %v2870_v39 = vsel %vm260_vm0, %v2866_v5, 0.0 }
 0xb31   :  { %2871 = vadd.xlane.f32.xlu0 %v2870_v39 }
 0xbb6   :  { %v2869_v8 = vpop.xlane.xlu1 %2868 }
 0xbb7   :  { %v2873_v9 = vmul.f32 0.03125, %v2869_v8 }
 0xbb9   :  { %v2875_v11 = vadd.f32 1e-05, %v2873_v9 }
 0xbba   :  { %v2872_v42 = vpop.xlane.xlu0 %2871 }
 0xbbb   :  { %6414 = vrsqrt.f32 %v2875_v11  ;;  %v2874_v20 = vmul.f32 0.03125, %v2872_v42 }
 0xbbd   :  { %v2876_v21 = vadd.f32 1e-05, %v2874_v20 }
 0xbbf   :  { %6416 = vrsqrt.f32 %v2876_v21 }
 0xbc8   :  { %v6415_v22 = vpop.eup %6414 }
 0xbc9   :  { %v2879_v26 = vmul.f32 %v6415_v22, %v2863_v61 }
 0xbcb   :  { %v2887_v33 = vmul.f32 %v5713_v29, %v2879_v26 }
 0xbcc   :  { %v6417_v31 = vpop.eup %6416 }
 0xbcd   :  { %v2880_v41 = vmul.f32 %v6417_v31, %v2864_v62  ;;  %v2895_v59 = vadd.f32 %v5714_v47, %v2887_v33 }
 0xbcf   :  { %v2888_v34 = vmul.f32 %v5713_v29, %v2880_v41 }
 0xbd1   :  { %v2896_v18 = vadd.f32 %v5714_v47, %v2888_v34 }
 0xbd3   :  { %v2897_v10 = vpack.c.bf16 %v2896_v18, %v2895_v59 }
 0xbd5   :  { %6102 = vmatmul.mubr.msk.bf16.vlgmr.msra.gmra.mxu0 %vm260_vm0, %v2897_v10 }
 0xbd6   :  { %6106 = vmatpush3.bf16.msra.mxu0 %v6348_v46  ;;  %6109 = vmatprep.mubr.msk.bf16.mxu0 %vm6780_vm1, %v6779_v19 }
 0xbd7   :  { %6107 = vmatprep.subr.bf16.mxu0 %v6779_v19 }
 0xbda   :  { %6108 = vmatpush3.bf16.msra.mxu0 %v6349_v15 }
 0xbdb   :  { %6113 = vmatprep.subr.bf16.mxu0 %v6779_v19 }
 0xbdd   :  { %6110 = vmatmul.mubr.msk.bf16.vlgmr.msra.gmra.mxu0 %vm260_vm0, %v2897_v10 }
 0xbde   :  { %6114 = vmatpush3.bf16.msra.mxu0 %v6350_v12  ;;  %6117 = vmatprep.mubr.msk.bf16.mxu0 %vm6780_vm1, %v6779_v19 }
 0xbdf   :  { %6115 = vmatprep.subr.bf16.mxu0 %v6779_v19 }
 0xbe2   :  { %6116 = vmatpush3.bf16.msra.mxu0 %v6351_v23 }
 0xbe3   :  { %6121 = vmatprep.subr.bf16.mxu0 %v6779_v19 }
 0xbe5   :  { %6118 = vmatmul.mubr.msk.bf16.vlgmr.msra.gmra.mxu0 %vm260_vm0, %v2897_v10 }
 0xbe6   :  { %6123 = vmatprep.mubr.msk.bf16.mxu0 %vm6780_vm1, %v6779_v19 }
 0xc95   :  { %v2960_v17 = vpop.f32.mrf.mxu0 }
 0xc96   :  { %v7544_v32 = vadd.f32 %v5719_v1, %v2960_v17 }
 0xc97   :  { %v6103_v35 = vpop.f32.mrf.mxu0 }
 0xc99   :  { %v2963_v0 = vpop.f32.mrf.mxu0 }
 0xc9a   :  { %v7555_v48 = vadd.f32 %v5719_v1, %v2963_v0 }
 0xc9b   :  { %v6104_v53 = vpop.f32.mrf.mxu0 }
 0xc9d   :  { %v3026_v52 = vpop.f32.mrf.mxu0 }
 0xc9e   :  { %v3027_v24 = vadd.f32 %v5727_v36, %v3026_v52 }
 0xc9f   :  { %v6111_v13 = vpop.f32.mrf.mxu0 }
 0xca0   :  { %3407 = vrot.lane.b32.xlu0 %v3027_v24, %s6781_s1  ;;  %3401 = vrot.lane.b32.xlu1 %v3027_v24, %s6782_s14 }
 0xca1   :  { %v3029_v37 = vpop.f32.mrf.mxu0 }
 0xca2   :  { %v7549_v25 = vadd.f32 %v5727_v36, %v3029_v37 }
 0xca3   :  { %v6112_v58 = vpop.f32.mrf.mxu0 }
 0xca4   :  { %3113 = vrot.lane.b32.xlu0 %v7544_v32, %s6783_s5  ;;  %3413 = vrot.lane.b32.xlu1 %v3027_v24, %s6783_s5 }
 0xca5   :  { %v3092_v38 = vpop.f32.mrf.mxu0 }
 0xca6   :  { %v7571_v40 = vadd.f32 %v5735_v44, %v3092_v38 }
 0xca7   :  { %v6119_v43 = vpop.f32.mrf.mxu0 }
 0xca8   :  { %3101 = vrot.lane.b32.xlu1 %v7544_v32, %s6782_s14  ;;  %3409 = vrot.lane.b32.xlu0 %v7549_v25, %s6781_s1 }
 0xca9   :  { %v3095_v45 = vpop.f32.mrf.mxu0 }
 0xcaa   :  { %v7557_v3 = vadd.f32 %v5735_v44, %v3095_v45 }
 0xcab   :  { %v6120_v2 = vpop.f32.mrf.mxu0 }
 0xcac   :  { %3107 = vrot.lane.b32.xlu1 %v7544_v32, %s6781_s1  ;;  %3103 = vrot.lane.b32.xlu0 %v7555_v48, %s6782_s14 }
 0xcb0   :  { %3115 = vrot.lane.b32.xlu0 %v7555_v48, %s6783_s5  ;;  %3403 = vrot.lane.b32.xlu1 %v7549_v25, %s6782_s14 }
 0xcb4   :  { %3415 = vrot.lane.b32.xlu1 %v7549_v25, %s6783_s5 }
 0xcb8   :  { %3109 = vrot.lane.b32.xlu1 %v7555_v48, %s6781_s1 }
 0xcbc   :  { %3701 = vrot.lane.b32.xlu1 %v7571_v40, %s6782_s14 }
 0xd12   :  { %v3408_v54 = vpop.permute.xlu0 %3407  ;;  %v3402_v55 = vpop.permute.xlu1 %3401 }
 0xd13   :  { %v3419_v16 = vcombine.low %v3027_v24, %v3408_v54  ;;  %v3420_v56 = vcombine.high %v3027_v24, %v3408_v54 }
 0xd15   :  { %v3427_v50 = vrot.slane %v3419_v16, %v7058_v7  ;;  %v3434_v62 = vrot.slane %v3420_v56, %v7058_v7 }
 0xd16   :  { %v3114_v60 = vpop.permute.xlu0 %3113  ;;  %v3414_v61 = vpop.permute.xlu1 %3413 }
 0xd17   :  { %v3435_v30 = vcombine.low %v3402_v55, %v3414_v61  ;;  %v3436_v49 = vcombine.high %v3402_v55, %v3414_v61 }
 0xd19   :  { %v3443_v63 = vrot.slane %v3435_v30, %v7058_v7  ;;  %v3450_v5 = vrot.slane %v3436_v49, %v7058_v7 }
 0xd1a   :  { %v3102_v39 = vpop.permute.xlu1 %3101  ;;  %v3410_v6 = vpop.permute.xlu0 %3409 }
 0xd1b   :  { %v3451_v57 = vcombine.low %v3427_v50, %v3443_v63  ;;  %v3452_v8 = vcombine.high %v3427_v50, %v3443_v63  ;;  %v3467_v9 = vcombine.low %v3434_v62, %v3450_v5  ;;  %v3468_v11 = vcombine.high %v3434_v62, %v3450_v5 }
 0xd1c   :  { %v3135_v26 = vcombine.low %v3102_v39, %v3114_v60  ;;  %v3136_v29 = vcombine.high %v3102_v39, %v3114_v60  ;;  %v3487_v31 = vcombine.low %v7549_v25, %v3410_v6  ;;  %v3488_v41 = vcombine.high %v7549_v25, %v3410_v6 }
 0xd1d   :  { %v3459_v42 = vrot.slane %v3451_v57, %v7061_v14  ;;  %v3466_v20 = vrot.slane %v3452_v8, %v7061_v14  ;;  %v3475_v21 = vrot.slane %v3467_v9, %v7061_v14  ;;  %v3482_v22 = vrot.slane %v3468_v11, %v7061_v14 }
 0xd1e   :  { %v3108_v33 = vpop.permute.xlu1 %3107  ;;  %v3104_v47 = vpop.permute.xlu0 %3103  ;;  %v3143_v0 = vrot.slane %v3135_v26, %v7058_v7  ;;  %v3150_v53 = vrot.slane %v3136_v29, %v7058_v7  ;;  %v3495_v13 = vrot.slane %v3487_v31, %v7058_v7  ;;  %v3502_v37 = vrot.slane %v3488_v41, %v7058_v7 }
 0xd1f   :  { %v3555_v34 = vcombine.low %v3459_v42, %v3466_v20  ;;  %v5743_v59 = vcombine.high %v3459_v42, %v3466_v20  ;;  %v3571_v18 = vcombine.low %v3475_v21, %v3482_v22  ;;  %v5744_v46 = vcombine.high %v3475_v21, %v3482_v22 }
 0xd20   :  { %v3119_v10 = vcombine.low %v7544_v32, %v3108_v33  ;;  %v3120_v15 = vcombine.high %v7544_v32, %v3108_v33 }
 0xd21   :  { %v7588_v12 = vrot.slane %v3555_v34, %v7058_v7  ;;  %v7591_v23 = vrot.slane %v5743_v59, %v7058_v7  ;;  %v7594_v17 = vrot.slane %v3571_v18, %v7058_v7  ;;  %v7597_v35 = vrot.slane %v5744_v46, %v7058_v7 }
 0xd22   :  { %v3127_v36 = vrot.slane %v3119_v10, %v7058_v7  ;;  %v3134_v52 = vrot.slane %v3120_v15, %v7058_v7  ;;  %v3116_v24 = vpop.permute.xlu0 %3115  ;;  %v3404_v1 = vpop.permute.xlu1 %3403 }
 0xd23   :  { %v3587_v32 = vcombine.low %v7588_v12, %v7591_v23  ;;  %v3603_v58 = vcombine.low %v7594_v17, %v7597_v35  ;;  %v3203_v45 = vcombine.low %v3104_v47, %v3116_v24  ;;  %v3204_v2 = vcombine.high %v3104_v47, %v3116_v24 }
 0xd24   :  { %v3151_v38 = vcombine.low %v3127_v36, %v3143_v0  ;;  %v3152_v25 = vcombine.high %v3127_v36, %v3143_v0  ;;  %v3167_v43 = vcombine.low %v3134_v52, %v3150_v53  ;;  %v3168_v44 = vcombine.high %v3134_v52, %v3150_v53 }
 0xd25   :  { %v3595_v54 = vrot.slane %v3587_v32, %v7061_v14  ;;  %v3611_v55 = vrot.slane %v3603_v58, %v7061_v14  ;;  %v3211_v18 = vrot.slane %v3203_v45, %v7058_v7  ;;  %v3218_v46 = vrot.slane %v3204_v2, %v7058_v7 }
 0xd26   :  { %v3159_v16 = vrot.slane %v3151_v38, %v7061_v14  ;;  %v3166_v56 = vrot.slane %v3152_v25, %v7061_v14  ;;  %v3175_v60 = vrot.slane %v3167_v43, %v7061_v14  ;;  %v3182_v61 = vrot.slane %v3168_v44, %v7061_v14  ;;  %v3416_v30 = vpop.permute.xlu1 %3415 }
 0xd27   :  { %v3503_v49 = vcombine.low %v3404_v1, %v3416_v30  ;;  %v3504_v50 = vcombine.high %v3404_v1, %v3416_v30  ;;  %v3619_v62 = vcombine.low %v3595_v54, %v3611_v55  ;;  %v3620_v63 = vcombine.high %v3595_v54, %v3611_v55 }
 0xd28   :  { %v3255_v5 = vcombine.low %v3159_v16, %v3166_v56  ;;  %v5739_v39 = vcombine.high %v3159_v16, %v3166_v56  ;;  %v3271_v6 = vcombine.low %v3175_v60, %v3182_v61  ;;  %v5740_v57 = vcombine.high %v3175_v60, %v3182_v61 }
 0xd29   :  { %v3511_v8 = vrot.slane %v3503_v49, %v7058_v7  ;;  %v3518_v9 = vrot.slane %v3504_v50, %v7058_v7  ;;  %v3691_v11 = vpack.c.bf16 %v3619_v62, %v3619_v62  ;;  %v3692_v42 = vpack.c.bf16 %v3620_v63, %v3620_v63 }
 0xd2a   :  { %v7618_v20 = vrot.slane %v3255_v5, %v7058_v7  ;;  %v7621_v21 = vrot.slane %v5739_v39, %v7058_v7  ;;  %v7624_v22 = vrot.slane %v3271_v6, %v7058_v7  ;;  %v7627_v26 = vrot.slane %v5740_v57, %v7058_v7  ;;  %v3110_v47 = vpop.permute.xlu1 %3109 }
 0xd2b   :  { %v3519_v29 = vcombine.low %v3495_v13, %v3511_v8  ;;  %v3520_v31 = vcombine.high %v3495_v13, %v3511_v8  ;;  %v3535_v41 = vcombine.low %v3502_v37, %v3518_v9  ;;  %v3536_v33 = vcombine.high %v3502_v37, %v3518_v9 }
 0xd2c   :  { %v3287_v34 = vcombine.low %v7618_v20, %v7621_v21  ;;  %v3303_v59 = vcombine.low %v7624_v22, %v7627_v26  ;;  %v3187_v36 = vcombine.low %v7555_v48, %v3110_v47  ;;  %v3188_v52 = vcombine.high %v7555_v48, %v3110_v47 }
 0xd2d   :  { %v3527_v10 = vrot.slane %v3519_v29, %v7061_v14  ;;  %v3534_v15 = vrot.slane %v3520_v31, %v7061_v14  ;;  %v3543_v0 = vrot.slane %v3535_v41, %v7061_v14  ;;  %v3550_v53 = vrot.slane %v3536_v33, %v7061_v14 }
 0xd2e   :  { %v4003_v24 = vsel %vm1400_vm2, %v3691_v11, 0  ;;  %v4049_v1 = vsel %vm1400_vm2, %v3692_v42, 0  ;;  %v3288_v13 = vcombine.high %v7618_v20, %v7621_v21  ;;  %v3304_v37 = vcombine.high %v7624_v22, %v7627_v26 }
 0xd2f   :  { %v3623_v32 = vcombine.low %v3527_v10, %v3534_v15  ;;  %v5745_v58 = vcombine.high %v3527_v10, %v3534_v15  ;;  %6122 = vmatpush3.bf16.xpose.msra.mxu0 %v4003_v24  ;;  %v3195_v38 = vrot.slane %v3187_v36, %v7058_v7  ;;  %v3202_v25 = vrot.slane %v3188_v52, %v7058_v7 }
 0xd30   :  { %6128 = vmatpush3.bf16.xpose.msra.mxu1 %v4049_v1  ;;  %v3295_v48 = vrot.slane %v3287_v34, %v7061_v14  ;;  %v3311_v43 = vrot.slane %v3303_v59, %v7061_v14  ;;  %v3639_v2 = vcombine.low %v3543_v0, %v3550_v53  ;;  %v5746_v54 = vcombine.high %v3543_v0, %v3550_v53 }
 0xd31   :  { %v3630_v44 = vrot.slane %v3623_v32, %v7058_v7  ;;  %v3638_v45 = vrot.slane %v5745_v58, %v7058_v7  ;;  %6133 = vmatprep.subr.bf16.mxu0 %v6779_v19  ;;  %v3219_v55 = vcombine.low %v3195_v38, %v3211_v18  ;;  %v3220_v16 = vcombine.high %v3195_v38, %v3211_v18 }
 0xd32   :  { %v3235_v56 = vcombine.low %v3202_v25, %v3218_v46  ;;  %v3236_v60 = vcombine.high %v3202_v25, %v3218_v46  ;;  %6139 = vmatprep.subr.bf16.mxu1 %v6779_v19  ;;  %v3319_v61 = vcombine.low %v3295_v48, %v3311_v43  ;;  %v3320_v30 = vcombine.high %v3295_v48, %v3311_v43 }
 0xd33   :  { %v3588_v49 = vcombine.high %v7588_v12, %v7591_v23  ;;  %v3604_v50 = vcombine.high %v7594_v17, %v7597_v35  ;;  %v3227_v62 = vrot.slane %v3219_v55, %v7061_v14  ;;  %v3234_v63 = vrot.slane %v3220_v16, %v7061_v14 }
 0xd34   :  { %v3243_v5 = vrot.slane %v3235_v56, %v7061_v14  ;;  %v3250_v39 = vrot.slane %v3236_v60, %v7061_v14  ;;  %v3391_v6 = vpack.c.bf16 %v3319_v61, %v3319_v61  ;;  %v3392_v57 = vpack.c.bf16 %v3320_v30, %v3320_v30 }
 0xd35   :  { %v3602_v8 = vrot.slane %v3588_v49, %v7061_v14  ;;  %v3618_v9 = vrot.slane %v3604_v50, %v7061_v14  ;;  %v3323_v11 = vcombine.low %v3227_v62, %v3234_v63  ;;  %v5741_v42 = vcombine.high %v3227_v62, %v3234_v63 }
 0xd36   :  { %v3339_v12 = vcombine.low %v3243_v5, %v3250_v39  ;;  %v5742_v23 = vcombine.high %v3243_v5, %v3250_v39  ;;  %v3646_v17 = vrot.slane %v3639_v2, %v7058_v7  ;;  %6124 = vmatmul.mubr.msk.bf16.vlgmr.msra.gmra.mxu0 %vm1400_vm2, %v3391_v6  ;;  %v3654_v21 = vrot.slane %v5746_v54, %v7058_v7 }
 0xd37   :  { %6130 = vmatmul.mubr.msk.bf16.vlgmr.msra.gmra.mxu1 %vm1400_vm2, %v3392_v57  ;;  %v3621_v35 = vcombine.low %v3602_v8, %v3618_v9  ;;  %v3622_v20 = vcombine.high %v3602_v8, %v3618_v9  ;;  %v3330_v22 = vrot.slane %v3323_v11, %v7058_v7  ;;  %v3338_v26 = vrot.slane %v5741_v42, %v7058_v7 }
 0xd38   :  { %6135 = vmatprep.mubr.msk.bf16.mxu0 %vm6780_vm1, %v6779_v19  ;;  %v3302_v29 = vrot.slane %v3288_v13, %v7061_v14  ;;  %6141 = vmatprep.mubr.msk.bf16.mxu1 %vm6780_vm1, %v6779_v19  ;;  %v3318_v33 = vrot.slane %v3304_v37, %v7061_v14  ;;  %v3655_v47 = vcombine.low %v3630_v44, %v3638_v45 }
 0xd39   :  { %v3693_v31 = vpack.c.bf16 %v3621_v35, %v3621_v35  ;;  %v3694_v41 = vpack.c.bf16 %v3622_v20, %v3622_v20  ;;  %v3346_v34 = vrot.slane %v3339_v12, %v7058_v7  ;;  %v3354_v59 = vrot.slane %v5742_v23, %v7058_v7 }
 0xd3a   :  { %v3663_v10 = vrot.slane %v3655_v47, %v7061_v14  ;;  %v3671_v15 = vcombine.low %v3646_v17, %v3654_v21  ;;  %v3355_v0 = vcombine.low %v3330_v22, %v3338_v26  ;;  %v3321_v53 = vcombine.low %v3302_v29, %v3318_v33 }
 0xd3b   :  { %v4095_v18 = vsel %vm1400_vm2, %v3693_v31, 0  ;;  %v4141_v46 = vsel %vm1400_vm2, %v3694_v41, 0  ;;  %v3322_v36 = vcombine.high %v3302_v29, %v3318_v33  ;;  %v3371_v52 = vcombine.low %v3346_v34, %v3354_v59 }
 0xd3c   :  { %6134 = vmatpush3.bf16.xpose.msra.mxu0 %v4095_v18  ;;  %6140 = vmatpush3.bf16.xpose.msra.mxu1 %v4141_v46  ;;  %v3679_v24 = vrot.slane %v3671_v15, %v7061_v14  ;;  %v3656_v1 = vcombine.high %v3630_v44, %v3638_v45  ;;  %v3672_v13 = vcombine.high %v3646_v17, %v3654_v21 }
 0xd3d   :  { %6145 = vmatprep.subr.bf16.mxu0 %v6779_v19  ;;  %6151 = vmatprep.subr.bf16.mxu1 %v6779_v19  ;;  %v3393_v25 = vpack.c.bf16 %v3321_v53, %v3321_v53  ;;  %v3394_v48 = vpack.c.bf16 %v3322_v36, %v3322_v36  ;;  %v3363_v54 = vrot.slane %v3355_v0, %v7061_v14 }
 0xd3e   :  { %v3687_v37 = vcombine.low %v3663_v10, %v3679_v24  ;;  %v3688_v32 = vcombine.high %v3663_v10, %v3679_v24  ;;  %v3670_v58 = vrot.slane %v3656_v1, %v7061_v14  ;;  %v3686_v38 = vrot.slane %v3672_v13, %v7061_v14 }
 0xd3f   :  { %v3379_v55 = vrot.slane %v3371_v52, %v7061_v14  ;;  %v3356_v60 = vcombine.high %v3330_v22, %v3338_v26  ;;  %v3372_v61 = vcombine.high %v3346_v34, %v3354_v59 }
 0xd40   :  { %v3695_v43 = vpack.c.bf16 %v3687_v37, %v3687_v37  ;;  %v3696_v2 = vpack.c.bf16 %v3688_v32, %v3688_v32  ;;  %v3689_v16 = vcombine.low %v3670_v58, %v3686_v38  ;;  %v3690_v56 = vcombine.high %v3670_v58, %v3686_v38 }
 0xd41   :  { %v3387_v30 = vcombine.low %v3363_v54, %v3379_v55  ;;  %v3388_v49 = vcombine.high %v3363_v54, %v3379_v55  ;;  %v3370_v39 = vrot.slane %v3356_v60, %v7061_v14  ;;  %v3386_v6 = vrot.slane %v3372_v61, %v7061_v14 }
 0xd42   :  { %v4187_v44 = vsel %vm1400_vm2, %v3695_v43, 0  ;;  %v4233_v45 = vsel %vm1400_vm2, %v3696_v2, 0  ;;  %v3697_v50 = vpack.c.bf16 %v3689_v16, %v3689_v16  ;;  %v3698_v62 = vpack.c.bf16 %v3690_v56, %v3690_v56 }
 0xd43   :  { %6136 = vmatmul.mubr.msk.bf16.vlgmr.msra.gmra.mxu0 %vm1400_vm2, %v3393_v25  ;;  %6142 = vmatmul.mubr.msk.bf16.vlgmr.msra.gmra.mxu1 %vm1400_vm2, %v3394_v48  ;;  %v3395_v63 = vpack.c.bf16 %v3387_v30, %v3387_v30  ;;  %v3396_v5 = vpack.c.bf16 %v3388_v49, %v3388_v49  ;;  %v3389_v9 = vcombine.low %v3370_v39, %v3386_v6 }
 0xd44   :  { %6147 = vmatprep.mubr.msk.bf16.mxu0 %vm6780_vm1, %v6779_v19  ;;  %6153 = vmatprep.mubr.msk.bf16.mxu1 %vm6780_vm1, %v6779_v19  ;;  %v4279_v57 = vsel %vm1400_vm2, %v3697_v50, 0  ;;  %v4325_v8 = vsel %vm1400_vm2, %v3698_v62, 0  ;;  %v3390_v11 = vcombine.high %v3370_v39, %v3386_v6 }
 0xd45   :  { %6146 = vmatpush3.bf16.xpose.msra.mxu0 %v4187_v44  ;;  %6152 = vmatpush3.bf16.xpose.msra.mxu1 %v4233_v45  ;;  %v3397_v42 = vpack.c.bf16 %v3389_v9, %v3389_v9 }
 0xd46   :  { %6157 = vmatprep.subr.bf16.mxu0 %v6779_v19  ;;  %6163 = vmatprep.subr.bf16.mxu1 %v6779_v19  ;;  %v3398_v12 = vpack.c.bf16 %v3390_v11, %v3390_v11 }
 0xd4c   :  { %6148 = vmatmul.mubr.msk.bf16.vlgmr.msra.gmra.mxu0 %vm1400_vm2, %v3395_v63  ;;  %6154 = vmatmul.mubr.msk.bf16.vlgmr.msra.gmra.mxu1 %vm1400_vm2, %v3396_v5 }
 0xd4d   :  { %6158 = vmatpush3.bf16.xpose.msra.mxu0 %v4279_v57  ;;  %6164 = vmatpush3.bf16.xpose.msra.mxu1 %v4325_v8 }
 0xd4e   :  { %6159 = vmatprep.mubr.msk.bf16.mxu0 %vm6780_vm1, %v6779_v19  ;;  %6165 = vmatprep.mubr.msk.bf16.mxu1 %vm6780_vm1, %v6779_v19 }
 0xd4f   :  { %6169 = vmatprep.subr.bf16.mxu0 %v6779_v19  ;;  %6175 = vmatprep.subr.bf16.mxu1 %v6779_v19 }
 0xd54   :  { %6160 = vmatmul.mubr.msk.bf16.vlgmr.msra.gmra.mxu0 %vm1400_vm2, %v3397_v42  ;;  %6166 = vmatmul.mubr.msk.bf16.vlgmr.msra.gmra.mxu1 %vm1400_vm2, %v3398_v12 }
 0xd55   :  { %6171 = vmatprep.mubr.msk.bf16.mxu0 %vm6780_vm1, %v6779_v19  ;;  %6177 = vmatprep.mubr.msk.bf16.mxu1 %vm6780_vm1, %v6779_v19 }
 0xdf6   :  { %v4039_v23 = vpop.f32.mrf.mxu0 }
 0xdf7   :  { %v4085_v17 = vpop.f32.mrf.mxu1  ;;  %v4040_v35 = vadd.f32 %v4039_v23, %v7201_v28 }
 0xdf8   :  { %v4086_v20 = vadd.f32 %v4085_v17, %v7201_v28  ;;  %v6125_v21 = vpop.f32.mrf.mxu0 }
 0xdf9   :  { %v6131_v22 = vpop.f32.mrf.mxu1  ;;  %v4367_v26 = vsel %vm1400_vm2, %v4040_v35, -inf }
 0xdfa   :  { %v4370_v29 = vsel %vm1400_vm2, %v4086_v20, -inf  ;;  %4368 = vmax.xlane.f32.xlu1 %v4367_v26  ;;  %v4042_v31 = vpop.f32.mrf.mxu0 }
 0xdfb   :  { %4371 = vmax.xlane.f32.xlu0 %v4370_v29  ;;  %v4088_v41 = vpop.f32.mrf.mxu1 }
 0xdfc   :  { %v6126_v33 = vpop.f32.mrf.mxu0 }
 0xdfd   :  { %v6132_v47 = vpop.f32.mrf.mxu1 }
 0xe03   :  { %v4131_v34 = vpop.f32.mrf.mxu0  ;;  %v4177_v59 = vpop.f32.mrf.mxu1 }
 0xe04   :  { %v4132_v18 = vadd.f32 %v4131_v34, %v7201_v28  ;;  %v4178_v15 = vadd.f32 %v4177_v59, %v7201_v28 }
 0xe05   :  { %v6137_v46 = vpop.f32.mrf.mxu0  ;;  %v6143_v10 = vpop.f32.mrf.mxu1 }
 0xe06   :  { %v4373_v0 = vsel %vm1400_vm2, %v4132_v18, -inf  ;;  %v4376_v1 = vsel %vm1400_vm2, %v4178_v15, -inf }
 0xe07   :  { %v4134_v53 = vpop.f32.mrf.mxu0  ;;  %4374 = vmax.xlane.f32.xlu0 %v4373_v0  ;;  %v4180_v36 = vpop.f32.mrf.mxu1 }
 0xe09   :  { %v6138_v52 = vpop.f32.mrf.mxu0  ;;  %v6144_v24 = vpop.f32.mrf.mxu1 }
 0xe0b   :  { %4377 = vmax.xlane.f32.xlu0 %v4376_v1 }
 0xe0c   :  { %v4223_v13 = vpop.f32.mrf.mxu0  ;;  %v4269_v37 = vpop.f32.mrf.mxu1 }
 0xe0d   :  { %v4224_v32 = vadd.f32 %v4223_v13, %v7201_v28  ;;  %v7727_v58 = vadd.f32 %v4269_v37, %v7201_v28 }
 0xe0e   :  { %v6149_v38 = vpop.f32.mrf.mxu0  ;;  %v6155_v25 = vpop.f32.mrf.mxu1 }
 0xe0f   :  { %v4379_v48 = vsel %vm1400_vm2, %v4224_v32, -inf  ;;  %v4382_v43 = vsel %vm1400_vm2, %v7727_v58, -inf }
 0xe10   :  { %4380 = vmax.xlane.f32.xlu1 %v4379_v48  ;;  %v4226_v2 = vpop.f32.mrf.mxu0  ;;  %4383 = vmax.xlane.f32.xlu0 %v4382_v43  ;;  %v4272_v54 = vpop.f32.mrf.mxu1 }
 0xe12   :  { %v6150_v55 = vpop.f32.mrf.mxu0  ;;  %v6156_v44 = vpop.f32.mrf.mxu1 }
 0xe14   :  { %v4315_v45 = vpop.f32.mrf.mxu0  ;;  %v4361_v16 = vpop.f32.mrf.mxu1 }
 0xe15   :  { %v7733_v56 = vadd.f32 %v4315_v45, %v7201_v28  ;;  %v7736_v60 = vadd.f32 %v4361_v16, %v7201_v28  ;;  %v3702_v28 = vpop.permute.xlu1 %3701 }
 0xe16   :  { %v6161_v61 = vpop.f32.mrf.mxu0  ;;  %v6167_v30 = vpop.f32.mrf.mxu1 }
 0xe17   :  { %v4385_v49 = vsel %vm1400_vm2, %v7733_v56, -inf  ;;  %v4388_v50 = vsel %vm1400_vm2, %v7736_v60, -inf }
 0xe18   :  { %4386 = vmax.xlane.f32.xlu1 %v4385_v49  ;;  %v4318_v62 = vpop.f32.mrf.mxu0  ;;  %4389 = vmax.xlane.f32.xlu0 %v4388_v50  ;;  %v4364_v63 = vpop.f32.mrf.mxu1 }
 0xe1a   :  { %v6162_v5 = vpop.f32.mrf.mxu0  ;;  %v6168_v39 = vpop.f32.mrf.mxu1 }
 0xe29   :  { %3713 = vrot.lane.b32.xlu1 %v7571_v40, %s6783_s5 }
 0xe2e   :  { %3707 = vrot.lane.b32.xlu0 %v7571_v40, %s6781_s1 }
 0xe83   :  { %v4369_v6 = vpop.xlane.xlu1 %4368 }
 0xe84   :  { %v4372_v57 = vpop.xlane.xlu0 %4371  ;;  %v4391_v8 = vsub.f32 %v4040_v35, %v4369_v6 }
 0xe85   :  { %v4392_v9 = vsub.f32 %v4086_v20, %v4372_v57 }
 0xe86   :  { %v4399_v11 = vmul.f32 1.442695, %v4391_v8 }
 0xe87   :  { %v4401_v42 = vmul.f32 1.442695, %v4392_v9 }
 0xe88   :  { %6418 = vpow2.f32 %v4399_v11 }
 0xe89   :  { %6420 = vpow2.f32 %v4401_v42 }
 0xe90   :  { %v4375_v12 = vpop.xlane.xlu0 %4374 }
 0xe91   :  { %v4393_v23 = vsub.f32 %v4132_v18, %v4375_v12 }
 0xe93   :  { %v4403_v17 = vmul.f32 1.442695, %v4393_v23 }
 0xe94   :  { %v4378_v21 = vpop.xlane.xlu0 %4377 }
 0xe95   :  { %6422 = vpow2.f32 %v4403_v17  ;;  %v4394_v22 = vsub.f32 %v4178_v15, %v4378_v21  ;;  %v7746_v26 = vpop.eup %6418 }
 0xe96   :  { %v7748_v29 = vpop.eup %6420  ;;  %v4415_v41 = vsel %vm1400_vm2, %v7746_v26, 0.0 }
 0xe97   :  { %v4405_v31 = vmul.f32 1.442695, %v4394_v22  ;;  %4416 = vadd.xlane.f32.xlu1 %v4415_v41  ;;  %v4418_v35 = vsel %vm1400_vm2, %v7748_v29, 0.0 }
 0xe98   :  { %4419 = vadd.xlane.f32.xlu0 %v4418_v35 }
 0xe99   :  { %6424 = vpow2.f32 %v4405_v31  ;;  %v4381_v20 = vpop.xlane.xlu1 %4380  ;;  %v4384_v34 = vpop.xlane.xlu0 %4383 }
 0xe9a   :  { %v4395_v33 = vsub.f32 %v4224_v32, %v4381_v20 }
 0xe9c   :  { %v4407_v47 = vmul.f32 1.442695, %v4395_v33 }
 0xe9e   :  { %6426 = vpow2.f32 %v4407_v47  ;;  %v4396_v47 = vsub.f32 %v7727_v58, %v4384_v34 }
 0xea1   :  { %v7754_v59 = vpop.xlane.xlu1 %4386  ;;  %v4390_v18 = vpop.xlane.xlu0 %4389 }
 0xea2   :  { %v7756_v46 = vpop.eup %6422 }
 0xea3   :  { %v4421_v10 = vsel %vm1400_vm2, %v7756_v46, 0.0 }
 0xea4   :  { %4422 = vadd.xlane.f32.xlu1 %v4421_v10  ;;  %v4409_v10 = vmul.f32 1.442695, %v4396_v47 }
 0xea5   :  { %v3714_v15 = vpop.permute.xlu1 %3713  ;;  %v3708_v0 = vpop.permute.xlu0 %3707 }
 0xea6   :  { %v7760_v53 = vpop.eup %6424  ;;  %v3735_v36 = vcombine.low %v3702_v28, %v3714_v15  ;;  %v3736_v52 = vcombine.high %v3702_v28, %v3714_v15  ;;  %v3719_v24 = vcombine.low %v7571_v40, %v3708_v0  ;;  %v3720_v1 = vcombine.high %v7571_v40, %v3708_v0 }
 0xea7   :  { %v4424_v13 = vsel %vm1400_vm2, %v7760_v53, 0.0  ;;  %6428 = vpow2.f32 %v4409_v10  ;;  %v4398_v15 = vsub.f32 %v7736_v60, %v4390_v18  ;;  %v4397_v60 = vsub.f32 %v7733_v56, %v7754_v59 }
 0xea8   :  { %v3743_v37 = vrot.slane %v3735_v36, %v7058_v7  ;;  %v3750_v32 = vrot.slane %v3736_v52, %v7058_v7  ;;  %v3727_v38 = vrot.slane %v3719_v24, %v7058_v7  ;;  %4425 = vadd.xlane.f32.xlu0 %v4424_v13  ;;  %v3734_v25 = vrot.slane %v3720_v1, %v7058_v7 }
 0xea9   :  { %v4413_v0 = vmul.f32 1.442695, %v4398_v15  ;;  %v4411_v34 = vmul.f32 1.442695, %v4397_v60 }
 0xeaa   :  { %v3751_v48 = vcombine.low %v3727_v38, %v3743_v37  ;;  %v3752_v43 = vcombine.high %v3727_v38, %v3743_v37  ;;  %v3767_v54 = vcombine.low %v3734_v25, %v3750_v32  ;;  %v3768_v55 = vcombine.high %v3734_v25, %v3750_v32 }
 0xeab   :  { %v7770_v2 = vpop.eup %6426  ;;  %6430 = vpow2.f32 %v4413_v0 }
 0xeac   :  { %v3759_v40 = vrot.slane %v3751_v48, %v7061_v14  ;;  %v3766_v44 = vrot.slane %v3752_v43, %v7061_v14  ;;  %v4427_v45 = vsel %vm1400_vm2, %v7770_v2, 0.0  ;;  %v3775_v16 = vrot.slane %v3767_v54, %v7061_v14 }
 0xead   :  { %v3782_v61 = vrot.slane %v3768_v55, %v7061_v14  ;;  %4428 = vadd.xlane.f32.xlu0 %v4427_v45  ;;  %6432 = vpow2.f32 %v4411_v34 }
 0xeae   :  { %v3855_v30 = vcombine.low %v3759_v40, %v3766_v44  ;;  %v5747_v49 = vcombine.high %v3759_v40, %v3766_v44 }
 0xeaf   :  { %v3871_v50 = vcombine.low %v3775_v16, %v3782_v61  ;;  %v5748_v62 = vcombine.high %v3775_v16, %v3782_v61 }
 0xeb0   :  { %v3862_v63 = vrot.slane %v3855_v30, %v7058_v7  ;;  %v3870_v5 = vrot.slane %v5747_v49, %v7058_v7 }
 0xeb1   :  { %v3878_v39 = vrot.slane %v3871_v50, %v7058_v7  ;;  %v3886_v28 = vrot.slane %v5748_v62, %v7058_v7 }
 0xeb2   :  { %v3887_v6 = vcombine.low %v3862_v63, %v3870_v5  ;;  %v3888_v57 = vcombine.high %v3862_v63, %v3870_v5 }
 0xeb3   :  { %v3903_v8 = vcombine.low %v3878_v39, %v3886_v28  ;;  %v3904_v9 = vcombine.high %v3878_v39, %v3886_v28 }
 0xeb4   :  { %v3895_v11 = vrot.slane %v3887_v6, %v7061_v14  ;;  %v3902_v42 = vrot.slane %v3888_v57, %v7061_v14  ;;  %v7796_v36 = vpop.eup %6428 }
 0xeb5   :  { %3709 = vrot.lane.b32.xlu1 %v7557_v3, %s6781_s1  ;;  %v3911_v12 = vrot.slane %v3903_v8, %v7061_v14  ;;  %v3918_v23 = vrot.slane %v3904_v9, %v7061_v14  ;;  %v4430_v52 = vsel %vm1400_vm2, %v7796_v36, 0.0  ;;  %s6724_s1 = scalar_lea.vmem %s5632_s9, 32 }
 0xeb6   :  { %p6725_p9 = scmp.ne.s32.totalorder %s5632_s9, %s6724_s1  ;;  %p6730_p11 = scmp.lt.s32.totalorder %s6724_s1, %s6724_s1 }
 0xeb7   :  { %v3919_v17 = vcombine.low %v3895_v11, %v3911_v12  ;;  %v3920_v21 = vcombine.high %v3895_v11, %v3911_v12  ;;  %v3921_v22 = vcombine.low %v3902_v42, %v3918_v23  ;;  %v3922_v31 = vcombine.high %v3902_v42, %v3918_v23 }
 0xeb8   :  { %v7800_v24 = vpop.eup %6430  ;;  %p6731_p12 = por %p6730_p11, %p6729_p10 }
 0xeb9   :  { %v3991_v41 = vpack.c.bf16 %v3919_v17, %v3919_v17  ;;  %v3992_v35 = vpack.c.bf16 %v3920_v21, %v3920_v21  ;;  %v4436_v58 = vsel %vm1400_vm2, %v7800_v24, 0.0  ;;  %v3993_v43 = vpack.c.bf16 %v3921_v22, %v3921_v22 }
 0xeba   :  { %v7808_v18 = vpop.eup %6432  ;;  %v3994_v54 = vpack.c.bf16 %v3922_v31, %v3922_v31  ;;  %p6732_p13 = pnand %p6731_p12, %p6725_p9 }
 0xebb   :  { %v4467_v20 = vsel %vm1868_vm4, %v3991_v41, 0  ;;  %v4513_v33 = vsel %vm1868_vm4, %v3992_v35, 0  ;;  %v4433_v1 = vsel %vm1400_vm2, %v7808_v18, 0.0  ;;  %v4559_v44 = vsel %vm1868_vm4, %v3993_v43, 0 }
 0xebc   :  { %6170 = vmatpush3.bf16.msra.mxu0 %v4467_v20  ;;  %6176 = vmatpush3.bf16.msra.mxu1 %v4513_v33  ;;  %v4605_v45 = vsel %vm1868_vm4, %v3994_v54, 0 }
 0xebd   :  { %6181 = vmatprep.subr.bf16.mxu0 %v6779_v19  ;;  %6187 = vmatprep.subr.bf16.mxu1 %v6779_v19 }
 0xec3   :  { %3703 = vrot.lane.b32.xlu0 %v7557_v3, %s6782_s14 }
 0xed9   :  { %4431 = vadd.xlane.f32.xlu1 %v4430_v52 }
 0xee2   :  { %4437 = vadd.xlane.f32.xlu0 %v4436_v58 }
 0xeea   :  { %3715 = vrot.lane.b32.xlu1 %v7557_v3, %s6783_s5 }
 0xf0e   :  { %4434 = vadd.xlane.f32.xlu1 %v4433_v1 }
 0xf20   :  { %v4417_v13 = vpop.xlane.xlu1 %4416 }
 0xf21   :  { %6434 = vrcp.f32 %v4417_v13  ;;  %v4420_v37 = vpop.xlane.xlu0 %4419 }
 0xf22   :  { %6436 = vrcp.f32 %v4420_v37 }
 0xf2d   :  { %v4423_v32 = vpop.xlane.xlu1 %4422 }
 0xf2e   :  { %6438 = vrcp.f32 %v4423_v32  ;;  %v6435_v38 = vpop.eup %6434 }
 0xf2f   :  { %v6437_v25 = vpop.eup %6436  ;;  %v4447_v48 = vmul.f32 %v6435_v38, %v7746_v26 }
 0xf30   :  { %v4448_v59 = vmul.f32 %v6437_v25, %v7748_v29 }
 0xf31   :  { %v4426_v56 = vpop.xlane.xlu0 %4425  ;;  %v4455_v55 = vpack.c.bf16 %v4447_v48, %v4447_v48  ;;  %v3710_v50 = vpop.permute.xlu1 %3709 }
 0xf32   :  { %6440 = vrcp.f32 %v4426_v56  ;;  %v4456_v40 = vpack.c.bf16 %v4448_v59, %v4448_v59  ;;  %v3788_v5 = vcombine.high %v7557_v3, %v3710_v50 }
 0xf33   :  { %6172 = vmatmul.mubr.msk.bf16.vlgmr.msra.gmra.mxu0 %vm1400_vm2, %v4455_v55 }
 0xf34   :  { %6178 = vmatmul.mubr.msk.bf16.vlgmr.msra.gmra.mxu1 %vm1400_vm2, %v4456_v40  ;;  %6182 = vmatpush3.bf16.msra.mxu0 %v4559_v44  ;;  %v3802_v8 = vrot.slane %v3788_v5, %v7058_v7 }
 0xf35   :  { %6188 = vmatpush3.bf16.msra.mxu1 %v4605_v45  ;;  %6183 = vmatprep.mubr.msk.bf16.mxu0 %vm6780_vm1, %v6779_v19 }
 0xf36   :  { %6189 = vmatprep.mubr.msk.bf16.mxu1 %vm6780_vm1, %v6779_v19  ;;  %6193 = vmatprep.subr.bf16.mxu0 %v6779_v19  ;;  %v4429_v62 = vpop.xlane.xlu0 %4428 }
 0xf37   :  { %6199 = vmatprep.subr.bf16.mxu1 %v6779_v19  ;;  %6442 = vrcp.f32 %v4429_v62 }
 0xf3a   :  { %v3704_v39 = vpop.permute.xlu0 %3703 }
 0xf3b   :  { %v6439_v26 = vpop.eup %6438 }
 0xf3c   :  { %v4449_v29 = vmul.f32 %v6439_v26, %v7756_v46  ;;  %v3787_v46 = vcombine.low %v7557_v3, %v3710_v50 }
 0xf3e   :  { %v4457_v16 = vpack.c.bf16 %v4449_v29, %v4449_v29  ;;  %v3795_v57 = vrot.slane %v3787_v46, %v7058_v7 }
 0xf3f   :  { %v6441_v61 = vpop.eup %6440 }
 0xf40   :  { %6184 = vmatmul.mubr.msk.bf16.vlgmr.msra.gmra.mxu0 %vm1400_vm2, %v4457_v16  ;;  %v4450_v30 = vmul.f32 %v6441_v61, %v7760_v53 }
 0xf41   :  { %6195 = vmatprep.mubr.msk.bf16.mxu0 %vm6780_vm1, %v6779_v19 }
 0xf42   :  { %v4458_v49 = vpack.c.bf16 %v4450_v30, %v4450_v30 }
 0xf44   :  { %6190 = vmatmul.mubr.msk.bf16.vlgmr.msra.gmra.mxu1 %vm1400_vm2, %v4458_v49  ;;  %v6443_v13 = vpop.eup %6442 }
 0xf45   :  { %6201 = vmatprep.mubr.msk.bf16.mxu1 %vm6780_vm1, %v6779_v19  ;;  %v4451_v44 = vmul.f32 %v6443_v13, %v7770_v2 }
 0xf47   :  { %v4459_v49 = vpack.c.bf16 %v4451_v44, %v4451_v44 }
 0xf62   :  { %v4432_v63 = vpop.xlane.xlu1 %4431 }
 0xf63   :  { %6444 = vrcp.f32 %v4432_v63 }
 0xf66   :  { %v3716_v28 = vpop.permute.xlu1 %3715 }
 0xf67   :  { %v3803_v6 = vcombine.low %v3704_v39, %v3716_v28  ;;  %v3804_v53 = vcombine.high %v3704_v39, %v3716_v28 }
 0xf69   :  { %v3811_v9 = vrot.slane %v3803_v6, %v7058_v7  ;;  %v3818_v11 = vrot.slane %v3804_v53, %v7058_v7 }
 0xf6b   :  { %v3819_v42 = vcombine.low %v3795_v57, %v3811_v9  ;;  %v3820_v12 = vcombine.high %v3795_v57, %v3811_v9  ;;  %v3835_v23 = vcombine.low %v3802_v8, %v3818_v11  ;;  %v3836_v17 = vcombine.high %v3802_v8, %v3818_v11  ;;  %v4438_v41 = vpop.xlane.xlu0 %4437 }
 0xf6c   :  { %6446 = vrcp.f32 %v4438_v41 }
 0xf6d   :  { %v3827_v3 = vrot.slane %v3819_v42, %v7061_v14  ;;  %v3834_v21 = vrot.slane %v3820_v12, %v7061_v14  ;;  %v3843_v22 = vrot.slane %v3835_v23, %v7061_v14  ;;  %v3850_v31 = vrot.slane %v3836_v17, %v7061_v14 }
 0xf6f   :  { %v3923_v35 = vcombine.low %v3827_v3, %v3834_v21  ;;  %v5749_v20 = vcombine.high %v3827_v3, %v3834_v21  ;;  %v3939_v33 = vcombine.low %v3843_v22, %v3850_v31  ;;  %v5750_v47 = vcombine.high %v3843_v22, %v3850_v31 }
 0xf70   :  { %v6445_v48 = vpop.eup %6444 }
 0xf71   :  { %v3930_v10 = vrot.slane %v3923_v35, %v7058_v7  ;;  %v3938_v15 = vrot.slane %v5749_v20, %v7058_v7  ;;  %v3946_v0 = vrot.slane %v3939_v33, %v7058_v7  ;;  %v3954_v52 = vrot.slane %v5750_v47, %v7058_v7 }
 0xf72   :  { %v4452_v45 = vmul.f32 %v6445_v48, %v7796_v36 }
 0xf73   :  { %v3955_v58 = vcombine.low %v3930_v10, %v3938_v15  ;;  %v3971_v60 = vcombine.low %v3946_v0, %v3954_v52  ;;  %v3956_v34 = vcombine.high %v3930_v10, %v3938_v15  ;;  %v3972_v1 = vcombine.high %v3946_v0, %v3954_v52 }
 0xf74   :  { %v4460_v50 = vpack.c.bf16 %v4452_v45, %v4452_v45 }
 0xf75   :  { %v3963_v37 = vrot.slane %v3955_v58, %v7061_v14  ;;  %v3979_v32 = vrot.slane %v3971_v60, %v7061_v14  ;;  %v3970_v38 = vrot.slane %v3956_v34, %v7061_v14  ;;  %v3986_v25 = vrot.slane %v3972_v1, %v7061_v14 }
 0xf77   :  { %v3987_v43 = vcombine.low %v3963_v37, %v3979_v32  ;;  %v3988_v56 = vcombine.high %v3963_v37, %v3979_v32  ;;  %v3989_v59 = vcombine.low %v3970_v38, %v3986_v25  ;;  %v3990_v54 = vcombine.high %v3970_v38, %v3986_v25 }
 0xf79   :  { %v3995_v55 = vpack.c.bf16 %v3987_v43, %v3987_v43  ;;  %v3996_v40 = vpack.c.bf16 %v3988_v56, %v3988_v56  ;;  %v3997_v16 = vpack.c.bf16 %v3989_v59, %v3989_v59  ;;  %v3998_v61 = vpack.c.bf16 %v3990_v54, %v3990_v54  ;;  %v6447_v30 = vpop.eup %6446 }
 0xf7a   :  { %v4454_v62 = vmul.f32 %v6447_v30, %v7800_v24 }
 0xf7b   :  { %v4651_v26 = vsel %vm1868_vm4, %v3995_v55, 0  ;;  %v4697_v29 = vsel %vm1868_vm4, %v3996_v40, 0  ;;  %v4743_v2 = vsel %vm1868_vm4, %v3997_v16, 0  ;;  %v4789_v36 = vsel %vm1868_vm4, %v3998_v61, 0 }
 0xf7c   :  { %6194 = vmatpush3.bf16.msra.mxu0 %v4651_v26  ;;  %6200 = vmatpush3.bf16.msra.mxu1 %v4697_v29  ;;  %v4462_v63 = vpack.c.bf16 %v4454_v62, %v4454_v62 }
 0xf7d   :  { %6205 = vmatprep.subr.bf16.mxu0 %v6779_v19  ;;  %6211 = vmatprep.subr.bf16.mxu1 %v6779_v19 }
 0xf7f   :  { %6196 = vmatmul.mubr.msk.bf16.vlgmr.msra.gmra.mxu0 %vm1400_vm2, %v4459_v49  ;;  %6202 = vmatmul.mubr.msk.bf16.vlgmr.msra.gmra.mxu1 %vm1400_vm2, %v4460_v50 }
 0xf80   :  { %6206 = vmatpush3.bf16.msra.mxu0 %v4743_v2  ;;  %6212 = vmatpush3.bf16.msra.mxu1 %v4789_v36 }
 0xf81   :  { %6213 = vmatprep.mubr.msk.bf16.mxu1 %vm6780_vm1, %v6779_v19  ;;  %6207 = vmatprep.mubr.msk.bf16.mxu0 %vm6780_vm1, %v6779_v19 }
 0xf82   :  { %6217 = vmatprep.subr.bf16.mxu0 %v6779_v19  ;;  %6225 = vmatprep.subr.bf16.mxu1 %v6779_v19 }
 0xf87   :  { %6214 = vmatmul.mubr.msk.bf16.vlgmr.msra.gmra.mxu1 %vm1400_vm2, %v4462_v63 }
 0xf88   :  { %6229 = vmatprep.mubr.msk.bf16.mxu1 %vm6780_vm1, %v6779_v19 }
 0xf97   :  { %v4435_v46 = vpop.xlane.xlu1 %4434 }
 0xf98   :  { %6448 = vrcp.f32 %v4435_v46 }
 0xfa5   :  { %v6449_v5 = vpop.eup %6448 }
 0xfa6   :  { %v4453_v39 = vmul.f32 %v6449_v5, %v7808_v18 }
 0xfa8   :  { %v4461_v28 = vpack.c.bf16 %v4453_v39, %v4453_v39 }
 0xfaa   :  { %6208 = vmatmul.mubr.msk.bf16.vlgmr.msra.gmra.mxu0 %vm1400_vm2, %v4461_v28 }
 0xfab   :  { %6221 = vmatprep.mubr.msk.bf16.mxu0 %vm6780_vm1, %v6779_v19 }
 0xff3   :  { %v4503_v24 = vpop.f32.mrf.mxu0 }
 0xff4   :  { %v4549_v6 = vpop.f32.mrf.mxu1 }
 0xff5   :  { %v6173_v53 = vpop.f32.mrf.mxu0 }
 0xff6   :  { %v6179_v57 = vpop.f32.mrf.mxu1 }
 0xff7   :  { %v4506_v8 = vpop.f32.mrf.mxu0 }
 0xff8   :  { %v4552_v9 = vpop.f32.mrf.mxu1 }
 0xff9   :  { %v6174_v11 = vpop.f32.mrf.mxu0 }
 0xffa   :  { %v6180_v42 = vpop.f32.mrf.mxu1 }
0x1000   :  { %v4595_v12 = vpop.f32.mrf.mxu0 }
0x1001   :  { %v4831_v23 = vcombine.low %v4503_v24, %v4595_v12  ;;  %v4832_v17 = vcombine.high %v4503_v24, %v4595_v12 }
0x1002   :  { %v6185_v3 = vpop.f32.mrf.mxu0 }
0x1003   :  { %v4839_v20 = vrot.slane %v4831_v23, %v7058_v7  ;;  %v4846_v33 = vrot.slane %v4832_v17, %v7058_v7 }
0x1004   :  { %v4598_v21 = vpop.f32.mrf.mxu0  ;;  %v4641_v18 = vpop.f32.mrf.mxu1 }
0x1005   :  { %v4847_v22 = vcombine.low %v4549_v6, %v4641_v18  ;;  %v4848_v31 = vcombine.high %v4549_v6, %v4641_v18 }
0x1006   :  { %v6186_v41 = vpop.f32.mrf.mxu0  ;;  %v6191_v35 = vpop.f32.mrf.mxu1 }
0x1007   :  { %v4855_v47 = vrot.slane %v4847_v22, %v7058_v7  ;;  %v4862_v10 = vrot.slane %v4848_v31, %v7058_v7 }
0x1008   :  { %v4644_v15 = vpop.f32.mrf.mxu1 }
0x1009   :  { %v4863_v0 = vcombine.low %v4839_v20, %v4855_v47  ;;  %v4864_v52 = vcombine.high %v4839_v20, %v4855_v47  ;;  %v4879_v58 = vcombine.low %v4846_v33, %v4862_v10  ;;  %v4880_v60 = vcombine.high %v4846_v33, %v4862_v10 }
0x100a   :  { %v6192_v34 = vpop.f32.mrf.mxu1 }
0x100b   :  { %v4871_v1 = vrot.slane %v4863_v0, %v7061_v14  ;;  %v4878_v13 = vrot.slane %v4864_v52, %v7061_v14  ;;  %v4887_v37 = vrot.slane %v4879_v58, %v7061_v14  ;;  %v4894_v32 = vrot.slane %v4880_v60, %v7061_v14 }
0x100d   :  { %v4967_v38 = vcombine.low %v4871_v1, %v4878_v13  ;;  %v5767_v25 = vcombine.high %v4871_v1, %v4878_v13  ;;  %v4983_v48 = vcombine.low %v4887_v37, %v4894_v32  ;;  %v5768_v43 = vcombine.high %v4887_v37, %v4894_v32  ;;  %v6352_v37 = vld [vmem:[%s8035_s11 + $0x18] sm:$0xff]  }
0x100e   :  { %6218 = vmatpush3.bf16.msra.mxu0 %v6352_v37 }
0x100f   :  { %v4974_v56 = vrot.slane %v4967_v38, %v7058_v7  ;;  %v4982_v59 = vrot.slane %v5767_v25, %v7058_v7  ;;  %v4990_v54 = vrot.slane %v4983_v48, %v7058_v7  ;;  %v4998_v55 = vrot.slane %v5768_v43, %v7058_v7  ;;  %6219 = vmatprep.subr.bf16.mxu0 %v6779_v19 }
0x1011   :  { %v5000_v40 = vcombine.high %v4974_v56, %v4982_v59  ;;  %v5016_v44 = vcombine.high %v4990_v54, %v4998_v55  ;;  %v4999_v45 = vcombine.low %v4974_v56, %v4982_v59  ;;  %v5015_v26 = vcombine.low %v4990_v54, %v4998_v55 }
0x1013   :  { %v7887_v29 = vrot.slane %v5000_v40, %v7061_v14  ;;  %v7890_v16 = vrot.slane %v5016_v44, %v7061_v14  ;;  %v7893_v61 = vrot.slane %v4999_v45, %v7061_v14  ;;  %v7896_v30 = vrot.slane %v5015_v26, %v7061_v14  ;;  %v6353_v26 = vld [vmem:[%s8035_s11 + $0x10] sm:$0xff]  }
0x1014   :  { %6220 = vmatpush3.bf16.msra.mxu0 %v6353_v26 }
0x1015   :  { %v5033_v49 = vcombine.low %v7887_v29, %v7890_v16  ;;  %v5031_v50 = vcombine.low %v7893_v61, %v7896_v30  ;;  %v5032_v2 = vcombine.high %v7893_v61, %v7896_v30  ;;  %v5034_v36 = vcombine.high %v7887_v29, %v7890_v16  ;;  %6233 = vmatprep.subr.bf16.mxu0 %v6779_v19  ;;  %v5775_v61 = vld [vmem:[#allocation13 + $0x1] ss:$0 sm:$0xff] }
0x103f   :  { %v4687_v62 = vpop.f32.mrf.mxu0  ;;  %v4733_v63 = vpop.f32.mrf.mxu1 }
0x1041   :  { %v6197_v46 = vpop.f32.mrf.mxu0  ;;  %v6203_v5 = vpop.f32.mrf.mxu1 }
0x1043   :  { %v4690_v39 = vpop.f32.mrf.mxu0  ;;  %v4736_v28 = vpop.f32.mrf.mxu1 }
0x1045   :  { %v6198_v24 = vpop.f32.mrf.mxu0  ;;  %v6204_v6 = vpop.f32.mrf.mxu1 }
0x1047   :  { %v4825_v53 = vpop.f32.mrf.mxu1 }
0x1048   :  { %v4915_v11 = vcombine.low %v4733_v63, %v4825_v53  ;;  %v4916_v42 = vcombine.high %v4733_v63, %v4825_v53 }
0x1049   :  { %v6215_v57 = vpop.f32.mrf.mxu1 }
0x104a   :  { %v4923_v21 = vrot.slane %v4915_v11, %v7058_v7  ;;  %v4930_v18 = vrot.slane %v4916_v42, %v7058_v7 }
0x104b   :  { %v4828_v8 = vpop.f32.mrf.mxu1 }
0x104d   :  { %v6216_v9 = vpop.f32.mrf.mxu1 }
0x106a   :  { %v4779_v12 = vpop.f32.mrf.mxu0 }
0x106b   :  { %v4899_v23 = vcombine.low %v4687_v62, %v4779_v12  ;;  %v4900_v17 = vcombine.high %v4687_v62, %v4779_v12 }
0x106c   :  { %v6209_v3 = vpop.f32.mrf.mxu0 }
0x106d   :  { %v4907_v22 = vrot.slane %v4899_v23, %v7058_v7  ;;  %v4914_v31 = vrot.slane %v4900_v17, %v7058_v7 }
0x106e   :  { %v4782_v41 = vpop.f32.mrf.mxu0 }
0x106f   :  { %v4931_v35 = vcombine.low %v4907_v22, %v4923_v21  ;;  %v4932_v20 = vcombine.high %v4907_v22, %v4923_v21  ;;  %v4947_v33 = vcombine.low %v4914_v31, %v4930_v18  ;;  %v4948_v47 = vcombine.high %v4914_v31, %v4930_v18 }
0x1070   :  { %v6210_v10 = vpop.f32.mrf.mxu0 }
0x1071   :  { %v4939_v15 = vrot.slane %v4931_v35, %v7061_v14  ;;  %v4946_v0 = vrot.slane %v4932_v20, %v7061_v14  ;;  %v4955_v52 = vrot.slane %v4947_v33, %v7061_v14  ;;  %v4962_v58 = vrot.slane %v4948_v47, %v7061_v14 }
0x1073   :  { %v5035_v60 = vcombine.low %v4939_v15, %v4946_v0  ;;  %v5769_v34 = vcombine.high %v4939_v15, %v4946_v0  ;;  %v5051_v1 = vcombine.low %v4955_v52, %v4962_v58  ;;  %v5770_v13 = vcombine.high %v4955_v52, %v4962_v58 }
0x1075   :  { %v5042_v32 = vrot.slane %v5035_v60, %v7058_v7  ;;  %v5050_v38 = vrot.slane %v5769_v34, %v7058_v7  ;;  %v5058_v25 = vrot.slane %v5051_v1, %v7058_v7  ;;  %v5066_v48 = vrot.slane %v5770_v13, %v7058_v7  ;;  %v6354_v60 = vld [vmem:[%s8039_s15 + $0x18] sm:$0xff]   ;;  %v6355_v34 = vld [vmem:[%s8039_s15 + $0x10] sm:$0xff]  }
0x1076   :  { %6226 = vmatpush3.bf16.msra.mxu1 %v6354_v60 }
0x1077   :  { %v5068_v43 = vcombine.high %v5042_v32, %v5050_v38  ;;  %v5084_v56 = vcombine.high %v5058_v25, %v5066_v48  ;;  %v5067_v59 = vcombine.low %v5042_v32, %v5050_v38  ;;  %v5083_v54 = vcombine.low %v5058_v25, %v5066_v48  ;;  %6227 = vmatprep.subr.bf16.mxu1 %v6779_v19 }
0x1079   :  { %v5082_v55 = vrot.slane %v5068_v43, %v7061_v14  ;;  %v5098_v40 = vrot.slane %v5084_v56, %v7061_v14  ;;  %v5075_v44 = vrot.slane %v5067_v59, %v7061_v14  ;;  %v5091_v45 = vrot.slane %v5083_v54, %v7061_v14  ;;  %v5779_v56 = vld [vmem:[#allocation14 + $0x1] ss:$0 sm:$0xff] }
0x107a   :  { %6228 = vmatpush3.bf16.msra.mxu1 %v6355_v34 }
0x107b   :  { %v5101_v7 = vcombine.low %v5082_v55, %v5098_v40  ;;  %v5100_v62 = vcombine.high %v5075_v44, %v5091_v45  ;;  %v5099_v63 = vcombine.low %v5075_v44, %v5091_v45  ;;  %v5102_v39 = vcombine.high %v5082_v55, %v5098_v40  ;;  %6253 = vmatprep.subr.mxu1 %v6779_v19  ;;  %v5780_v40 = vld [vmem:[#allocation16 + $0x1] ss:$0 sm:$0xff] }
0x107d   :  { %v6317_v46 = vpack.i.bf16 %v5101_v7, %v5033_v49  ;;  %v6312_v5 = vpack.i.bf16 %v5100_v62, %v5032_v2  ;;  %v6322_v14 = vpack.i.bf16 %v5102_v39, %v5034_v36  ;;  %v6356_v62 = vld [vmem:[%s8041_s17 + $0x78] sm:$0xff]  }
0x107e   :  { %v6360_v39 = vld [vmem:[%s8041_s17 + $0x58] sm:$0xff]  }
0x107f   :  { %6318 = vrot.lane.b32.xlu1 %v6317_v46, %s6761_s30  ;;  %6313 = vrot.lane.b32.xlu0 %v6312_v5, %s6770_s24  ;;  %v6358_v46 = vld [vmem:[%s8041_s17 + $0x68] sm:$0xff]   ;;  %v6359_v5 = vld [vmem:[%s8041_s17 + $0x60] sm:$0xff]  }
0x1083   :  { %6323 = vrot.lane.b32.xlu1 %v6322_v14, %s6786_s4  ;;  %v6361_v14 = vld [vmem:[%s8041_s17 + $0x50] sm:$0xff]  }
0x10f1   :  { %v6319_v28 = vpop.permute.xlu1 %6318  ;;  %v6314_v24 = vpop.permute.xlu0 %6313 }
0x10f2   :  { %v6316_v6 = vunpack.i.h.bf16 %v6314_v24  ;;  %v6315_v53 = vunpack.i.l.bf16 %v6314_v24  ;;  %v6321_v57 = vunpack.i.h.bf16 %v6319_v28  ;;  %v6320_v8 = vunpack.i.l.bf16 %v6319_v28  ;;  %v6362_v28 = vld [vmem:[%s8041_s17 + $0x48] sm:$0xff]   ;;  %v5454_v24 = vld [vmem:[%s8061_s12] sm:$0x3] }
0x10f4   :  { %v5127_v49 = vsel %vm1400_vm2, %v5031_v50, %v6315_v53  ;;  %v5128_v2 = vsel %vm1400_vm2, %v5099_v63, %v6316_v6  ;;  %v6357_v63 = vld [vmem:[%s8041_s17 + $0x70] sm:$0xff]   ;;  %v6363_v6 = vld [vmem:[%s8041_s17 + $0x40] sm:$0xff]   ;;  %v6787_v53 = vmov 0  }
0x10f5   :  { %v6324_v9 = vpop.permute.xlu1 %6323  ;;  %v5129_v29 = vsel %vm2532_vm5, %v5127_v49, %v6320_v8  ;;  %v5130_v16 = vsel %vm2532_vm5, %v5128_v2, %v6321_v57  ;;  %6327 = vset.pattern.permute.xlu0 %v6787_v53  ;;  %v5785_v57 = vld [vmem:[#allocation17 + $0x1] ss:$0 sm:$0xff] }
0x10f6   :  { %v6326_v11 = vunpack.i.h.bf16 %v6324_v9  ;;  %v6325_v42 = vunpack.i.l.bf16 %v6324_v9 }
0x10f8   :  { %v5131_v36 = vsel %vm2535_vm6, %v5129_v29, %v6325_v42  ;;  %v5132_v12 = vsel %vm2535_vm6, %v5130_v16, %v6326_v11 }
0x10f9   :  { %v5133_v23 = vpack.c.bf16 %v5132_v12, %v5131_v36 }
0x10fb   :  { %6222 = vmatmul.mubr.msk.bf16.vlgmr.msra.gmra.mxu0 %vm260_vm0, %v5133_v23 }
0x10fc   :  { %6249 = vmatprep.mubr.msk.bf16.mxu0 %vm6780_vm1, %v6779_v19  ;;  %6234 = vmatpush3.bf16.msra.mxu0 %v6356_v62 }
0x10fd   :  { %6235 = vmatprep.subr.bf16.mxu0 %v6779_v19 }
0x1100   :  { %6236 = vmatpush3.bf16.msra.mxu0 %v6357_v63 }
0x1101   :  { %6237 = vmatprep.subr.bf16.mxu0 %v6779_v19 }
0x1104   :  { %6238 = vmatpush3.bf16.msra.mxu0 %v6358_v46 }
0x1105   :  { %6239 = vmatprep.subr.bf16.mxu0 %v6779_v19 }
0x1108   :  { %6240 = vmatpush3.bf16.msra.mxu0 %v6359_v5 }
0x1109   :  { %6241 = vmatprep.subr.bf16.mxu0 %v6779_v19 }
0x110c   :  { %6242 = vmatpush3.bf16.msra.mxu0 %v6360_v39 }
0x110d   :  { %6243 = vmatprep.subr.bf16.mxu0 %v6779_v19 }
0x1110   :  { %6244 = vmatpush3.bf16.msra.mxu0 %v6361_v14 }
0x1111   :  { %6245 = vmatprep.subr.bf16.mxu0 %v6779_v19 }
0x1114   :  { %6246 = vmatpush3.bf16.msra.mxu0 %v6362_v28 }
0x1115   :  { %6247 = vmatprep.subr.bf16.mxu0 %v6779_v19 }
0x1118   :  { %6248 = vmatpush3.bf16.msra.mxu0 %v6363_v6 }
0x11bb   :  { %v5196_v30 = vpop.f32.mrf.mxu0 }
0x11bc   :  { %v5197_v50 = vadd.f32 %v5775_v61, %v5196_v30 }
0x11bd   :  { %v6223_v17 = vpop.f32.mrf.mxu0 }
0x11be   :  { %v7949_v3 = vadd.f32 %v5197_v50, %v7496_v51 }
0x11bf   :  { %v5199_v21 = vpop.f32.mrf.mxu0 }
0x11c0   :  { %v5200_v18 = vadd.f32 %v5775_v61, %v5199_v21  ;;  %v5209_v22 = vsel %vm260_vm0, %v7949_v3, 0.0 }
0x11c1   :  { %5210 = vadd.xlane.f32.xlu0 %v5209_v22  ;;  %v6224_v31 = vpop.f32.mrf.mxu0 }
0x11c2   :  { %v7954_v41 = vadd.f32 %v5200_v18, %v7501_v4 }
0x11c4   :  { %v5212_v35 = vsel %vm260_vm0, %v7954_v41, 0.0 }
0x11c5   :  { %5213 = vadd.xlane.f32.xlu1 %v5212_v35 }
0x124a   :  { %v5211_v20 = vpop.xlane.xlu0 %5210 }
0x124b   :  { %v5215_v33 = vmul.f32 0.03125, %v5211_v20  ;;  %v5807_v20 = vld [vmem:[#allocation19 + $0x1] ss:$0 sm:$0xff] }
0x124d   :  { %v5217_v47 = vsub.f32 %v7949_v3, %v5215_v33 }
0x124e   :  { %v5214_v51 = vpop.xlane.xlu1 %5213 }
0x124f   :  { %v5216_v10 = vmul.f32 0.03125, %v5214_v51  ;;  %v5219_v15 = vmul.f32 %v5217_v47, %v5217_v47 }
0x1251   :  { %v5218_v0 = vsub.f32 %v7954_v41, %v5216_v10  ;;  %v5221_v52 = vsel %vm260_vm0, %v5219_v15, 0.0 }
0x1252   :  { %5222 = vadd.xlane.f32.xlu0 %v5221_v52 }
0x1253   :  { %v5220_v58 = vmul.f32 %v5218_v0, %v5218_v0 }
0x1255   :  { %v5224_v4 = vsel %vm260_vm0, %v5220_v58, 0.0 }
0x1256   :  { %5225 = vadd.xlane.f32.xlu0 %v5224_v4 }
0x126c   :  { %5456 = vperm.xlu0 %6327, %v5454_v24  }
0x12db   :  { %v5223_v1 = vpop.xlane.xlu0 %5222 }
0x12dc   :  { %v5227_v13 = vmul.f32 0.03125, %v5223_v1 }
0x12de   :  { %v5229_v37 = vadd.f32 1e-05, %v5227_v13 }
0x12df   :  { %v5226_v32 = vpop.xlane.xlu0 %5225 }
0x12e0   :  { %6450 = vrsqrt.f32 %v5229_v37  ;;  %v5228_v38 = vmul.f32 0.03125, %v5226_v32  ;;  %v6364_v32 = vld [vmem:[#allocation22 + $0x8] sm:$0xff]  }
0x12e2   :  { %v5230_v25 = vadd.f32 1e-05, %v5228_v38  ;;  %v6365_v38 = vld [vmem:[#allocation22] sm:$0xff]  }
0x12e4   :  { %6452 = vrsqrt.f32 %v5230_v25 }
0x12ed   :  { %v6451_v48 = vpop.eup %6450 }
0x12ee   :  { %v5233_v43 = vmul.f32 %v6451_v48, %v5217_v47  ;;  %v5457_v47 = vpop.permute.xlu0 %5456 }
0x12ef   :  { %vm5458_vm7 = vcmp.eq.s32.totalorder %v7196_v27, %v5457_v47 }
0x12f0   :  { %v5241_v55 = vmul.f32 %v5779_v56, %v5233_v43  ;;  %v5816_v4 = vsel %vm5458_vm7, 1.0, %v6779_v19 }
0x12f1   :  { %v6453_v59 = vpop.eup %6452 }
0x12f2   :  { %v5234_v54 = vmul.f32 %v6453_v59, %v5218_v0  ;;  %v5249_v45 = vadd.f32 %v5780_v40, %v5241_v55  ;;  %v5818_v59 = vld [vmem:[%s8043_s19] ss:$0 sm:$0xff]  ;;  %v5819_v55 = vld [vmem:[#allocation20] ss:$0 sm:$0xff] }
0x12f4   :  { %v5242_v44 = vmul.f32 %v5779_v56, %v5234_v54 }
0x12f6   :  { %v5250_v26 = vadd.f32 %v5780_v40, %v5242_v44 }
0x12f8   :  { %v5251_v7 = vpack.c.bf16 %v5250_v26, %v5249_v45 }
0x12fa   :  { %6230 = vmatmul.mubr.msk.bf16.vlgmr.msra.gmra.mxu1 %vm260_vm0, %v5251_v7 }
0x12fb   :  { %6257 = vmatprep.mubr.msk.f32.mxu1 %vm6780_vm1, %v6779_v19 }
0x13ba   :  { %v5314_v8 = vpop.f32.mrf.mxu1 }
0x13bb   :  { %v5315_v49 = vadd.f32 %v5785_v57, %v5314_v8 }
0x13bc   :  { %v6231_v2 = vpop.f32.mrf.mxu1 }
0x13bd   :  { %v5789_v9 = vmul.f32 -1.702, %v5315_v49 }
0x13be   :  { %v5317_v11 = vpop.f32.mrf.mxu1 }
0x13bf   :  { %v5325_v42 = vmul.f32 1.442695, %v5789_v9  ;;  %v5318_v29 = vadd.f32 %v5785_v57, %v5317_v11 }
0x13c0   :  { %v6232_v16 = vpop.f32.mrf.mxu1 }
0x13c1   :  { %6454 = vpow2.f32 %v5325_v42  ;;  %v5790_v36 = vmul.f32 -1.702, %v5318_v29 }
0x13c3   :  { %v5327_v12 = vmul.f32 1.442695, %v5790_v36 }
0x13c5   :  { %6456 = vpow2.f32 %v5327_v12 }
0x13ce   :  { %v6455_v23 = vpop.eup %6454 }
0x13cf   :  { %v5329_v61 = vadd.f32 1.0, %v6455_v23 }
0x13d1   :  { %6458 = vrcp.f32 %v5329_v61 }
0x13d2   :  { %v6457_v30 = vpop.eup %6456 }
0x13d3   :  { %v5330_v50 = vadd.f32 1.0, %v6457_v30 }
0x13d5   :  { %6460 = vrcp.f32 %v5330_v50 }
0x13de   :  { %v6459_v17 = vpop.eup %6458 }
0x13df   :  { %v5335_v18 = vmul.f32 %v6459_v17, %v5315_v49 }
0x13e2   :  { %v6461_v21 = vpop.eup %6460 }
0x13e3   :  { %v5336_v22 = vmul.f32 %v6461_v21, %v5318_v29 }
0x13e5   :  { %v5337_v31 = vpack.c.bf16 %v5336_v22, %v5335_v18 }
0x13e7   :  { %6250 = vmatmul.mubr.bf16.vlgmr.msra.gmra.mxu0 %v5337_v31 }
0x14a7   :  { %v5445_v35 = vpop.f32.mrf.mxu0 }
0x14a8   :  { %v5446_v10 = vadd.f32 %v5807_v20, %v5445_v35 }
0x14a9   :  { %v6251_v33 = vpop.f32.mrf.mxu0 }
0x14aa   :  { %v5452_v58 = vadd.f32 %v5446_v10, %v7949_v3 }
0x14ab   :  { %v5448_v51 = vpop.f32.mrf.mxu0 }
0x14ac   :  { %v5449_v15 = vadd.f32 %v5807_v20, %v5448_v51 }
0x14ad   :  { %v6252_v0 = vpop.f32.mrf.mxu0 }
0x14ae   :  { %v5453_v52 = vadd.f32 %v5449_v15, %v7954_v41 }
0x14b0   :  { %6254 = vmatpush3.msra.mxu1 %v5453_v52 }
0x14b1   :  { %6255 = vmatprep.subr.mxu1 %v6779_v19 }
0x14b2   :  { %6256 = vmatpush3.msra.mxu1 %v5452_v58 }
0x14b3   :  { %6258 = vmatmul.mubr.msk.f32.vlgmr.msra.gmra.mxu1 %vm2532_vm5, %v5816_v4  ;;  %6260 = vmatprep.subr.bf16.mxu1 %v6779_v19 }
0x14b4   :  { %6264 = vmatprep.mubr.msk.bf16.mxu1 %vm6780_vm1, %v6779_v19  ;;  %6261 = vmatpush3.bf16.msra.mxu1 %v6364_v32 }
0x14b5   :  { %6262 = vmatprep.subr.bf16.mxu1 %v6779_v19 }
0x14b8   :  { %6263 = vmatpush3.bf16.msra.mxu1 %v6365_v38 }
0x1573   :  { %v5530_v60 = vpop.f32.mrf.mxu1 }
0x1574   :  { %v5537_v27 = vsel %vm5536_vm8, %v5530_v60, 0.0 }
0x1575   :  { %5538 = vadd.xlane.f32.xlu1 %v5537_v27  ;;  %v6259_v41 = vpop.f32.mrf.mxu1 }
0x15fe   :  { %v5539_v34 = vpop.xlane.xlu1 %5538 }
0x15ff   :  { %v5540_v3 = vmul.f32 0.03125, %v5539_v34 }
0x1601   :  { %v5541_v1 = vsub.f32 %v5530_v60, %v5540_v3 }
0x1603   :  { %v5542_v13 = vmul.f32 %v5541_v1, %v5541_v1 }
0x1605   :  { %v5543_v37 = vsel %vm5536_vm8, %v5542_v13, 0.0 }
0x1606   :  { %5544 = vadd.xlane.f32.xlu1 %v5543_v37 }
0x168f   :  { %v5545_v25 = vpop.xlane.xlu1 %5544 }
0x1690   :  { %v5546_v48 = vmul.f32 0.03125, %v5545_v25 }
0x1692   :  { %v5547_v43 = vadd.f32 1e-05, %v5546_v48 }
0x1694   :  { %6462 = vrsqrt.f32 %v5547_v43 }
0x16a1   :  { %v6463_v56 = vpop.eup %6462 }
0x16a2   :  { %v5549_v54 = vmul.f32 %v6463_v56, %v5541_v1 }
0x16a4   :  { %v5556_v40 = vmul.f32 %v5818_v59, %v5549_v54 }
0x16a6   :  { %v5563_v44 = vadd.f32 %v5819_v55, %v5556_v40 }
0x16a8   :  { %v5564_v45 = vpack.c.bf16 %v5563_v44, %v5563_v44 }
0x16aa   :  { %6265 = vmatmul.mubr.msk.bf16.vlgmr.msra.gmra.mxu1 %vm260_vm0, %v5564_v45 }
0x176a   :  { %v5618_v19 = vpop.f32.mrf.mxu1 }
0x176b   :  { %5624 = vst [vmem:[#allocation23] sm:$0x3] %v5618_v19 }
0x176c   :  { %v6266_v26 = vpop.f32.mrf.mxu1 }
0x176d   :  { %6735 = shalt.err (!%p6732_p13)
}
0x176e   :  { %5634 = dma.vmem_to_hbm [thread:$0]  %s5632_s9, 32, %s8046_s22, [#allocation4]   ;;  %v5621_v7 = vpop.f32.mrf.mxu1 }
0x1770   :  { %v6267_v62 = vpop.f32.mrf.mxu1 }
0x1771   :  { %6758 = dma.done.wait [#allocation4], 32  }
0x1772   :  { %6759 = vsyncadd [#allocation4], 4294967264 }
0x1773   :  { %5638 = vsyncpa [#allocation3], 1 }
0x1774   :  { %5639 = vsyncpa [#allocation6], 1 }
0x1775   :  { %5640 = vsyncpa [#allocation9], 1 }
0x1776   :  { %5641 = vsyncpa [#allocation12], 1 }
0x1777   :  { %5642 = vsyncpa [#allocation15], 1 }
0x1778   :  { %5643 = vsyncpa [#allocation18], 1 }
0x1779   :  { %5644 = vsyncpa [#allocation21], 1 }
0x177a   :  { %5645 = vsyncpa [#allocation4], 1 }

</bundles_post_ra>
